<compile_context>
chip_gen: v6e
topology: v6e:2x2x1
jax: 0.10.0
libtpu: 0.0.40
codegen_flags: <defaults>
</compile_context>

<pallas_src>
import math
from functools import partial

import jax
import jax.numpy as jnp
from jax.experimental import pallas as pl
from jax.experimental.pallas import tpu as pltpu

# ----------------------- small synthetic configuration -----------------------
DEPTH = 2
NUM_HEADS = 2
C = D = 32              # var.emb_dim
CVAE = 8                # vqvgae.quantizer.embedding_dim
V = 64                  # vqvgae.quantizer.codebook_size
V_PAD = 128             # lane-dense padded head width (extra cols are zero)
SCALES = (1, 2, 3)      # vqvgae.quantizer.scales
L = sum(SCALES)         # total token length
FIRST_L = SCALES[0]
NUM_CLASSES = 10
MLP_RATIO = 2.0
COND_DROP_RATE = 0.1
NORM_EPS = 1e-6
HEAD_DIM = C // NUM_HEADS
HIDDEN = int(MLP_RATIO * C)
NEG_BIAS = -1e30        # finite "-inf" for the masked-softmax bias


# =============================== fused Pallas kernel ==========================
def _var_kernel(base_ref, xw_ref, cond_ref,
                lvl_r_ref, lvl_c_ref, bat_r_ref, bat_c_ref,
                wemb_w_ref,
                sal_w_ref, sal_b_ref, ada_gss_ref,
                wq_ref, bq_ref, wk_ref, bk_ref, wv_ref, bv_ref,
                projh_w_ref, proj_b_ref,
                fc1_w_ref, fc1_b_ref, fc2_w_ref, fc2_b_ref,
                hs_w_ref, hs_b_ref, hh_w_ref, hh_b_ref,
                head_w_ref, head_b_ref,
                out_ref,
                *, depth, C, H, eps):
    Dh = C // H
    inv_sqrt_dh = 1.0 / math.sqrt(Dh)
    bf16 = jnp.bfloat16
    f32 = jnp.float32

    def ln_mod(x, sc, sh):
        # LayerNorm (no affine, biased var, eps) then * (1 + scale) + shift (f32)
        mu = jnp.mean(x, axis=-1, keepdims=True)
        var = jnp.mean(jnp.square(x - mu), axis=-1, keepdims=True)
        return (x - mu) * jax.lax.rsqrt(var + eps) * (sc + 1.0) + sh

    # ---- block-diagonal causal-by-scale bias, built in-kernel from O(BL) ids --
    keep = (bat_r_ref[...] == bat_c_ref[...]) & (lvl_r_ref[...] >= lvl_c_ref[...])
    bias = jnp.where(keep, 0.0, NEG_BIAS).astype(f32)                 # [BL, BL]

    # ---- token embedding: base (sos/lvl/pos/word-bias terms) + word_embed -----
    x = base_ref[...] + jnp.dot(xw_ref[...].astype(bf16), wemb_w_ref[...],
                                preferred_element_type=f32)           # [BL, C]

    # ---- shared AdaLN conditioning: six separate [BL, C] chunks ---------------
    cond = cond_ref[...]
    cond_b = (cond * jax.nn.sigmoid(cond)).astype(bf16)               # SiLU in f32
    gss = [jnp.dot(cond_b, sal_w_ref[k], preferred_element_type=f32) + sal_b_ref[k]
           for k in range(6)]

    # ---- DEPTH AdaLN self-attention blocks, statically unrolled ---------------
    for d in range(depth):
        gamma1 = gss[0] + ada_gss_ref[d * 6 + 0]
        gamma2 = gss[1] + ada_gss_ref[d * 6 + 1]
        scale1 = gss[2] + ada_gss_ref[d * 6 + 2]
        scale2 = gss[3] + ada_gss_ref[d * 6 + 3]
        shift1 = gss[4] + ada_gss_ref[d * 6 + 4]
        shift2 = gss[5] + ada_gss_ref[d * 6 + 5]

        # ------------------------- attention branch ---------------------------
        xm = ln_mod(x, scale1, shift1).astype(bf16)
        ao = proj_b_ref[d]                                            # [1, C] f32
        for h in range(H):                                            # static unroll
            dh = d * H + h
            q = jnp.dot(xm, wq_ref[dh], preferred_element_type=f32) + bq_ref[dh]
            k = jnp.dot(xm, wk_ref[dh], preferred_element_type=f32) + bk_ref[dh]
            v = jnp.dot(xm, wv_ref[dh], preferred_element_type=f32) + bv_ref[dh]
            s = jax.lax.dot_general(                                  # q @ k.T
                q.astype(bf16), k.astype(bf16),
                (((1,), (1,)), ((), ())),
                preferred_element_type=f32) * inv_sqrt_dh + bias
            m = jnp.max(s, axis=-1, keepdims=True)
            p = jnp.exp(s - m)
            p = p * pl.reciprocal(jnp.sum(p, axis=-1, keepdims=True), approx=True)
            hv = jnp.dot(p.astype(bf16), v.astype(bf16),
                         preferred_element_type=f32)                  # [BL, Dh]
            # accumulate proj output per head (no head concat / lane shuffles)
            ao = ao + jnp.dot(hv.astype(bf16), projh_w_ref[dh],
                              preferred_element_type=f32)
        x = x + ao * gamma1                                           # drop_path = id

        # ----------------------------- FFN branch ------------------------------
        xm2 = ln_mod(x, scale2, shift2).astype(bf16)
        h1 = (jnp.dot(xm2, fc1_w_ref[d], preferred_element_type=f32)
              + fc1_b_ref[d])
        h1 = jax.nn.gelu(h1, approximate=True)                        # GELU(tanh)
        h2 = (jnp.dot(h1.astype(bf16), fc2_w_ref[d], preferred_element_type=f32)
              + fc2_b_ref[d])
        x = x + h2 * gamma2

    # ---- AdaLN-before-head + head projection (lane-dense padded output) -------
    h_scale = jnp.dot(cond_b, hs_w_ref[...], preferred_element_type=f32) + hs_b_ref[...]
    h_shift = jnp.dot(cond_b, hh_w_ref[...], preferred_element_type=f32) + hh_b_ref[...]
    xn = ln_mod(x, h_scale, h_shift).astype(bf16)
    out_ref[...] = (jnp.dot(xn, head_w_ref[...], preferred_element_type=f32)
                    + head_b_ref[...])                                # [BL, V_PAD]


# ============================ parameter construction ==========================
def _trunc_normal(key, shape, std):
    return (std * jax.random.truncated_normal(key, -2.0, 2.0, shape)).astype(jnp.float32)


def _lin_w(key, fan_in, fan_out, std=0.02):
    return (std * jax.random.normal(key, (fan_in, fan_out))).astype(jnp.float32)


def init_params(key):
    ks = iter(jax.random.split(key, 32))
    init_std = math.sqrt(1.0 / C / 3)
    bf16 = jnp.bfloat16

    head_w = _lin_w(next(ks), C, V)

    # Full fused weights are initialized as in the reference module, then
    # repacked host-side so in-kernel per-head / per-chunk reads are
    # leading-dim indexes (no in-kernel lane extraction).
    qkv_w = jnp.stack([_lin_w(next(ks), C, 3 * C) for _ in range(DEPTH)])   # [D,C,3C]
    qkv_r = qkv_w.reshape(DEPTH, C, 3, NUM_HEADS, HEAD_DIM).transpose(2, 0, 3, 1, 4)
    wq = qkv_r[0].reshape(DEPTH * NUM_HEADS, C, HEAD_DIM)
    wk = qkv_r[1].reshape(DEPTH * NUM_HEADS, C, HEAD_DIM)
    wv = qkv_r[2].reshape(DEPTH * NUM_HEADS, C, HEAD_DIM)

    proj_w = jnp.stack([_lin_w(next(ks), C, C) for _ in range(DEPTH)])      # [D,C,C]
    projh_w = proj_w.reshape(DEPTH * NUM_HEADS, HEAD_DIM, C)

    sal_w = _lin_w(next(ks), D, 6 * C).reshape(C, 6, C).transpose(1, 0, 2)  # [6,C,C]
    head_ada_w = _lin_w(next(ks), D, 2 * C)                                  # [C,2C]

    ada_gss = (jax.random.normal(next(ks), (DEPTH, 1, 6 * C))
               / math.sqrt(C)).astype(jnp.float32)
    ada_gss6 = ada_gss.reshape(DEPTH, 1, 6, C).transpose(0, 2, 1, 3).reshape(DEPTH * 6, 1, C)

    p = {
        "class_embed": _trunc_normal(next(ks), (NUM_CLASSES + 1, C), init_std),
        "pos_start": _trunc_normal(next(ks), (1, FIRST_L, C), init_std),
        "pos_1LC": _trunc_normal(next(ks), (1, L, C), init_std),
        "lvl_embed": _trunc_normal(next(ks), (len(SCALES), C), init_std),
        "word_embed_w": _lin_w(next(ks), CVAE, C).astype(bf16),
        "word_embed_b": jnp.zeros((C,), jnp.float32),
        "sal_w": sal_w.astype(bf16),                                  # SharedAdaLin
        "sal_b": jnp.zeros((6, 1, C), jnp.float32),
        "ada_gss": ada_gss6,                                          # [DEPTH*6,1,C]
        "wq": wq.astype(bf16), "wk": wk.astype(bf16), "wv": wv.astype(bf16),
        # VAR: q_bias / v_bias params (zero-init), k bias frozen to zero
        "bq": jnp.zeros((DEPTH * NUM_HEADS, 1, HEAD_DIM), jnp.float32),
        "bk": jnp.zeros((DEPTH * NUM_HEADS, 1, HEAD_DIM), jnp.float32),
        "bv": jnp.zeros((DEPTH * NUM_HEADS, 1, HEAD_DIM), jnp.float32),
        "projh_w": projh_w.astype(bf16),
        "proj_b": jnp.zeros((DEPTH, 1, C), jnp.float32),
        "fc1_w": jnp.stack([_lin_w(next(ks), C, HIDDEN) for _ in range(DEPTH)]).astype(bf16),
        "fc1_b": jnp.zeros((DEPTH, 1, HIDDEN), jnp.float32),
        "fc2_w": jnp.stack([_lin_w(next(ks), HIDDEN, C) for _ in range(DEPTH)]).astype(bf16),
        "fc2_b": jnp.zeros((DEPTH, 1, C), jnp.float32),
        "hs_w": head_ada_w[:, :C].astype(bf16),                       # AdaLNBeforeHead
        "hs_b": jnp.zeros((1, C), jnp.float32),
        "hh_w": head_ada_w[:, C:].astype(bf16),
        "hh_b": jnp.zeros((1, C), jnp.float32),
        # head padded to lane-dense 128 columns (extra columns are zero)
        "head_w": jnp.pad(head_w, ((0, 0), (0, V_PAD - V))).astype(bf16),
        "head_b": jnp.zeros((1, V_PAD), jnp.float32),
    }
    return p


# ================================== forward ==================================
def var_forward(params, x_BLCv_wo_first_l, label_B, drop_key):
    B = x_BLCv_wo_first_l.shape[0]
    BL = B * L

    # conditioning dropout: torch.where(torch.rand(B) < p, 0, label) -- follows
    # the provided module (drops to class index 0).
    # TODO(synk): gate on a train flag for inference; reference VAR uses index
    # NUM_CLASSES as the null class, the provided module spec uses 0.
    u = jax.random.uniform(drop_key, (B,))
    label_B = jnp.where(u < COND_DROP_RATE, 0, label_B)

    # embedding gathers stay in JAX (no clean tiny-Pallas gather equivalent)
    cond_BD = params["class_embed"][label_B]                       # [B, C]
    lvl = jnp.concatenate([jnp.full((pn,), i, jnp.int32)
                           for i, pn in enumerate(SCALES)])        # lvl_1L [L]
    lvl_pos = params["lvl_embed"][lvl] + params["pos_1LC"][0]      # [L, C]

    # additive base: sos rows carry class cond + pos_start; word rows carry the
    # word_embed bias; all rows carry lvl + pos embeddings.
    sos = cond_BD[:, None, :] + params["pos_start"]                # [B, FIRST_L, C]
    word_bias = jnp.broadcast_to(params["word_embed_b"], (B, L - FIRST_L, C))
    base = jnp.concatenate([sos, word_bias], axis=1) + lvl_pos[None]
    base_rows = base.reshape(BL, C).astype(jnp.float32)

    # word-embed input, zero-padded over the SOS positions
    xw_pad = jnp.concatenate(
        [jnp.zeros((B, FIRST_L, CVAE), jnp.float32),
         x_BLCv_wo_first_l.astype(jnp.float32)], axis=1)
    xw_rows = xw_pad.reshape(BL, CVAE)

    cond_rows = jnp.broadcast_to(cond_BD[:, None, :], (B, L, C)).reshape(BL, C)

    # O(BL) mask descriptors -- the [BL, BL] additive bias is built in-kernel
    lvl_rows = jnp.tile(lvl, (B,)).astype(jnp.int32)               # [BL]
    batch_ids = jnp.repeat(jnp.arange(B, dtype=jnp.int32), L)      # [BL]
    lvl_r = lvl_rows[:, None]
    lvl_c = lvl_rows[None, :]
    bat_r = batch_ids[:, None]
    bat_c = batch_ids[None, :]

    def full_spec(shape):
        nd = len(shape)
        return pl.BlockSpec(tuple(shape), lambda i, _nd=nd: (0,) * _nd)

    operands = [
        base_rows, xw_rows, cond_rows, lvl_r, lvl_c, bat_r, bat_c,
        params["word_embed_w"],
        params["sal_w"], params["sal_b"], params["ada_gss"],
        params["wq"], params["bq"], params["wk"], params["bk"],
        params["wv"], params["bv"],
        params["projh_w"], params["proj_b"],
        params["fc1_w"], params["fc1_b"], params["fc2_w"], params["fc2_b"],
        params["hs_w"], params["hs_b"], params["hh_w"], params["hh_b"],
        params["head_w"], params["head_b"],
    ]

    # TODO(synk): at real VAR sizes, set vmem_limit_bytes explicitly, tile query
    # rows, stream per-depth weights, and add a batch-parallel grid axis (v7x).
    logits_pad = pl.pallas_call(
        partial(_var_kernel, depth=DEPTH, C=C, H=NUM_HEADS, eps=NORM_EPS),
        out_shape=jax.ShapeDtypeStruct((BL, V_PAD), jnp.float32),
        grid=(1,),
        in_specs=[full_spec(op.shape) for op in operands],
        out_specs=full_spec((BL, V_PAD)),
        compiler_params=pltpu.CompilerParams(
            dimension_semantics=("arbitrary",)),
    )(*operands)

    return logits_pad[:, :V].reshape(B, L, V)


# ==================================== main ====================================
if __name__ == "__main__":
    root = jax.random.PRNGKey(0)
    k_params, k_x, k_label, k_drop = jax.random.split(root, 4)

    params = init_params(k_params)
    x_BLCv_wo_first_l = jax.random.normal(k_x, (2, L - FIRST_L, CVAE), jnp.float32)
    label_B = jax.random.randint(k_label, (2,), 0, NUM_CLASSES)

    out = jax.jit(var_forward)(params, x_BLCv_wo_first_l, label_B, k_drop)
    out = jax.block_until_ready(out)

    assert out.shape == (2, L, V), out.shape
    assert out.dtype == jnp.float32
    assert bool(jnp.all(jnp.isfinite(out)))
    print("KERNEL_OK")
</pallas_src>

<mosaic_0001>
module attributes {stable_mosaic.version = 11 : i64} {
  func.func @_var_kernel(%arg0: i32, %arg1: memref<12x32xf32, #tpu.memory_space<vmem>>, %arg2: memref<12x8xf32, #tpu.memory_space<vmem>>, %arg3: memref<12x32xf32, #tpu.memory_space<vmem>>, %arg4: memref<12x1xi32, #tpu.memory_space<vmem>>, %arg5: memref<1x12xi32, #tpu.memory_space<vmem>>, %arg6: memref<12x1xi32, #tpu.memory_space<vmem>>, %arg7: memref<1x12xi32, #tpu.memory_space<vmem>>, %arg8: memref<8x32xbf16, #tpu.memory_space<vmem>>, %arg9: memref<6x32x32xbf16, #tpu.memory_space<vmem>>, %arg10: memref<6x1x32xf32, #tpu.memory_space<vmem>>, %arg11: memref<12x1x32xf32, #tpu.memory_space<vmem>>, %arg12: memref<4x32x16xbf16, #tpu.memory_space<vmem>>, %arg13: memref<4x1x16xf32, #tpu.memory_space<vmem>>, %arg14: memref<4x32x16xbf16, #tpu.memory_space<vmem>>, %arg15: memref<4x1x16xf32, #tpu.memory_space<vmem>>, %arg16: memref<4x32x16xbf16, #tpu.memory_space<vmem>>, %arg17: memref<4x1x16xf32, #tpu.memory_space<vmem>>, %arg18: memref<4x16x32xbf16, #tpu.memory_space<vmem>>, %arg19: memref<2x1x32xf32, #tpu.memory_space<vmem>>, %arg20: memref<2x32x64xbf16, #tpu.memory_space<vmem>>, %arg21: memref<2x1x64xf32, #tpu.memory_space<vmem>>, %arg22: memref<2x64x32xbf16, #tpu.memory_space<vmem>>, %arg23: memref<2x1x32xf32, #tpu.memory_space<vmem>>, %arg24: memref<32x32xbf16, #tpu.memory_space<vmem>>, %arg25: memref<1x32xf32, #tpu.memory_space<vmem>>, %arg26: memref<32x32xbf16, #tpu.memory_space<vmem>>, %arg27: memref<1x32xf32, #tpu.memory_space<vmem>>, %arg28: memref<32x128xbf16, #tpu.memory_space<vmem>>, %arg29: memref<1x128xf32, #tpu.memory_space<vmem>>, %arg30: memref<12x128xf32, #tpu.memory_space<vmem>>) attributes {dimension_semantics = [#tpu.dimension_semantics<arbitrary>], iteration_bounds = array<i64: 1>, scalar_prefetch = 0 : i64, scratch_operands = 0 : i64, tpu.core_type = #tpu.core_type<tc>, window_params = [{pipeline_mode = #tpu.pipeline_mode<synchronous>, transform_indices = @transform_0, window_bounds = array<i64: 12, 32>}, {pipeline_mode = #tpu.pipeline_mode<synchronous>, transform_indices = @transform_1, window_bounds = array<i64: 12, 8>}, {pipeline_mode = #tpu.pipeline_mode<synchronous>, transform_indices = @transform_2, window_bounds = array<i64: 12, 32>}, {pipeline_mode = #tpu.pipeline_mode<synchronous>, transform_indices = @transform_3, window_bounds = array<i64: 12, 1>}, {pipeline_mode = #tpu.pipeline_mode<synchronous>, transform_indices = @transform_4, window_bounds = array<i64: 1, 12>}, {pipeline_mode = #tpu.pipeline_mode<synchronous>, transform_indices = @transform_5, window_bounds = array<i64: 12, 1>}, {pipeline_mode = #tpu.pipeline_mode<synchronous>, transform_indices = @transform_6, window_bounds = array<i64: 1, 12>}, {pipeline_mode = #tpu.pipeline_mode<synchronous>, transform_indices = @transform_7, window_bounds = array<i64: 8, 32>}, {pipeline_mode = #tpu.pipeline_mode<synchronous>, transform_indices = @transform_8, window_bounds = array<i64: 6, 32, 32>}, {pipeline_mode = #tpu.pipeline_mode<synchronous>, transform_indices = @transform_9, window_bounds = array<i64: 6, 1, 32>}, {pipeline_mode = #tpu.pipeline_mode<synchronous>, transform_indices = @transform_10, window_bounds = array<i64: 12, 1, 32>}, {pipeline_mode = #tpu.pipeline_mode<synchronous>, transform_indices = @transform_11, window_bounds = array<i64: 4, 32, 16>}, {pipeline_mode = #tpu.pipeline_mode<synchronous>, transform_indices = @transform_12, window_bounds = array<i64: 4, 1, 16>}, {pipeline_mode = #tpu.pipeline_mode<synchronous>, transform_indices = @transform_13, window_bounds = array<i64: 4, 32, 16>}, {pipeline_mode = #tpu.pipeline_mode<synchronous>, transform_indices = @transform_14, window_bounds = array<i64: 4, 1, 16>}, {pipeline_mode = #tpu.pipeline_mode<synchronous>, transform_indices = @transform_15, window_bounds = array<i64: 4, 32, 16>}, {pipeline_mode = #tpu.pipeline_mode<synchronous>, transform_indices = @transform_16, window_bounds = array<i64: 4, 1, 16>}, {pipeline_mode = #tpu.pipeline_mode<synchronous>, transform_indices = @transform_17, window_bounds = array<i64: 4, 16, 32>}, {pipeline_mode = #tpu.pipeline_mode<synchronous>, transform_indices = @transform_18, window_bounds = array<i64: 2, 1, 32>}, {pipeline_mode = #tpu.pipeline_mode<synchronous>, transform_indices = @transform_19, window_bounds = array<i64: 2, 32, 64>}, {pipeline_mode = #tpu.pipeline_mode<synchronous>, transform_indices = @transform_20, window_bounds = array<i64: 2, 1, 64>}, {pipeline_mode = #tpu.pipeline_mode<synchronous>, transform_indices = @transform_21, window_bounds = array<i64: 2, 64, 32>}, {pipeline_mode = #tpu.pipeline_mode<synchronous>, transform_indices = @transform_22, window_bounds = array<i64: 2, 1, 32>}, {pipeline_mode = #tpu.pipeline_mode<synchronous>, transform_indices = @transform_23, window_bounds = array<i64: 32, 32>}, {pipeline_mode = #tpu.pipeline_mode<synchronous>, transform_indices = @transform_24, window_bounds = array<i64: 1, 32>}, {pipeline_mode = #tpu.pipeline_mode<synchronous>, transform_indices = @transform_25, window_bounds = array<i64: 32, 32>}, {pipeline_mode = #tpu.pipeline_mode<synchronous>, transform_indices = @transform_26, window_bounds = array<i64: 1, 32>}, {pipeline_mode = #tpu.pipeline_mode<synchronous>, transform_indices = @transform_27, window_bounds = array<i64: 32, 128>}, {pipeline_mode = #tpu.pipeline_mode<synchronous>, transform_indices = @transform_28, window_bounds = array<i64: 1, 128>}, {pipeline_mode = #tpu.pipeline_mode<synchronous>, transform_indices = @transform_29, window_bounds = array<i64: 12, 128>}]} {
    %c0 = arith.constant 0 : index
    %c0_0 = arith.constant 0 : index
    %0 = vector.load %arg6[%c0, %c0_0] : memref<12x1xi32, #tpu.memory_space<vmem>>, vector<12x1xi32>
    %c0_1 = arith.constant 0 : index
    %c0_2 = arith.constant 0 : index
    %1 = vector.load %arg7[%c0_1, %c0_2] : memref<1x12xi32, #tpu.memory_space<vmem>>, vector<1x12xi32>
    %2 = vector.broadcast %0 : vector<12x1xi32> to vector<12x12xi32>
    %3 = vector.broadcast %1 : vector<1x12xi32> to vector<12x12xi32>
    %4 = arith.cmpi eq, %2, %3 : vector<12x12xi32>
    %c0_3 = arith.constant 0 : index
    %c0_4 = arith.constant 0 : index
    %5 = vector.load %arg4[%c0_3, %c0_4] : memref<12x1xi32, #tpu.memory_space<vmem>>, vector<12x1xi32>
    %c0_5 = arith.constant 0 : index
    %c0_6 = arith.constant 0 : index
    %6 = vector.load %arg5[%c0_5, %c0_6] : memref<1x12xi32, #tpu.memory_space<vmem>>, vector<1x12xi32>
    %7 = vector.broadcast %5 : vector<12x1xi32> to vector<12x12xi32>
    %8 = vector.broadcast %6 : vector<1x12xi32> to vector<12x12xi32>
    %9 = arith.cmpi sge, %7, %8 : vector<12x12xi32>
    %10 = arith.andi %4, %9 : vector<12x12xi1>
    %cst = arith.constant 0.000000e+00 : f32
    %cst_7 = arith.constant -1.000000e+30 : f32
    %11 = vector.broadcast %cst : f32 to vector<12x12xf32>
    %12 = vector.broadcast %cst_7 : f32 to vector<12x12xf32>
    %13 = arith.select %10, %11, %12 : vector<12x12xi1>, vector<12x12xf32>
    %c0_8 = arith.constant 0 : index
    %c0_9 = arith.constant 0 : index
    %14 = vector.load %arg1[%c0_8, %c0_9] : memref<12x32xf32, #tpu.memory_space<vmem>>, vector<12x32xf32>
    %c0_10 = arith.constant 0 : index
    %c0_11 = arith.constant 0 : index
    %15 = vector.load %arg2[%c0_10, %c0_11] : memref<12x8xf32, #tpu.memory_space<vmem>>, vector<12x8xf32>
    %16 = arith.truncf %15 : vector<12x8xf32> to vector<12x8xbf16>
    %c0_12 = arith.constant 0 : index
    %c0_13 = arith.constant 0 : index
    %17 = vector.load %arg8[%c0_12, %c0_13] : memref<8x32xbf16, #tpu.memory_space<vmem>>, vector<8x32xbf16>
    %cst_14 = arith.constant dense<0.000000e+00> : vector<12x32xf32>
    %18 = tpu.matmul %16, %17, %cst_14 {dimension_numbers = #tpu.dot_dimension_numbers<[1], [0], [0], [1], [0, 0, 1, 1], [], []>} : vector<12x8xbf16>, vector<8x32xbf16>, vector<12x32xf32> -> vector<12x32xf32>
    %19 = arith.addf %14, %18 : vector<12x32xf32>
    %c0_15 = arith.constant 0 : index
    %c0_16 = arith.constant 0 : index
    %20 = vector.load %arg3[%c0_15, %c0_16] : memref<12x32xf32, #tpu.memory_space<vmem>>, vector<12x32xf32>
    %21 = arith.negf %20 : vector<12x32xf32>
    %22 = math.exp %21 : vector<12x32xf32>
    %cst_17 = arith.constant 1.000000e+00 : f32
    %23 = vector.broadcast %cst_17 : f32 to vector<12x32xf32>
    %24 = arith.addf %23, %22 : vector<12x32xf32>
    %25 = arith.divf %23, %24 : vector<12x32xf32>
    %26 = arith.mulf %20, %25 : vector<12x32xf32>
    %27 = arith.truncf %26 : vector<12x32xf32> to vector<12x32xbf16>
    %c0_18 = arith.constant 0 : index
    %c0_19 = arith.constant 0 : index
    %c0_20 = arith.constant 0 : index
    %28 = vector.load %arg9[%c0_18, %c0_19, %c0_20] : memref<6x32x32xbf16, #tpu.memory_space<vmem>>, vector<1x32x32xbf16>
    %29 = vector.shape_cast %28 : vector<1x32x32xbf16> to vector<32x32xbf16>
    %cst_21 = arith.constant dense<0.000000e+00> : vector<12x32xf32>
    %30 = tpu.matmul %27, %29, %cst_21 {dimension_numbers = #tpu.dot_dimension_numbers<[1], [0], [0], [1], [0, 0, 1, 1], [], []>} : vector<12x32xbf16>, vector<32x32xbf16>, vector<12x32xf32> -> vector<12x32xf32>
    %c0_22 = arith.constant 0 : index
    %c0_23 = arith.constant 0 : index
    %c0_24 = arith.constant 0 : index
    %31 = vector.load %arg10[%c0_22, %c0_23, %c0_24] : memref<6x1x32xf32, #tpu.memory_space<vmem>>, vector<1x1x32xf32>
    %32 = vector.shape_cast %31 : vector<1x1x32xf32> to vector<1x32xf32>
    %33 = vector.broadcast %32 : vector<1x32xf32> to vector<12x32xf32>
    %34 = arith.addf %30, %33 : vector<12x32xf32>
    %c1 = arith.constant 1 : index
    %c0_25 = arith.constant 0 : index
    %c0_26 = arith.constant 0 : index
    %35 = vector.load %arg9[%c1, %c0_25, %c0_26] : memref<6x32x32xbf16, #tpu.memory_space<vmem>>, vector<1x32x32xbf16>
    %36 = vector.shape_cast %35 : vector<1x32x32xbf16> to vector<32x32xbf16>
    %cst_27 = arith.constant dense<0.000000e+00> : vector<12x32xf32>
    %37 = tpu.matmul %27, %36, %cst_27 {dimension_numbers = #tpu.dot_dimension_numbers<[1], [0], [0], [1], [0, 0, 1, 1], [], []>} : vector<12x32xbf16>, vector<32x32xbf16>, vector<12x32xf32> -> vector<12x32xf32>
    %c1_28 = arith.constant 1 : index
    %c0_29 = arith.constant 0 : index
    %c0_30 = arith.constant 0 : index
    %38 = vector.load %arg10[%c1_28, %c0_29, %c0_30] : memref<6x1x32xf32, #tpu.memory_space<vmem>>, vector<1x1x32xf32>
    %39 = vector.shape_cast %38 : vector<1x1x32xf32> to vector<1x32xf32>
    %40 = vector.broadcast %39 : vector<1x32xf32> to vector<12x32xf32>
    %41 = arith.addf %37, %40 : vector<12x32xf32>
    %c2 = arith.constant 2 : index
    %c0_31 = arith.constant 0 : index
    %c0_32 = arith.constant 0 : index
    %42 = vector.load %arg9[%c2, %c0_31, %c0_32] : memref<6x32x32xbf16, #tpu.memory_space<vmem>>, vector<1x32x32xbf16>
    %43 = vector.shape_cast %42 : vector<1x32x32xbf16> to vector<32x32xbf16>
    %cst_33 = arith.constant dense<0.000000e+00> : vector<12x32xf32>
    %44 = tpu.matmul %27, %43, %cst_33 {dimension_numbers = #tpu.dot_dimension_numbers<[1], [0], [0], [1], [0, 0, 1, 1], [], []>} : vector<12x32xbf16>, vector<32x32xbf16>, vector<12x32xf32> -> vector<12x32xf32>
    %c2_34 = arith.constant 2 : index
    %c0_35 = arith.constant 0 : index
    %c0_36 = arith.constant 0 : index
    %45 = vector.load %arg10[%c2_34, %c0_35, %c0_36] : memref<6x1x32xf32, #tpu.memory_space<vmem>>, vector<1x1x32xf32>
    %46 = vector.shape_cast %45 : vector<1x1x32xf32> to vector<1x32xf32>
    %47 = vector.broadcast %46 : vector<1x32xf32> to vector<12x32xf32>
    %48 = arith.addf %44, %47 : vector<12x32xf32>
    %c3 = arith.constant 3 : index
    %c0_37 = arith.constant 0 : index
    %c0_38 = arith.constant 0 : index
    %49 = vector.load %arg9[%c3, %c0_37, %c0_38] : memref<6x32x32xbf16, #tpu.memory_space<vmem>>, vector<1x32x32xbf16>
    %50 = vector.shape_cast %49 : vector<1x32x32xbf16> to vector<32x32xbf16>
    %cst_39 = arith.constant dense<0.000000e+00> : vector<12x32xf32>
    %51 = tpu.matmul %27, %50, %cst_39 {dimension_numbers = #tpu.dot_dimension_numbers<[1], [0], [0], [1], [0, 0, 1, 1], [], []>} : vector<12x32xbf16>, vector<32x32xbf16>, vector<12x32xf32> -> vector<12x32xf32>
    %c3_40 = arith.constant 3 : index
    %c0_41 = arith.constant 0 : index
    %c0_42 = arith.constant 0 : index
    %52 = vector.load %arg10[%c3_40, %c0_41, %c0_42] : memref<6x1x32xf32, #tpu.memory_space<vmem>>, vector<1x1x32xf32>
    %53 = vector.shape_cast %52 : vector<1x1x32xf32> to vector<1x32xf32>
    %54 = vector.broadcast %53 : vector<1x32xf32> to vector<12x32xf32>
    %55 = arith.addf %51, %54 : vector<12x32xf32>
    %c4 = arith.constant 4 : index
    %c0_43 = arith.constant 0 : index
    %c0_44 = arith.constant 0 : index
    %56 = vector.load %arg9[%c4, %c0_43, %c0_44] : memref<6x32x32xbf16, #tpu.memory_space<vmem>>, vector<1x32x32xbf16>
    %57 = vector.shape_cast %56 : vector<1x32x32xbf16> to vector<32x32xbf16>
    %cst_45 = arith.constant dense<0.000000e+00> : vector<12x32xf32>
    %58 = tpu.matmul %27, %57, %cst_45 {dimension_numbers = #tpu.dot_dimension_numbers<[1], [0], [0], [1], [0, 0, 1, 1], [], []>} : vector<12x32xbf16>, vector<32x32xbf16>, vector<12x32xf32> -> vector<12x32xf32>
    %c4_46 = arith.constant 4 : index
    %c0_47 = arith.constant 0 : index
    %c0_48 = arith.constant 0 : index
    %59 = vector.load %arg10[%c4_46, %c0_47, %c0_48] : memref<6x1x32xf32, #tpu.memory_space<vmem>>, vector<1x1x32xf32>
    %60 = vector.shape_cast %59 : vector<1x1x32xf32> to vector<1x32xf32>
    %61 = vector.broadcast %60 : vector<1x32xf32> to vector<12x32xf32>
    %62 = arith.addf %58, %61 : vector<12x32xf32>
    %c5 = arith.constant 5 : index
    %c0_49 = arith.constant 0 : index
    %c0_50 = arith.constant 0 : index
    %63 = vector.load %arg9[%c5, %c0_49, %c0_50] : memref<6x32x32xbf16, #tpu.memory_space<vmem>>, vector<1x32x32xbf16>
    %64 = vector.shape_cast %63 : vector<1x32x32xbf16> to vector<32x32xbf16>
    %cst_51 = arith.constant dense<0.000000e+00> : vector<12x32xf32>
    %65 = tpu.matmul %27, %64, %cst_51 {dimension_numbers = #tpu.dot_dimension_numbers<[1], [0], [0], [1], [0, 0, 1, 1], [], []>} : vector<12x32xbf16>, vector<32x32xbf16>, vector<12x32xf32> -> vector<12x32xf32>
    %c5_52 = arith.constant 5 : index
    %c0_53 = arith.constant 0 : index
    %c0_54 = arith.constant 0 : index
    %66 = vector.load %arg10[%c5_52, %c0_53, %c0_54] : memref<6x1x32xf32, #tpu.memory_space<vmem>>, vector<1x1x32xf32>
    %67 = vector.shape_cast %66 : vector<1x1x32xf32> to vector<1x32xf32>
    %68 = vector.broadcast %67 : vector<1x32xf32> to vector<12x32xf32>
    %69 = arith.addf %65, %68 : vector<12x32xf32>
    %c0_55 = arith.constant 0 : index
    %c0_56 = arith.constant 0 : index
    %c0_57 = arith.constant 0 : index
    %70 = vector.load %arg11[%c0_55, %c0_56, %c0_57] : memref<12x1x32xf32, #tpu.memory_space<vmem>>, vector<1x1x32xf32>
    %71 = vector.shape_cast %70 : vector<1x1x32xf32> to vector<1x32xf32>
    %72 = vector.broadcast %71 : vector<1x32xf32> to vector<12x32xf32>
    %73 = arith.addf %34, %72 : vector<12x32xf32>
    %c1_58 = arith.constant 1 : index
    %c0_59 = arith.constant 0 : index
    %c0_60 = arith.constant 0 : index
    %74 = vector.load %arg11[%c1_58, %c0_59, %c0_60] : memref<12x1x32xf32, #tpu.memory_space<vmem>>, vector<1x1x32xf32>
    %75 = vector.shape_cast %74 : vector<1x1x32xf32> to vector<1x32xf32>
    %76 = vector.broadcast %75 : vector<1x32xf32> to vector<12x32xf32>
    %77 = arith.addf %41, %76 : vector<12x32xf32>
    %c2_61 = arith.constant 2 : index
    %c0_62 = arith.constant 0 : index
    %c0_63 = arith.constant 0 : index
    %78 = vector.load %arg11[%c2_61, %c0_62, %c0_63] : memref<12x1x32xf32, #tpu.memory_space<vmem>>, vector<1x1x32xf32>
    %79 = vector.shape_cast %78 : vector<1x1x32xf32> to vector<1x32xf32>
    %80 = vector.broadcast %79 : vector<1x32xf32> to vector<12x32xf32>
    %81 = arith.addf %48, %80 : vector<12x32xf32>
    %c3_64 = arith.constant 3 : index
    %c0_65 = arith.constant 0 : index
    %c0_66 = arith.constant 0 : index
    %82 = vector.load %arg11[%c3_64, %c0_65, %c0_66] : memref<12x1x32xf32, #tpu.memory_space<vmem>>, vector<1x1x32xf32>
    %83 = vector.shape_cast %82 : vector<1x1x32xf32> to vector<1x32xf32>
    %84 = vector.broadcast %83 : vector<1x32xf32> to vector<12x32xf32>
    %85 = arith.addf %55, %84 : vector<12x32xf32>
    %c4_67 = arith.constant 4 : index
    %c0_68 = arith.constant 0 : index
    %c0_69 = arith.constant 0 : index
    %86 = vector.load %arg11[%c4_67, %c0_68, %c0_69] : memref<12x1x32xf32, #tpu.memory_space<vmem>>, vector<1x1x32xf32>
    %87 = vector.shape_cast %86 : vector<1x1x32xf32> to vector<1x32xf32>
    %88 = vector.broadcast %87 : vector<1x32xf32> to vector<12x32xf32>
    %89 = arith.addf %62, %88 : vector<12x32xf32>
    %c5_70 = arith.constant 5 : index
    %c0_71 = arith.constant 0 : index
    %c0_72 = arith.constant 0 : index
    %90 = vector.load %arg11[%c5_70, %c0_71, %c0_72] : memref<12x1x32xf32, #tpu.memory_space<vmem>>, vector<1x1x32xf32>
    %91 = vector.shape_cast %90 : vector<1x1x32xf32> to vector<1x32xf32>
    %92 = vector.broadcast %91 : vector<1x32xf32> to vector<12x32xf32>
    %93 = arith.addf %69, %92 : vector<12x32xf32>
    %cst_73 = arith.constant dense<0.000000e+00> : vector<12xf32>
    %94 = vector.multi_reduction <add>, %19, %cst_73 [1] : vector<12x32xf32> to vector<12xf32>
    %95 = vector.shape_cast %94 : vector<12xf32> to vector<12x1xf32>
    %cst_74 = arith.constant 3.200000e+01 : f32
    %96 = vector.broadcast %cst_74 : f32 to vector<12x1xf32>
    %97 = arith.divf %95, %96 : vector<12x1xf32>
    %98 = vector.broadcast %97 : vector<12x1xf32> to vector<12x32xf32>
    %99 = arith.subf %19, %98 : vector<12x32xf32>
    %100 = arith.mulf %99, %99 : vector<12x32xf32>
    %cst_75 = arith.constant dense<0.000000e+00> : vector<12xf32>
    %101 = vector.multi_reduction <add>, %100, %cst_75 [1] : vector<12x32xf32> to vector<12xf32>
    %102 = vector.shape_cast %101 : vector<12xf32> to vector<12x1xf32>
    %cst_76 = arith.constant 3.200000e+01 : f32
    %103 = vector.broadcast %cst_76 : f32 to vector<12x1xf32>
    %104 = arith.divf %102, %103 : vector<12x1xf32>
    %105 = vector.broadcast %97 : vector<12x1xf32> to vector<12x32xf32>
    %106 = arith.subf %19, %105 : vector<12x32xf32>
    %cst_77 = arith.constant 9.99999997E-7 : f32
    %107 = vector.broadcast %cst_77 : f32 to vector<12x1xf32>
    %108 = arith.addf %104, %107 : vector<12x1xf32>
    %109 = math.rsqrt %108 : vector<12x1xf32>
    %110 = vector.broadcast %109 : vector<12x1xf32> to vector<12x32xf32>
    %111 = arith.mulf %106, %110 : vector<12x32xf32>
    %cst_78 = arith.constant 1.000000e+00 : f32
    %112 = vector.broadcast %cst_78 : f32 to vector<12x32xf32>
    %113 = arith.addf %81, %112 : vector<12x32xf32>
    %114 = arith.mulf %111, %113 : vector<12x32xf32>
    %115 = arith.addf %114, %89 : vector<12x32xf32>
    %116 = arith.truncf %115 : vector<12x32xf32> to vector<12x32xbf16>
    %c0_79 = arith.constant 0 : index
    %c0_80 = arith.constant 0 : index
    %c0_81 = arith.constant 0 : index
    %117 = vector.load %arg19[%c0_79, %c0_80, %c0_81] : memref<2x1x32xf32, #tpu.memory_space<vmem>>, vector<1x1x32xf32>
    %118 = vector.shape_cast %117 : vector<1x1x32xf32> to vector<1x32xf32>
    %c0_82 = arith.constant 0 : index
    %c0_83 = arith.constant 0 : index
    %c0_84 = arith.constant 0 : index
    %119 = vector.load %arg12[%c0_82, %c0_83, %c0_84] : memref<4x32x16xbf16, #tpu.memory_space<vmem>>, vector<1x32x16xbf16>
    %120 = vector.shape_cast %119 : vector<1x32x16xbf16> to vector<32x16xbf16>
    %cst_85 = arith.constant dense<0.000000e+00> : vector<12x16xf32>
    %121 = tpu.matmul %116, %120, %cst_85 {dimension_numbers = #tpu.dot_dimension_numbers<[1], [0], [0], [1], [0, 0, 1, 1], [], []>} : vector<12x32xbf16>, vector<32x16xbf16>, vector<12x16xf32> -> vector<12x16xf32>
    %c0_86 = arith.constant 0 : index
    %c0_87 = arith.constant 0 : index
    %c0_88 = arith.constant 0 : index
    %122 = vector.load %arg13[%c0_86, %c0_87, %c0_88] : memref<4x1x16xf32, #tpu.memory_space<vmem>>, vector<1x1x16xf32>
    %123 = vector.shape_cast %122 : vector<1x1x16xf32> to vector<1x16xf32>
    %124 = vector.broadcast %123 : vector<1x16xf32> to vector<12x16xf32>
    %125 = arith.addf %121, %124 : vector<12x16xf32>
    %c0_89 = arith.constant 0 : index
    %c0_90 = arith.constant 0 : index
    %c0_91 = arith.constant 0 : index
    %126 = vector.load %arg14[%c0_89, %c0_90, %c0_91] : memref<4x32x16xbf16, #tpu.memory_space<vmem>>, vector<1x32x16xbf16>
    %127 = vector.shape_cast %126 : vector<1x32x16xbf16> to vector<32x16xbf16>
    %cst_92 = arith.constant dense<0.000000e+00> : vector<12x16xf32>
    %128 = tpu.matmul %116, %127, %cst_92 {dimension_numbers = #tpu.dot_dimension_numbers<[1], [0], [0], [1], [0, 0, 1, 1], [], []>} : vector<12x32xbf16>, vector<32x16xbf16>, vector<12x16xf32> -> vector<12x16xf32>
    %c0_93 = arith.constant 0 : index
    %c0_94 = arith.constant 0 : index
    %c0_95 = arith.constant 0 : index
    %129 = vector.load %arg15[%c0_93, %c0_94, %c0_95] : memref<4x1x16xf32, #tpu.memory_space<vmem>>, vector<1x1x16xf32>
    %130 = vector.shape_cast %129 : vector<1x1x16xf32> to vector<1x16xf32>
    %131 = vector.broadcast %130 : vector<1x16xf32> to vector<12x16xf32>
    %132 = arith.addf %128, %131 : vector<12x16xf32>
    %c0_96 = arith.constant 0 : index
    %c0_97 = arith.constant 0 : index
    %c0_98 = arith.constant 0 : index
    %133 = vector.load %arg16[%c0_96, %c0_97, %c0_98] : memref<4x32x16xbf16, #tpu.memory_space<vmem>>, vector<1x32x16xbf16>
    %134 = vector.shape_cast %133 : vector<1x32x16xbf16> to vector<32x16xbf16>
    %cst_99 = arith.constant dense<0.000000e+00> : vector<12x16xf32>
    %135 = tpu.matmul %116, %134, %cst_99 {dimension_numbers = #tpu.dot_dimension_numbers<[1], [0], [0], [1], [0, 0, 1, 1], [], []>} : vector<12x32xbf16>, vector<32x16xbf16>, vector<12x16xf32> -> vector<12x16xf32>
    %c0_100 = arith.constant 0 : index
    %c0_101 = arith.constant 0 : index
    %c0_102 = arith.constant 0 : index
    %136 = vector.load %arg17[%c0_100, %c0_101, %c0_102] : memref<4x1x16xf32, #tpu.memory_space<vmem>>, vector<1x1x16xf32>
    %137 = vector.shape_cast %136 : vector<1x1x16xf32> to vector<1x16xf32>
    %138 = vector.broadcast %137 : vector<1x16xf32> to vector<12x16xf32>
    %139 = arith.addf %135, %138 : vector<12x16xf32>
    %140 = arith.truncf %125 : vector<12x16xf32> to vector<12x16xbf16>
    %141 = arith.truncf %132 : vector<12x16xf32> to vector<12x16xbf16>
    %cst_103 = arith.constant dense<0.000000e+00> : vector<12x12xf32>
    %142 = tpu.matmul %140, %141, %cst_103 {dimension_numbers = #tpu.dot_dimension_numbers<[1], [1], [0], [0], [0, 0, 1, 0], [], []>} : vector<12x16xbf16>, vector<12x16xbf16>, vector<12x12xf32> -> vector<12x12xf32>
    %cst_104 = arith.constant 2.500000e-01 : f32
    %143 = vector.broadcast %cst_104 : f32 to vector<12x12xf32>
    %144 = arith.mulf %142, %143 : vector<12x12xf32>
    %145 = arith.addf %144, %13 : vector<12x12xf32>
    %cst_105 = arith.constant dense<0xFF800000> : vector<12xf32>
    %146 = vector.multi_reduction <maximumf>, %145, %cst_105 [1] : vector<12x12xf32> to vector<12xf32>
    %147 = vector.shape_cast %146 : vector<12xf32> to vector<12x1xf32>
    %148 = vector.broadcast %147 : vector<12x1xf32> to vector<12x12xf32>
    %149 = arith.subf %145, %148 : vector<12x12xf32>
    %150 = math.exp %149 : vector<12x12xf32>
    %cst_106 = arith.constant dense<0.000000e+00> : vector<12xf32>
    %151 = vector.multi_reduction <add>, %150, %cst_106 [1] : vector<12x12xf32> to vector<12xf32>
    %152 = vector.shape_cast %151 : vector<12xf32> to vector<12x1xf32>
    %153 = tpu.reciprocal %152 {approx = true} : vector<12x1xf32> -> vector<12x1xf32>
    %154 = vector.broadcast %153 : vector<12x1xf32> to vector<12x12xf32>
    %155 = arith.mulf %150, %154 : vector<12x12xf32>
    %156 = arith.truncf %155 : vector<12x12xf32> to vector<12x12xbf16>
    %157 = arith.truncf %139 : vector<12x16xf32> to vector<12x16xbf16>
    %cst_107 = arith.constant dense<0.000000e+00> : vector<12x16xf32>
    %158 = tpu.matmul %156, %157, %cst_107 {dimension_numbers = #tpu.dot_dimension_numbers<[1], [0], [0], [1], [0, 0, 1, 1], [], []>} : vector<12x12xbf16>, vector<12x16xbf16>, vector<12x16xf32> -> vector<12x16xf32>
    %159 = arith.truncf %158 : vector<12x16xf32> to vector<12x16xbf16>
    %c0_108 = arith.constant 0 : index
    %c0_109 = arith.constant 0 : index
    %c0_110 = arith.constant 0 : index
    %160 = vector.load %arg18[%c0_108, %c0_109, %c0_110] : memref<4x16x32xbf16, #tpu.memory_space<vmem>>, vector<1x16x32xbf16>
    %161 = vector.shape_cast %160 : vector<1x16x32xbf16> to vector<16x32xbf16>
    %cst_111 = arith.constant dense<0.000000e+00> : vector<12x32xf32>
    %162 = tpu.matmul %159, %161, %cst_111 {dimension_numbers = #tpu.dot_dimension_numbers<[1], [0], [0], [1], [0, 0, 1, 1], [], []>} : vector<12x16xbf16>, vector<16x32xbf16>, vector<12x32xf32> -> vector<12x32xf32>
    %163 = vector.broadcast %118 : vector<1x32xf32> to vector<12x32xf32>
    %164 = arith.addf %163, %162 : vector<12x32xf32>
    %c1_112 = arith.constant 1 : index
    %c0_113 = arith.constant 0 : index
    %c0_114 = arith.constant 0 : index
    %165 = vector.load %arg12[%c1_112, %c0_113, %c0_114] : memref<4x32x16xbf16, #tpu.memory_space<vmem>>, vector<1x32x16xbf16>
    %166 = vector.shape_cast %165 : vector<1x32x16xbf16> to vector<32x16xbf16>
    %cst_115 = arith.constant dense<0.000000e+00> : vector<12x16xf32>
    %167 = tpu.matmul %116, %166, %cst_115 {dimension_numbers = #tpu.dot_dimension_numbers<[1], [0], [0], [1], [0, 0, 1, 1], [], []>} : vector<12x32xbf16>, vector<32x16xbf16>, vector<12x16xf32> -> vector<12x16xf32>
    %c1_116 = arith.constant 1 : index
    %c0_117 = arith.constant 0 : index
    %c0_118 = arith.constant 0 : index
    %168 = vector.load %arg13[%c1_116, %c0_117, %c0_118] : memref<4x1x16xf32, #tpu.memory_space<vmem>>, vector<1x1x16xf32>
    %169 = vector.shape_cast %168 : vector<1x1x16xf32> to vector<1x16xf32>
    %170 = vector.broadcast %169 : vector<1x16xf32> to vector<12x16xf32>
    %171 = arith.addf %167, %170 : vector<12x16xf32>
    %c1_119 = arith.constant 1 : index
    %c0_120 = arith.constant 0 : index
    %c0_121 = arith.constant 0 : index
    %172 = vector.load %arg14[%c1_119, %c0_120, %c0_121] : memref<4x32x16xbf16, #tpu.memory_space<vmem>>, vector<1x32x16xbf16>
    %173 = vector.shape_cast %172 : vector<1x32x16xbf16> to vector<32x16xbf16>
    %cst_122 = arith.constant dense<0.000000e+00> : vector<12x16xf32>
    %174 = tpu.matmul %116, %173, %cst_122 {dimension_numbers = #tpu.dot_dimension_numbers<[1], [0], [0], [1], [0, 0, 1, 1], [], []>} : vector<12x32xbf16>, vector<32x16xbf16>, vector<12x16xf32> -> vector<12x16xf32>
    %c1_123 = arith.constant 1 : index
    %c0_124 = arith.constant 0 : index
    %c0_125 = arith.constant 0 : index
    %175 = vector.load %arg15[%c1_123, %c0_124, %c0_125] : memref<4x1x16xf32, #tpu.memory_space<vmem>>, vector<1x1x16xf32>
    %176 = vector.shape_cast %175 : vector<1x1x16xf32> to vector<1x16xf32>
    %177 = vector.broadcast %176 : vector<1x16xf32> to vector<12x16xf32>
    %178 = arith.addf %174, %177 : vector<12x16xf32>
    %c1_126 = arith.constant 1 : index
    %c0_127 = arith.constant 0 : index
    %c0_128 = arith.constant 0 : index
    %179 = vector.load %arg16[%c1_126, %c0_127, %c0_128] : memref<4x32x16xbf16, #tpu.memory_space<vmem>>, vector<1x32x16xbf16>
    %180 = vector.shape_cast %179 : vector<1x32x16xbf16> to vector<32x16xbf16>
    %cst_129 = arith.constant dense<0.000000e+00> : vector<12x16xf32>
    %181 = tpu.matmul %116, %180, %cst_129 {dimension_numbers = #tpu.dot_dimension_numbers<[1], [0], [0], [1], [0, 0, 1, 1], [], []>} : vector<12x32xbf16>, vector<32x16xbf16>, vector<12x16xf32> -> vector<12x16xf32>
    %c1_130 = arith.constant 1 : index
    %c0_131 = arith.constant 0 : index
    %c0_132 = arith.constant 0 : index
    %182 = vector.load %arg17[%c1_130, %c0_131, %c0_132] : memref<4x1x16xf32, #tpu.memory_space<vmem>>, vector<1x1x16xf32>
    %183 = vector.shape_cast %182 : vector<1x1x16xf32> to vector<1x16xf32>
    %184 = vector.broadcast %183 : vector<1x16xf32> to vector<12x16xf32>
    %185 = arith.addf %181, %184 : vector<12x16xf32>
    %186 = arith.truncf %171 : vector<12x16xf32> to vector<12x16xbf16>
    %187 = arith.truncf %178 : vector<12x16xf32> to vector<12x16xbf16>
    %cst_133 = arith.constant dense<0.000000e+00> : vector<12x12xf32>
    %188 = tpu.matmul %186, %187, %cst_133 {dimension_numbers = #tpu.dot_dimension_numbers<[1], [1], [0], [0], [0, 0, 1, 0], [], []>} : vector<12x16xbf16>, vector<12x16xbf16>, vector<12x12xf32> -> vector<12x12xf32>
    %cst_134 = arith.constant 2.500000e-01 : f32
    %189 = vector.broadcast %cst_134 : f32 to vector<12x12xf32>
    %190 = arith.mulf %188, %189 : vector<12x12xf32>
    %191 = arith.addf %190, %13 : vector<12x12xf32>
    %cst_135 = arith.constant dense<0xFF800000> : vector<12xf32>
    %192 = vector.multi_reduction <maximumf>, %191, %cst_135 [1] : vector<12x12xf32> to vector<12xf32>
    %193 = vector.shape_cast %192 : vector<12xf32> to vector<12x1xf32>
    %194 = vector.broadcast %193 : vector<12x1xf32> to vector<12x12xf32>
    %195 = arith.subf %191, %194 : vector<12x12xf32>
    %196 = math.exp %195 : vector<12x12xf32>
    %cst_136 = arith.constant dense<0.000000e+00> : vector<12xf32>
    %197 = vector.multi_reduction <add>, %196, %cst_136 [1] : vector<12x12xf32> to vector<12xf32>
    %198 = vector.shape_cast %197 : vector<12xf32> to vector<12x1xf32>
    %199 = tpu.reciprocal %198 {approx = true} : vector<12x1xf32> -> vector<12x1xf32>
    %200 = vector.broadcast %199 : vector<12x1xf32> to vector<12x12xf32>
    %201 = arith.mulf %196, %200 : vector<12x12xf32>
    %202 = arith.truncf %201 : vector<12x12xf32> to vector<12x12xbf16>
    %203 = arith.truncf %185 : vector<12x16xf32> to vector<12x16xbf16>
    %cst_137 = arith.constant dense<0.000000e+00> : vector<12x16xf32>
    %204 = tpu.matmul %202, %203, %cst_137 {dimension_numbers = #tpu.dot_dimension_numbers<[1], [0], [0], [1], [0, 0, 1, 1], [], []>} : vector<12x12xbf16>, vector<12x16xbf16>, vector<12x16xf32> -> vector<12x16xf32>
    %205 = arith.truncf %204 : vector<12x16xf32> to vector<12x16xbf16>
    %c1_138 = arith.constant 1 : index
    %c0_139 = arith.constant 0 : index
    %c0_140 = arith.constant 0 : index
    %206 = vector.load %arg18[%c1_138, %c0_139, %c0_140] : memref<4x16x32xbf16, #tpu.memory_space<vmem>>, vector<1x16x32xbf16>
    %207 = vector.shape_cast %206 : vector<1x16x32xbf16> to vector<16x32xbf16>
    %cst_141 = arith.constant dense<0.000000e+00> : vector<12x32xf32>
    %208 = tpu.matmul %205, %207, %cst_141 {dimension_numbers = #tpu.dot_dimension_numbers<[1], [0], [0], [1], [0, 0, 1, 1], [], []>} : vector<12x16xbf16>, vector<16x32xbf16>, vector<12x32xf32> -> vector<12x32xf32>
    %209 = arith.addf %164, %208 : vector<12x32xf32>
    %210 = arith.mulf %209, %73 : vector<12x32xf32>
    %211 = arith.addf %19, %210 : vector<12x32xf32>
    %cst_142 = arith.constant dense<0.000000e+00> : vector<12xf32>
    %212 = vector.multi_reduction <add>, %211, %cst_142 [1] : vector<12x32xf32> to vector<12xf32>
    %213 = vector.shape_cast %212 : vector<12xf32> to vector<12x1xf32>
    %cst_143 = arith.constant 3.200000e+01 : f32
    %214 = vector.broadcast %cst_143 : f32 to vector<12x1xf32>
    %215 = arith.divf %213, %214 : vector<12x1xf32>
    %216 = vector.broadcast %215 : vector<12x1xf32> to vector<12x32xf32>
    %217 = arith.subf %211, %216 : vector<12x32xf32>
    %218 = arith.mulf %217, %217 : vector<12x32xf32>
    %cst_144 = arith.constant dense<0.000000e+00> : vector<12xf32>
    %219 = vector.multi_reduction <add>, %218, %cst_144 [1] : vector<12x32xf32> to vector<12xf32>
    %220 = vector.shape_cast %219 : vector<12xf32> to vector<12x1xf32>
    %cst_145 = arith.constant 3.200000e+01 : f32
    %221 = vector.broadcast %cst_145 : f32 to vector<12x1xf32>
    %222 = arith.divf %220, %221 : vector<12x1xf32>
    %223 = vector.broadcast %215 : vector<12x1xf32> to vector<12x32xf32>
    %224 = arith.subf %211, %223 : vector<12x32xf32>
    %cst_146 = arith.constant 9.99999997E-7 : f32
    %225 = vector.broadcast %cst_146 : f32 to vector<12x1xf32>
    %226 = arith.addf %222, %225 : vector<12x1xf32>
    %227 = math.rsqrt %226 : vector<12x1xf32>
    %228 = vector.broadcast %227 : vector<12x1xf32> to vector<12x32xf32>
    %229 = arith.mulf %224, %228 : vector<12x32xf32>
    %cst_147 = arith.constant 1.000000e+00 : f32
    %230 = vector.broadcast %cst_147 : f32 to vector<12x32xf32>
    %231 = arith.addf %85, %230 : vector<12x32xf32>
    %232 = arith.mulf %229, %231 : vector<12x32xf32>
    %233 = arith.addf %232, %93 : vector<12x32xf32>
    %234 = arith.truncf %233 : vector<12x32xf32> to vector<12x32xbf16>
    %c0_148 = arith.constant 0 : index
    %c0_149 = arith.constant 0 : index
    %c0_150 = arith.constant 0 : index
    %235 = vector.load %arg20[%c0_148, %c0_149, %c0_150] : memref<2x32x64xbf16, #tpu.memory_space<vmem>>, vector<1x32x64xbf16>
    %236 = vector.shape_cast %235 : vector<1x32x64xbf16> to vector<32x64xbf16>
    %cst_151 = arith.constant dense<0.000000e+00> : vector<12x64xf32>
    %237 = tpu.matmul %234, %236, %cst_151 {dimension_numbers = #tpu.dot_dimension_numbers<[1], [0], [0], [1], [0, 0, 1, 1], [], []>} : vector<12x32xbf16>, vector<32x64xbf16>, vector<12x64xf32> -> vector<12x64xf32>
    %c0_152 = arith.constant 0 : index
    %c0_153 = arith.constant 0 : index
    %c0_154 = arith.constant 0 : index
    %238 = vector.load %arg21[%c0_152, %c0_153, %c0_154] : memref<2x1x64xf32, #tpu.memory_space<vmem>>, vector<1x1x64xf32>
    %239 = vector.shape_cast %238 : vector<1x1x64xf32> to vector<1x64xf32>
    %240 = vector.broadcast %239 : vector<1x64xf32> to vector<12x64xf32>
    %241 = arith.addf %237, %240 : vector<12x64xf32>
    %242 = arith.mulf %241, %241 : vector<12x64xf32>
    %243 = arith.mulf %241, %242 : vector<12x64xf32>
    %cst_155 = arith.constant 4.471500e-02 : f32
    %244 = vector.broadcast %cst_155 : f32 to vector<12x64xf32>
    %245 = arith.mulf %244, %243 : vector<12x64xf32>
    %246 = arith.addf %241, %245 : vector<12x64xf32>
    %cst_156 = arith.constant 0.797884583 : f32
    %247 = vector.broadcast %cst_156 : f32 to vector<12x64xf32>
    %248 = arith.mulf %247, %246 : vector<12x64xf32>
    %249 = math.tanh %248 : vector<12x64xf32>
    %cst_157 = arith.constant 1.000000e+00 : f32
    %250 = vector.broadcast %cst_157 : f32 to vector<12x64xf32>
    %251 = arith.addf %250, %249 : vector<12x64xf32>
    %cst_158 = arith.constant 5.000000e-01 : f32
    %252 = vector.broadcast %cst_158 : f32 to vector<12x64xf32>
    %253 = arith.mulf %252, %251 : vector<12x64xf32>
    %254 = arith.mulf %241, %253 : vector<12x64xf32>
    %255 = arith.truncf %254 : vector<12x64xf32> to vector<12x64xbf16>
    %c0_159 = arith.constant 0 : index
    %c0_160 = arith.constant 0 : index
    %c0_161 = arith.constant 0 : index
    %256 = vector.load %arg22[%c0_159, %c0_160, %c0_161] : memref<2x64x32xbf16, #tpu.memory_space<vmem>>, vector<1x64x32xbf16>
    %257 = vector.shape_cast %256 : vector<1x64x32xbf16> to vector<64x32xbf16>
    %cst_162 = arith.constant dense<0.000000e+00> : vector<12x32xf32>
    %258 = tpu.matmul %255, %257, %cst_162 {dimension_numbers = #tpu.dot_dimension_numbers<[1], [0], [0], [1], [0, 0, 1, 1], [], []>} : vector<12x64xbf16>, vector<64x32xbf16>, vector<12x32xf32> -> vector<12x32xf32>
    %c0_163 = arith.constant 0 : index
    %c0_164 = arith.constant 0 : index
    %c0_165 = arith.constant 0 : index
    %259 = vector.load %arg23[%c0_163, %c0_164, %c0_165] : memref<2x1x32xf32, #tpu.memory_space<vmem>>, vector<1x1x32xf32>
    %260 = vector.shape_cast %259 : vector<1x1x32xf32> to vector<1x32xf32>
    %261 = vector.broadcast %260 : vector<1x32xf32> to vector<12x32xf32>
    %262 = arith.addf %258, %261 : vector<12x32xf32>
    %263 = arith.mulf %262, %77 : vector<12x32xf32>
    %264 = arith.addf %211, %263 : vector<12x32xf32>
    %c6 = arith.constant 6 : index
    %c0_166 = arith.constant 0 : index
    %c0_167 = arith.constant 0 : index
    %265 = vector.load %arg11[%c6, %c0_166, %c0_167] : memref<12x1x32xf32, #tpu.memory_space<vmem>>, vector<1x1x32xf32>
    %266 = vector.shape_cast %265 : vector<1x1x32xf32> to vector<1x32xf32>
    %267 = vector.broadcast %266 : vector<1x32xf32> to vector<12x32xf32>
    %268 = arith.addf %34, %267 : vector<12x32xf32>
    %c7 = arith.constant 7 : index
    %c0_168 = arith.constant 0 : index
    %c0_169 = arith.constant 0 : index
    %269 = vector.load %arg11[%c7, %c0_168, %c0_169] : memref<12x1x32xf32, #tpu.memory_space<vmem>>, vector<1x1x32xf32>
    %270 = vector.shape_cast %269 : vector<1x1x32xf32> to vector<1x32xf32>
    %271 = vector.broadcast %270 : vector<1x32xf32> to vector<12x32xf32>
    %272 = arith.addf %41, %271 : vector<12x32xf32>
    %c8 = arith.constant 8 : index
    %c0_170 = arith.constant 0 : index
    %c0_171 = arith.constant 0 : index
    %273 = vector.load %arg11[%c8, %c0_170, %c0_171] : memref<12x1x32xf32, #tpu.memory_space<vmem>>, vector<1x1x32xf32>
    %274 = vector.shape_cast %273 : vector<1x1x32xf32> to vector<1x32xf32>
    %275 = vector.broadcast %274 : vector<1x32xf32> to vector<12x32xf32>
    %276 = arith.addf %48, %275 : vector<12x32xf32>
    %c9 = arith.constant 9 : index
    %c0_172 = arith.constant 0 : index
    %c0_173 = arith.constant 0 : index
    %277 = vector.load %arg11[%c9, %c0_172, %c0_173] : memref<12x1x32xf32, #tpu.memory_space<vmem>>, vector<1x1x32xf32>
    %278 = vector.shape_cast %277 : vector<1x1x32xf32> to vector<1x32xf32>
    %279 = vector.broadcast %278 : vector<1x32xf32> to vector<12x32xf32>
    %280 = arith.addf %55, %279 : vector<12x32xf32>
    %c10 = arith.constant 10 : index
    %c0_174 = arith.constant 0 : index
    %c0_175 = arith.constant 0 : index
    %281 = vector.load %arg11[%c10, %c0_174, %c0_175] : memref<12x1x32xf32, #tpu.memory_space<vmem>>, vector<1x1x32xf32>
    %282 = vector.shape_cast %281 : vector<1x1x32xf32> to vector<1x32xf32>
    %283 = vector.broadcast %282 : vector<1x32xf32> to vector<12x32xf32>
    %284 = arith.addf %62, %283 : vector<12x32xf32>
    %c11 = arith.constant 11 : index
    %c0_176 = arith.constant 0 : index
    %c0_177 = arith.constant 0 : index
    %285 = vector.load %arg11[%c11, %c0_176, %c0_177] : memref<12x1x32xf32, #tpu.memory_space<vmem>>, vector<1x1x32xf32>
    %286 = vector.shape_cast %285 : vector<1x1x32xf32> to vector<1x32xf32>
    %287 = vector.broadcast %286 : vector<1x32xf32> to vector<12x32xf32>
    %288 = arith.addf %69, %287 : vector<12x32xf32>
    %cst_178 = arith.constant dense<0.000000e+00> : vector<12xf32>
    %289 = vector.multi_reduction <add>, %264, %cst_178 [1] : vector<12x32xf32> to vector<12xf32>
    %290 = vector.shape_cast %289 : vector<12xf32> to vector<12x1xf32>
    %cst_179 = arith.constant 3.200000e+01 : f32
    %291 = vector.broadcast %cst_179 : f32 to vector<12x1xf32>
    %292 = arith.divf %290, %291 : vector<12x1xf32>
    %293 = vector.broadcast %292 : vector<12x1xf32> to vector<12x32xf32>
    %294 = arith.subf %264, %293 : vector<12x32xf32>
    %295 = arith.mulf %294, %294 : vector<12x32xf32>
    %cst_180 = arith.constant dense<0.000000e+00> : vector<12xf32>
    %296 = vector.multi_reduction <add>, %295, %cst_180 [1] : vector<12x32xf32> to vector<12xf32>
    %297 = vector.shape_cast %296 : vector<12xf32> to vector<12x1xf32>
    %cst_181 = arith.constant 3.200000e+01 : f32
    %298 = vector.broadcast %cst_181 : f32 to vector<12x1xf32>
    %299 = arith.divf %297, %298 : vector<12x1xf32>
    %300 = vector.broadcast %292 : vector<12x1xf32> to vector<12x32xf32>
    %301 = arith.subf %264, %300 : vector<12x32xf32>
    %cst_182 = arith.constant 9.99999997E-7 : f32
    %302 = vector.broadcast %cst_182 : f32 to vector<12x1xf32>
    %303 = arith.addf %299, %302 : vector<12x1xf32>
    %304 = math.rsqrt %303 : vector<12x1xf32>
    %305 = vector.broadcast %304 : vector<12x1xf32> to vector<12x32xf32>
    %306 = arith.mulf %301, %305 : vector<12x32xf32>
    %cst_183 = arith.constant 1.000000e+00 : f32
    %307 = vector.broadcast %cst_183 : f32 to vector<12x32xf32>
    %308 = arith.addf %276, %307 : vector<12x32xf32>
    %309 = arith.mulf %306, %308 : vector<12x32xf32>
    %310 = arith.addf %309, %284 : vector<12x32xf32>
    %311 = arith.truncf %310 : vector<12x32xf32> to vector<12x32xbf16>
    %c1_184 = arith.constant 1 : index
    %c0_185 = arith.constant 0 : index
    %c0_186 = arith.constant 0 : index
    %312 = vector.load %arg19[%c1_184, %c0_185, %c0_186] : memref<2x1x32xf32, #tpu.memory_space<vmem>>, vector<1x1x32xf32>
    %313 = vector.shape_cast %312 : vector<1x1x32xf32> to vector<1x32xf32>
    %c2_187 = arith.constant 2 : index
    %c0_188 = arith.constant 0 : index
    %c0_189 = arith.constant 0 : index
    %314 = vector.load %arg12[%c2_187, %c0_188, %c0_189] : memref<4x32x16xbf16, #tpu.memory_space<vmem>>, vector<1x32x16xbf16>
    %315 = vector.shape_cast %314 : vector<1x32x16xbf16> to vector<32x16xbf16>
    %cst_190 = arith.constant dense<0.000000e+00> : vector<12x16xf32>
    %316 = tpu.matmul %311, %315, %cst_190 {dimension_numbers = #tpu.dot_dimension_numbers<[1], [0], [0], [1], [0, 0, 1, 1], [], []>} : vector<12x32xbf16>, vector<32x16xbf16>, vector<12x16xf32> -> vector<12x16xf32>
    %c2_191 = arith.constant 2 : index
    %c0_192 = arith.constant 0 : index
    %c0_193 = arith.constant 0 : index
    %317 = vector.load %arg13[%c2_191, %c0_192, %c0_193] : memref<4x1x16xf32, #tpu.memory_space<vmem>>, vector<1x1x16xf32>
    %318 = vector.shape_cast %317 : vector<1x1x16xf32> to vector<1x16xf32>
    %319 = vector.broadcast %318 : vector<1x16xf32> to vector<12x16xf32>
    %320 = arith.addf %316, %319 : vector<12x16xf32>
    %c2_194 = arith.constant 2 : index
    %c0_195 = arith.constant 0 : index
    %c0_196 = arith.constant 0 : index
    %321 = vector.load %arg14[%c2_194, %c0_195, %c0_196] : memref<4x32x16xbf16, #tpu.memory_space<vmem>>, vector<1x32x16xbf16>
    %322 = vector.shape_cast %321 : vector<1x32x16xbf16> to vector<32x16xbf16>
    %cst_197 = arith.constant dense<0.000000e+00> : vector<12x16xf32>
    %323 = tpu.matmul %311, %322, %cst_197 {dimension_numbers = #tpu.dot_dimension_numbers<[1], [0], [0], [1], [0, 0, 1, 1], [], []>} : vector<12x32xbf16>, vector<32x16xbf16>, vector<12x16xf32> -> vector<12x16xf32>
    %c2_198 = arith.constant 2 : index
    %c0_199 = arith.constant 0 : index
    %c0_200 = arith.constant 0 : index
    %324 = vector.load %arg15[%c2_198, %c0_199, %c0_200] : memref<4x1x16xf32, #tpu.memory_space<vmem>>, vector<1x1x16xf32>
    %325 = vector.shape_cast %324 : vector<1x1x16xf32> to vector<1x16xf32>
    %326 = vector.broadcast %325 : vector<1x16xf32> to vector<12x16xf32>
    %327 = arith.addf %323, %326 : vector<12x16xf32>
    %c2_201 = arith.constant 2 : index
    %c0_202 = arith.constant 0 : index
    %c0_203 = arith.constant 0 : index
    %328 = vector.load %arg16[%c2_201, %c0_202, %c0_203] : memref<4x32x16xbf16, #tpu.memory_space<vmem>>, vector<1x32x16xbf16>
    %329 = vector.shape_cast %328 : vector<1x32x16xbf16> to vector<32x16xbf16>
    %cst_204 = arith.constant dense<0.000000e+00> : vector<12x16xf32>
    %330 = tpu.matmul %311, %329, %cst_204 {dimension_numbers = #tpu.dot_dimension_numbers<[1], [0], [0], [1], [0, 0, 1, 1], [], []>} : vector<12x32xbf16>, vector<32x16xbf16>, vector<12x16xf32> -> vector<12x16xf32>
    %c2_205 = arith.constant 2 : index
    %c0_206 = arith.constant 0 : index
    %c0_207 = arith.constant 0 : index
    %331 = vector.load %arg17[%c2_205, %c0_206, %c0_207] : memref<4x1x16xf32, #tpu.memory_space<vmem>>, vector<1x1x16xf32>
    %332 = vector.shape_cast %331 : vector<1x1x16xf32> to vector<1x16xf32>
    %333 = vector.broadcast %332 : vector<1x16xf32> to vector<12x16xf32>
    %334 = arith.addf %330, %333 : vector<12x16xf32>
    %335 = arith.truncf %320 : vector<12x16xf32> to vector<12x16xbf16>
    %336 = arith.truncf %327 : vector<12x16xf32> to vector<12x16xbf16>
    %cst_208 = arith.constant dense<0.000000e+00> : vector<12x12xf32>
    %337 = tpu.matmul %335, %336, %cst_208 {dimension_numbers = #tpu.dot_dimension_numbers<[1], [1], [0], [0], [0, 0, 1, 0], [], []>} : vector<12x16xbf16>, vector<12x16xbf16>, vector<12x12xf32> -> vector<12x12xf32>
    %cst_209 = arith.constant 2.500000e-01 : f32
    %338 = vector.broadcast %cst_209 : f32 to vector<12x12xf32>
    %339 = arith.mulf %337, %338 : vector<12x12xf32>
    %340 = arith.addf %339, %13 : vector<12x12xf32>
    %cst_210 = arith.constant dense<0xFF800000> : vector<12xf32>
    %341 = vector.multi_reduction <maximumf>, %340, %cst_210 [1] : vector<12x12xf32> to vector<12xf32>
    %342 = vector.shape_cast %341 : vector<12xf32> to vector<12x1xf32>
    %343 = vector.broadcast %342 : vector<12x1xf32> to vector<12x12xf32>
    %344 = arith.subf %340, %343 : vector<12x12xf32>
    %345 = math.exp %344 : vector<12x12xf32>
    %cst_211 = arith.constant dense<0.000000e+00> : vector<12xf32>
    %346 = vector.multi_reduction <add>, %345, %cst_211 [1] : vector<12x12xf32> to vector<12xf32>
    %347 = vector.shape_cast %346 : vector<12xf32> to vector<12x1xf32>
    %348 = tpu.reciprocal %347 {approx = true} : vector<12x1xf32> -> vector<12x1xf32>
    %349 = vector.broadcast %348 : vector<12x1xf32> to vector<12x12xf32>
    %350 = arith.mulf %345, %349 : vector<12x12xf32>
    %351 = arith.truncf %350 : vector<12x12xf32> to vector<12x12xbf16>
    %352 = arith.truncf %334 : vector<12x16xf32> to vector<12x16xbf16>
    %cst_212 = arith.constant dense<0.000000e+00> : vector<12x16xf32>
    %353 = tpu.matmul %351, %352, %cst_212 {dimension_numbers = #tpu.dot_dimension_numbers<[1], [0], [0], [1], [0, 0, 1, 1], [], []>} : vector<12x12xbf16>, vector<12x16xbf16>, vector<12x16xf32> -> vector<12x16xf32>
    %354 = arith.truncf %353 : vector<12x16xf32> to vector<12x16xbf16>
    %c2_213 = arith.constant 2 : index
    %c0_214 = arith.constant 0 : index
    %c0_215 = arith.constant 0 : index
    %355 = vector.load %arg18[%c2_213, %c0_214, %c0_215] : memref<4x16x32xbf16, #tpu.memory_space<vmem>>, vector<1x16x32xbf16>
    %356 = vector.shape_cast %355 : vector<1x16x32xbf16> to vector<16x32xbf16>
    %cst_216 = arith.constant dense<0.000000e+00> : vector<12x32xf32>
    %357 = tpu.matmul %354, %356, %cst_216 {dimension_numbers = #tpu.dot_dimension_numbers<[1], [0], [0], [1], [0, 0, 1, 1], [], []>} : vector<12x16xbf16>, vector<16x32xbf16>, vector<12x32xf32> -> vector<12x32xf32>
    %358 = vector.broadcast %313 : vector<1x32xf32> to vector<12x32xf32>
    %359 = arith.addf %358, %357 : vector<12x32xf32>
    %c3_217 = arith.constant 3 : index
    %c0_218 = arith.constant 0 : index
    %c0_219 = arith.constant 0 : index
    %360 = vector.load %arg12[%c3_217, %c0_218, %c0_219] : memref<4x32x16xbf16, #tpu.memory_space<vmem>>, vector<1x32x16xbf16>
    %361 = vector.shape_cast %360 : vector<1x32x16xbf16> to vector<32x16xbf16>
    %cst_220 = arith.constant dense<0.000000e+00> : vector<12x16xf32>
    %362 = tpu.matmul %311, %361, %cst_220 {dimension_numbers = #tpu.dot_dimension_numbers<[1], [0], [0], [1], [0, 0, 1, 1], [], []>} : vector<12x32xbf16>, vector<32x16xbf16>, vector<12x16xf32> -> vector<12x16xf32>
    %c3_221 = arith.constant 3 : index
    %c0_222 = arith.constant 0 : index
    %c0_223 = arith.constant 0 : index
    %363 = vector.load %arg13[%c3_221, %c0_222, %c0_223] : memref<4x1x16xf32, #tpu.memory_space<vmem>>, vector<1x1x16xf32>
    %364 = vector.shape_cast %363 : vector<1x1x16xf32> to vector<1x16xf32>
    %365 = vector.broadcast %364 : vector<1x16xf32> to vector<12x16xf32>
    %366 = arith.addf %362, %365 : vector<12x16xf32>
    %c3_224 = arith.constant 3 : index
    %c0_225 = arith.constant 0 : index
    %c0_226 = arith.constant 0 : index
    %367 = vector.load %arg14[%c3_224, %c0_225, %c0_226] : memref<4x32x16xbf16, #tpu.memory_space<vmem>>, vector<1x32x16xbf16>
    %368 = vector.shape_cast %367 : vector<1x32x16xbf16> to vector<32x16xbf16>
    %cst_227 = arith.constant dense<0.000000e+00> : vector<12x16xf32>
    %369 = tpu.matmul %311, %368, %cst_227 {dimension_numbers = #tpu.dot_dimension_numbers<[1], [0], [0], [1], [0, 0, 1, 1], [], []>} : vector<12x32xbf16>, vector<32x16xbf16>, vector<12x16xf32> -> vector<12x16xf32>
    %c3_228 = arith.constant 3 : index
    %c0_229 = arith.constant 0 : index
    %c0_230 = arith.constant 0 : index
    %370 = vector.load %arg15[%c3_228, %c0_229, %c0_230] : memref<4x1x16xf32, #tpu.memory_space<vmem>>, vector<1x1x16xf32>
    %371 = vector.shape_cast %370 : vector<1x1x16xf32> to vector<1x16xf32>
    %372 = vector.broadcast %371 : vector<1x16xf32> to vector<12x16xf32>
    %373 = arith.addf %369, %372 : vector<12x16xf32>
    %c3_231 = arith.constant 3 : index
    %c0_232 = arith.constant 0 : index
    %c0_233 = arith.constant 0 : index
    %374 = vector.load %arg16[%c3_231, %c0_232, %c0_233] : memref<4x32x16xbf16, #tpu.memory_space<vmem>>, vector<1x32x16xbf16>
    %375 = vector.shape_cast %374 : vector<1x32x16xbf16> to vector<32x16xbf16>
    %cst_234 = arith.constant dense<0.000000e+00> : vector<12x16xf32>
    %376 = tpu.matmul %311, %375, %cst_234 {dimension_numbers = #tpu.dot_dimension_numbers<[1], [0], [0], [1], [0, 0, 1, 1], [], []>} : vector<12x32xbf16>, vector<32x16xbf16>, vector<12x16xf32> -> vector<12x16xf32>
    %c3_235 = arith.constant 3 : index
    %c0_236 = arith.constant 0 : index
    %c0_237 = arith.constant 0 : index
    %377 = vector.load %arg17[%c3_235, %c0_236, %c0_237] : memref<4x1x16xf32, #tpu.memory_space<vmem>>, vector<1x1x16xf32>
    %378 = vector.shape_cast %377 : vector<1x1x16xf32> to vector<1x16xf32>
    %379 = vector.broadcast %378 : vector<1x16xf32> to vector<12x16xf32>
    %380 = arith.addf %376, %379 : vector<12x16xf32>
    %381 = arith.truncf %366 : vector<12x16xf32> to vector<12x16xbf16>
    %382 = arith.truncf %373 : vector<12x16xf32> to vector<12x16xbf16>
    %cst_238 = arith.constant dense<0.000000e+00> : vector<12x12xf32>
    %383 = tpu.matmul %381, %382, %cst_238 {dimension_numbers = #tpu.dot_dimension_numbers<[1], [1], [0], [0], [0, 0, 1, 0], [], []>} : vector<12x16xbf16>, vector<12x16xbf16>, vector<12x12xf32> -> vector<12x12xf32>
    %cst_239 = arith.constant 2.500000e-01 : f32
    %384 = vector.broadcast %cst_239 : f32 to vector<12x12xf32>
    %385 = arith.mulf %383, %384 : vector<12x12xf32>
    %386 = arith.addf %385, %13 : vector<12x12xf32>
    %cst_240 = arith.constant dense<0xFF800000> : vector<12xf32>
    %387 = vector.multi_reduction <maximumf>, %386, %cst_240 [1] : vector<12x12xf32> to vector<12xf32>
    %388 = vector.shape_cast %387 : vector<12xf32> to vector<12x1xf32>
    %389 = vector.broadcast %388 : vector<12x1xf32> to vector<12x12xf32>
    %390 = arith.subf %386, %389 : vector<12x12xf32>
    %391 = math.exp %390 : vector<12x12xf32>
    %cst_241 = arith.constant dense<0.000000e+00> : vector<12xf32>
    %392 = vector.multi_reduction <add>, %391, %cst_241 [1] : vector<12x12xf32> to vector<12xf32>
    %393 = vector.shape_cast %392 : vector<12xf32> to vector<12x1xf32>
    %394 = tpu.reciprocal %393 {approx = true} : vector<12x1xf32> -> vector<12x1xf32>
    %395 = vector.broadcast %394 : vector<12x1xf32> to vector<12x12xf32>
    %396 = arith.mulf %391, %395 : vector<12x12xf32>
    %397 = arith.truncf %396 : vector<12x12xf32> to vector<12x12xbf16>
    %398 = arith.truncf %380 : vector<12x16xf32> to vector<12x16xbf16>
    %cst_242 = arith.constant dense<0.000000e+00> : vector<12x16xf32>
    %399 = tpu.matmul %397, %398, %cst_242 {dimension_numbers = #tpu.dot_dimension_numbers<[1], [0], [0], [1], [0, 0, 1, 1], [], []>} : vector<12x12xbf16>, vector<12x16xbf16>, vector<12x16xf32> -> vector<12x16xf32>
    %400 = arith.truncf %399 : vector<12x16xf32> to vector<12x16xbf16>
    %c3_243 = arith.constant 3 : index
    %c0_244 = arith.constant 0 : index
    %c0_245 = arith.constant 0 : index
    %401 = vector.load %arg18[%c3_243, %c0_244, %c0_245] : memref<4x16x32xbf16, #tpu.memory_space<vmem>>, vector<1x16x32xbf16>
    %402 = vector.shape_cast %401 : vector<1x16x32xbf16> to vector<16x32xbf16>
    %cst_246 = arith.constant dense<0.000000e+00> : vector<12x32xf32>
    %403 = tpu.matmul %400, %402, %cst_246 {dimension_numbers = #tpu.dot_dimension_numbers<[1], [0], [0], [1], [0, 0, 1, 1], [], []>} : vector<12x16xbf16>, vector<16x32xbf16>, vector<12x32xf32> -> vector<12x32xf32>
    %404 = arith.addf %359, %403 : vector<12x32xf32>
    %405 = arith.mulf %404, %268 : vector<12x32xf32>
    %406 = arith.addf %264, %405 : vector<12x32xf32>
    %cst_247 = arith.constant dense<0.000000e+00> : vector<12xf32>
    %407 = vector.multi_reduction <add>, %406, %cst_247 [1] : vector<12x32xf32> to vector<12xf32>
    %408 = vector.shape_cast %407 : vector<12xf32> to vector<12x1xf32>
    %cst_248 = arith.constant 3.200000e+01 : f32
    %409 = vector.broadcast %cst_248 : f32 to vector<12x1xf32>
    %410 = arith.divf %408, %409 : vector<12x1xf32>
    %411 = vector.broadcast %410 : vector<12x1xf32> to vector<12x32xf32>
    %412 = arith.subf %406, %411 : vector<12x32xf32>
    %413 = arith.mulf %412, %412 : vector<12x32xf32>
    %cst_249 = arith.constant dense<0.000000e+00> : vector<12xf32>
    %414 = vector.multi_reduction <add>, %413, %cst_249 [1] : vector<12x32xf32> to vector<12xf32>
    %415 = vector.shape_cast %414 : vector<12xf32> to vector<12x1xf32>
    %cst_250 = arith.constant 3.200000e+01 : f32
    %416 = vector.broadcast %cst_250 : f32 to vector<12x1xf32>
    %417 = arith.divf %415, %416 : vector<12x1xf32>
    %418 = vector.broadcast %410 : vector<12x1xf32> to vector<12x32xf32>
    %419 = arith.subf %406, %418 : vector<12x32xf32>
    %cst_251 = arith.constant 9.99999997E-7 : f32
    %420 = vector.broadcast %cst_251 : f32 to vector<12x1xf32>
    %421 = arith.addf %417, %420 : vector<12x1xf32>
    %422 = math.rsqrt %421 : vector<12x1xf32>
    %423 = vector.broadcast %422 : vector<12x1xf32> to vector<12x32xf32>
    %424 = arith.mulf %419, %423 : vector<12x32xf32>
    %cst_252 = arith.constant 1.000000e+00 : f32
    %425 = vector.broadcast %cst_252 : f32 to vector<12x32xf32>
    %426 = arith.addf %280, %425 : vector<12x32xf32>
    %427 = arith.mulf %424, %426 : vector<12x32xf32>
    %428 = arith.addf %427, %288 : vector<12x32xf32>
    %429 = arith.truncf %428 : vector<12x32xf32> to vector<12x32xbf16>
    %c1_253 = arith.constant 1 : index
    %c0_254 = arith.constant 0 : index
    %c0_255 = arith.constant 0 : index
    %430 = vector.load %arg20[%c1_253, %c0_254, %c0_255] : memref<2x32x64xbf16, #tpu.memory_space<vmem>>, vector<1x32x64xbf16>
    %431 = vector.shape_cast %430 : vector<1x32x64xbf16> to vector<32x64xbf16>
    %cst_256 = arith.constant dense<0.000000e+00> : vector<12x64xf32>
    %432 = tpu.matmul %429, %431, %cst_256 {dimension_numbers = #tpu.dot_dimension_numbers<[1], [0], [0], [1], [0, 0, 1, 1], [], []>} : vector<12x32xbf16>, vector<32x64xbf16>, vector<12x64xf32> -> vector<12x64xf32>
    %c1_257 = arith.constant 1 : index
    %c0_258 = arith.constant 0 : index
    %c0_259 = arith.constant 0 : index
    %433 = vector.load %arg21[%c1_257, %c0_258, %c0_259] : memref<2x1x64xf32, #tpu.memory_space<vmem>>, vector<1x1x64xf32>
    %434 = vector.shape_cast %433 : vector<1x1x64xf32> to vector<1x64xf32>
    %435 = vector.broadcast %434 : vector<1x64xf32> to vector<12x64xf32>
    %436 = arith.addf %432, %435 : vector<12x64xf32>
    %437 = arith.mulf %436, %436 : vector<12x64xf32>
    %438 = arith.mulf %436, %437 : vector<12x64xf32>
    %cst_260 = arith.constant 4.471500e-02 : f32
    %439 = vector.broadcast %cst_260 : f32 to vector<12x64xf32>
    %440 = arith.mulf %439, %438 : vector<12x64xf32>
    %441 = arith.addf %436, %440 : vector<12x64xf32>
    %cst_261 = arith.constant 0.797884583 : f32
    %442 = vector.broadcast %cst_261 : f32 to vector<12x64xf32>
    %443 = arith.mulf %442, %441 : vector<12x64xf32>
    %444 = math.tanh %443 : vector<12x64xf32>
    %cst_262 = arith.constant 1.000000e+00 : f32
    %445 = vector.broadcast %cst_262 : f32 to vector<12x64xf32>
    %446 = arith.addf %445, %444 : vector<12x64xf32>
    %cst_263 = arith.constant 5.000000e-01 : f32
    %447 = vector.broadcast %cst_263 : f32 to vector<12x64xf32>
    %448 = arith.mulf %447, %446 : vector<12x64xf32>
    %449 = arith.mulf %436, %448 : vector<12x64xf32>
    %450 = arith.truncf %449 : vector<12x64xf32> to vector<12x64xbf16>
    %c1_264 = arith.constant 1 : index
    %c0_265 = arith.constant 0 : index
    %c0_266 = arith.constant 0 : index
    %451 = vector.load %arg22[%c1_264, %c0_265, %c0_266] : memref<2x64x32xbf16, #tpu.memory_space<vmem>>, vector<1x64x32xbf16>
    %452 = vector.shape_cast %451 : vector<1x64x32xbf16> to vector<64x32xbf16>
    %cst_267 = arith.constant dense<0.000000e+00> : vector<12x32xf32>
    %453 = tpu.matmul %450, %452, %cst_267 {dimension_numbers = #tpu.dot_dimension_numbers<[1], [0], [0], [1], [0, 0, 1, 1], [], []>} : vector<12x64xbf16>, vector<64x32xbf16>, vector<12x32xf32> -> vector<12x32xf32>
    %c1_268 = arith.constant 1 : index
    %c0_269 = arith.constant 0 : index
    %c0_270 = arith.constant 0 : index
    %454 = vector.load %arg23[%c1_268, %c0_269, %c0_270] : memref<2x1x32xf32, #tpu.memory_space<vmem>>, vector<1x1x32xf32>
    %455 = vector.shape_cast %454 : vector<1x1x32xf32> to vector<1x32xf32>
    %456 = vector.broadcast %455 : vector<1x32xf32> to vector<12x32xf32>
    %457 = arith.addf %453, %456 : vector<12x32xf32>
    %458 = arith.mulf %457, %272 : vector<12x32xf32>
    %459 = arith.addf %406, %458 : vector<12x32xf32>
    %c0_271 = arith.constant 0 : index
    %c0_272 = arith.constant 0 : index
    %460 = vector.load %arg24[%c0_271, %c0_272] : memref<32x32xbf16, #tpu.memory_space<vmem>>, vector<32x32xbf16>
    %cst_273 = arith.constant dense<0.000000e+00> : vector<12x32xf32>
    %461 = tpu.matmul %27, %460, %cst_273 {dimension_numbers = #tpu.dot_dimension_numbers<[1], [0], [0], [1], [0, 0, 1, 1], [], []>} : vector<12x32xbf16>, vector<32x32xbf16>, vector<12x32xf32> -> vector<12x32xf32>
    %c0_274 = arith.constant 0 : index
    %c0_275 = arith.constant 0 : index
    %462 = vector.load %arg25[%c0_274, %c0_275] : memref<1x32xf32, #tpu.memory_space<vmem>>, vector<1x32xf32>
    %463 = vector.broadcast %462 : vector<1x32xf32> to vector<12x32xf32>
    %464 = arith.addf %461, %463 : vector<12x32xf32>
    %c0_276 = arith.constant 0 : index
    %c0_277 = arith.constant 0 : index
    %465 = vector.load %arg26[%c0_276, %c0_277] : memref<32x32xbf16, #tpu.memory_space<vmem>>, vector<32x32xbf16>
    %cst_278 = arith.constant dense<0.000000e+00> : vector<12x32xf32>
    %466 = tpu.matmul %27, %465, %cst_278 {dimension_numbers = #tpu.dot_dimension_numbers<[1], [0], [0], [1], [0, 0, 1, 1], [], []>} : vector<12x32xbf16>, vector<32x32xbf16>, vector<12x32xf32> -> vector<12x32xf32>
    %c0_279 = arith.constant 0 : index
    %c0_280 = arith.constant 0 : index
    %467 = vector.load %arg27[%c0_279, %c0_280] : memref<1x32xf32, #tpu.memory_space<vmem>>, vector<1x32xf32>
    %468 = vector.broadcast %467 : vector<1x32xf32> to vector<12x32xf32>
    %469 = arith.addf %466, %468 : vector<12x32xf32>
    %cst_281 = arith.constant dense<0.000000e+00> : vector<12xf32>
    %470 = vector.multi_reduction <add>, %459, %cst_281 [1] : vector<12x32xf32> to vector<12xf32>
    %471 = vector.shape_cast %470 : vector<12xf32> to vector<12x1xf32>
    %cst_282 = arith.constant 3.200000e+01 : f32
    %472 = vector.broadcast %cst_282 : f32 to vector<12x1xf32>
    %473 = arith.divf %471, %472 : vector<12x1xf32>
    %474 = vector.broadcast %473 : vector<12x1xf32> to vector<12x32xf32>
    %475 = arith.subf %459, %474 : vector<12x32xf32>
    %476 = arith.mulf %475, %475 : vector<12x32xf32>
    %cst_283 = arith.constant dense<0.000000e+00> : vector<12xf32>
    %477 = vector.multi_reduction <add>, %476, %cst_283 [1] : vector<12x32xf32> to vector<12xf32>
    %478 = vector.shape_cast %477 : vector<12xf32> to vector<12x1xf32>
    %cst_284 = arith.constant 3.200000e+01 : f32
    %479 = vector.broadcast %cst_284 : f32 to vector<12x1xf32>
    %480 = arith.divf %478, %479 : vector<12x1xf32>
    %481 = vector.broadcast %473 : vector<12x1xf32> to vector<12x32xf32>
    %482 = arith.subf %459, %481 : vector<12x32xf32>
    %cst_285 = arith.constant 9.99999997E-7 : f32
    %483 = vector.broadcast %cst_285 : f32 to vector<12x1xf32>
    %484 = arith.addf %480, %483 : vector<12x1xf32>
    %485 = math.rsqrt %484 : vector<12x1xf32>
    %486 = vector.broadcast %485 : vector<12x1xf32> to vector<12x32xf32>
    %487 = arith.mulf %482, %486 : vector<12x32xf32>
    %cst_286 = arith.constant 1.000000e+00 : f32
    %488 = vector.broadcast %cst_286 : f32 to vector<12x32xf32>
    %489 = arith.addf %464, %488 : vector<12x32xf32>
    %490 = arith.mulf %487, %489 : vector<12x32xf32>
    %491 = arith.addf %490, %469 : vector<12x32xf32>
    %492 = arith.truncf %491 : vector<12x32xf32> to vector<12x32xbf16>
    %c0_287 = arith.constant 0 : index
    %c0_288 = arith.constant 0 : index
    %493 = vector.load %arg28[%c0_287, %c0_288] : memref<32x128xbf16, #tpu.memory_space<vmem>>, vector<32x128xbf16>
    %cst_289 = arith.constant dense<0.000000e+00> : vector<12x128xf32>
    %494 = tpu.matmul %492, %493, %cst_289 {dimension_numbers = #tpu.dot_dimension_numbers<[1], [0], [0], [1], [0, 0, 1, 1], [], []>} : vector<12x32xbf16>, vector<32x128xbf16>, vector<12x128xf32> -> vector<12x128xf32>
    %c0_290 = arith.constant 0 : index
    %c0_291 = arith.constant 0 : index
    %495 = vector.load %arg29[%c0_290, %c0_291] : memref<1x128xf32, #tpu.memory_space<vmem>>, vector<1x128xf32>
    %496 = vector.broadcast %495 : vector<1x128xf32> to vector<12x128xf32>
    %497 = arith.addf %494, %496 : vector<12x128xf32>
    %c0_292 = arith.constant 0 : index
    %c0_293 = arith.constant 0 : index
    %498 = vector.load %arg30[%c0_292, %c0_293] : memref<12x128xf32, #tpu.memory_space<vmem>>, vector<12x128xf32>
    tpu.vector_store %arg30[%c0_292, %c0_293], %497 {strides = array<i32>} : memref<12x128xf32, #tpu.memory_space<vmem>>, vector<12x128xf32>,
    return
  }
  func.func @transform_0(%arg0: i32) -> (i32, i32) {
    %c0_i32 = arith.constant 0 : i32
    %c0_i32_0 = arith.constant 0 : i32
    %c0_i32_1 = arith.constant 0 : i32
    return %c0_i32, %c0_i32_0 : i32, i32
  }
  func.func @transform_1(%arg0: i32) -> (i32, i32) {
    %c0_i32 = arith.constant 0 : i32
    %c0_i32_0 = arith.constant 0 : i32
    %c0_i32_1 = arith.constant 0 : i32
    return %c0_i32, %c0_i32_0 : i32, i32
  }
  func.func @transform_2(%arg0: i32) -> (i32, i32) {
    %c0_i32 = arith.constant 0 : i32
    %c0_i32_0 = arith.constant 0 : i32
    %c0_i32_1 = arith.constant 0 : i32
    return %c0_i32, %c0_i32_0 : i32, i32
  }
  func.func @transform_3(%arg0: i32) -> (i32, i32) {
    %c0_i32 = arith.constant 0 : i32
    %c0_i32_0 = arith.constant 0 : i32
    %c0_i32_1 = arith.constant 0 : i32
    return %c0_i32, %c0_i32_0 : i32, i32
  }
  func.func @transform_4(%arg0: i32) -> (i32, i32) {
    %c0_i32 = arith.constant 0 : i32
    %c0_i32_0 = arith.constant 0 : i32
    %c0_i32_1 = arith.constant 0 : i32
    return %c0_i32, %c0_i32_0 : i32, i32
  }
  func.func @transform_5(%arg0: i32) -> (i32, i32) {
    %c0_i32 = arith.constant 0 : i32
    %c0_i32_0 = arith.constant 0 : i32
    %c0_i32_1 = arith.constant 0 : i32
    return %c0_i32, %c0_i32_0 : i32, i32
  }
  func.func @transform_6(%arg0: i32) -> (i32, i32) {
    %c0_i32 = arith.constant 0 : i32
    %c0_i32_0 = arith.constant 0 : i32
    %c0_i32_1 = arith.constant 0 : i32
    return %c0_i32, %c0_i32_0 : i32, i32
  }
  func.func @transform_7(%arg0: i32) -> (i32, i32) {
    %c0_i32 = arith.constant 0 : i32
    %c0_i32_0 = arith.constant 0 : i32
    %c0_i32_1 = arith.constant 0 : i32
    return %c0_i32, %c0_i32_0 : i32, i32
  }
  func.func @transform_8(%arg0: i32) -> (i32, i32, i32) {
    %c0_i32 = arith.constant 0 : i32
    %c0_i32_0 = arith.constant 0 : i32
    %c0_i32_1 = arith.constant 0 : i32
    %c0_i32_2 = arith.constant 0 : i32
    return %c0_i32, %c0_i32_0, %c0_i32_1 : i32, i32, i32
  }
  func.func @transform_9(%arg0: i32) -> (i32, i32, i32) {
    %c0_i32 = arith.constant 0 : i32
    %c0_i32_0 = arith.constant 0 : i32
    %c0_i32_1 = arith.constant 0 : i32
    %c0_i32_2 = arith.constant 0 : i32
    return %c0_i32, %c0_i32_0, %c0_i32_1 : i32, i32, i32
  }
  func.func @transform_10(%arg0: i32) -> (i32, i32, i32) {
    %c0_i32 = arith.constant 0 : i32
    %c0_i32_0 = arith.constant 0 : i32
    %c0_i32_1 = arith.constant 0 : i32
    %c0_i32_2 = arith.constant 0 : i32
    return %c0_i32, %c0_i32_0, %c0_i32_1 : i32, i32, i32
  }
  func.func @transform_11(%arg0: i32) -> (i32, i32, i32) {
    %c0_i32 = arith.constant 0 : i32
    %c0_i32_0 = arith.constant 0 : i32
    %c0_i32_1 = arith.constant 0 : i32
    %c0_i32_2 = arith.constant 0 : i32
    return %c0_i32, %c0_i32_0, %c0_i32_1 : i32, i32, i32
  }
  func.func @transform_12(%arg0: i32) -> (i32, i32, i32) {
    %c0_i32 = arith.constant 0 : i32
    %c0_i32_0 = arith.constant 0 : i32
    %c0_i32_1 = arith.constant 0 : i32
    %c0_i32_2 = arith.constant 0 : i32
    return %c0_i32, %c0_i32_0, %c0_i32_1 : i32, i32, i32
  }
  func.func @transform_13(%arg0: i32) -> (i32, i32, i32) {
    %c0_i32 = arith.constant 0 : i32
    %c0_i32_0 = arith.constant 0 : i32
    %c0_i32_1 = arith.constant 0 : i32
    %c0_i32_2 = arith.constant 0 : i32
    return %c0_i32, %c0_i32_0, %c0_i32_1 : i32, i32, i32
  }
  func.func @transform_14(%arg0: i32) -> (i32, i32, i32) {
    %c0_i32 = arith.constant 0 : i32
    %c0_i32_0 = arith.constant 0 : i32
    %c0_i32_1 = arith.constant 0 : i32
    %c0_i32_2 = arith.constant 0 : i32
    return %c0_i32, %c0_i32_0, %c0_i32_1 : i32, i32, i32
  }
  func.func @transform_15(%arg0: i32) -> (i32, i32, i32) {
    %c0_i32 = arith.constant 0 : i32
    %c0_i32_0 = arith.constant 0 : i32
    %c0_i32_1 = arith.constant 0 : i32
    %c0_i32_2 = arith.constant 0 : i32
    return %c0_i32, %c0_i32_0, %c0_i32_1 : i32, i32, i32
  }
  func.func @transform_16(%arg0: i32) -> (i32, i32, i32) {
    %c0_i32 = arith.constant 0 : i32
    %c0_i32_0 = arith.constant 0 : i32
    %c0_i32_1 = arith.constant 0 : i32
    %c0_i32_2 = arith.constant 0 : i32
    return %c0_i32, %c0_i32_0, %c0_i32_1 : i32, i32, i32
  }
  func.func @transform_17(%arg0: i32) -> (i32, i32, i32) {
    %c0_i32 = arith.constant 0 : i32
    %c0_i32_0 = arith.constant 0 : i32
    %c0_i32_1 = arith.constant 0 : i32
    %c0_i32_2 = arith.constant 0 : i32
    return %c0_i32, %c0_i32_0, %c0_i32_1 : i32, i32, i32
  }
  func.func @transform_18(%arg0: i32) -> (i32, i32, i32) {
    %c0_i32 = arith.constant 0 : i32
    %c0_i32_0 = arith.constant 0 : i32
    %c0_i32_1 = arith.constant 0 : i32
    %c0_i32_2 = arith.constant 0 : i32
    return %c0_i32, %c0_i32_0, %c0_i32_1 : i32, i32, i32
  }
  func.func @transform_19(%arg0: i32) -> (i32, i32, i32) {
    %c0_i32 = arith.constant 0 : i32
    %c0_i32_0 = arith.constant 0 : i32
    %c0_i32_1 = arith.constant 0 : i32
    %c0_i32_2 = arith.constant 0 : i32
    return %c0_i32, %c0_i32_0, %c0_i32_1 : i32, i32, i32
  }
  func.func @transform_20(%arg0: i32) -> (i32, i32, i32) {
    %c0_i32 = arith.constant 0 : i32
    %c0_i32_0 = arith.constant 0 : i32
    %c0_i32_1 = arith.constant 0 : i32
    %c0_i32_2 = arith.constant 0 : i32
    return %c0_i32, %c0_i32_0, %c0_i32_1 : i32, i32, i32
  }
  func.func @transform_21(%arg0: i32) -> (i32, i32, i32) {
    %c0_i32 = arith.constant 0 : i32
    %c0_i32_0 = arith.constant 0 : i32
    %c0_i32_1 = arith.constant 0 : i32
    %c0_i32_2 = arith.constant 0 : i32
    return %c0_i32, %c0_i32_0, %c0_i32_1 : i32, i32, i32
  }
  func.func @transform_22(%arg0: i32) -> (i32, i32, i32) {
    %c0_i32 = arith.constant 0 : i32
    %c0_i32_0 = arith.constant 0 : i32
    %c0_i32_1 = arith.constant 0 : i32
    %c0_i32_2 = arith.constant 0 : i32
    return %c0_i32, %c0_i32_0, %c0_i32_1 : i32, i32, i32
  }
  func.func @transform_23(%arg0: i32) -> (i32, i32) {
    %c0_i32 = arith.constant 0 : i32
    %c0_i32_0 = arith.constant 0 : i32
    %c0_i32_1 = arith.constant 0 : i32
    return %c0_i32, %c0_i32_0 : i32, i32
  }
  func.func @transform_24(%arg0: i32) -> (i32, i32) {
    %c0_i32 = arith.constant 0 : i32
    %c0_i32_0 = arith.constant 0 : i32
    %c0_i32_1 = arith.constant 0 : i32
    return %c0_i32, %c0_i32_0 : i32, i32
  }
  func.func @transform_25(%arg0: i32) -> (i32, i32) {
    %c0_i32 = arith.constant 0 : i32
    %c0_i32_0 = arith.constant 0 : i32
    %c0_i32_1 = arith.constant 0 : i32
    return %c0_i32, %c0_i32_0 : i32, i32
  }
  func.func @transform_26(%arg0: i32) -> (i32, i32) {
    %c0_i32 = arith.constant 0 : i32
    %c0_i32_0 = arith.constant 0 : i32
    %c0_i32_1 = arith.constant 0 : i32
    return %c0_i32, %c0_i32_0 : i32, i32
  }
  func.func @transform_27(%arg0: i32) -> (i32, i32) {
    %c0_i32 = arith.constant 0 : i32
    %c0_i32_0 = arith.constant 0 : i32
    %c0_i32_1 = arith.constant 0 : i32
    return %c0_i32, %c0_i32_0 : i32, i32
  }
  func.func @transform_28(%arg0: i32) -> (i32, i32) {
    %c0_i32 = arith.constant 0 : i32
    %c0_i32_0 = arith.constant 0 : i32
    %c0_i32_1 = arith.constant 0 : i32
    return %c0_i32, %c0_i32_0 : i32, i32
  }
  func.func @transform_29(%arg0: i32) -> (i32, i32) {
    %c0_i32 = arith.constant 0 : i32
    %c0_i32_0 = arith.constant 0 : i32
    %c0_i32_1 = arith.constant 0 : i32
    return %c0_i32, %c0_i32_0 : i32, i32
  }
}

</mosaic_0001>

<bundles_post_ra>
// kernel: tile.7
= control target key start
LH: loop header
LB: loop body
LE: loop exit
PB: predicated region body
PF: predicated region fallthrough
CT: control target
= control target key end

     0   :  { %s22_s0 = inlined_call_operand.vmem [shape: s32[6], index: 0, kind: input, shape index: {}]   ;;  %s23_s1 = inlined_call_operand.vmem [shape: s32[2,6], index: 1, kind: output, shape index: {}]  }
   0x1   :  { %v4_v0 = vld [vmem:[%s22_s0] ss:$0 sm:$0xff] }
   0x2   :  { %5 = vst [vmem:[%s23_s1] sm:$0x3] %v4_v0 }

// kernel: tile.9
= control target key start
LH: loop header
LB: loop body
LE: loop exit
PB: predicated region body
PF: predicated region fallthrough
CT: control target
= control target key end

     0   :  { %vm8_vm0 = vcmask 48128   ;;  %vm14_vm1 = vcmask 97328   ;;  %s42_s0 = inlined_call_operand.vmem [shape: s32[2,6], index: 0, kind: input, shape index: {}]   ;;  %s43_s1 = inlined_call_operand.vmem [shape: s32[1,12], index: 1, kind: output, shape index: {}]  }
   0x1   :  { %v5_v0 = vld [vmem:[%s42_s0] sm:$0x3]  ;;  %s25_s0 = smov 6  }
   0x2   :  { %6 = vst [vmem:[#allocation1] sm:$0x3] %v5_v0 }
   0x9   :  { %v11_v1 = vld [vmem:[#allocation1 + $0x1] sm:$0x1]   ;;  %v7_v2 = vld [vmem:[#allocation1] sm:$0x1]  }
   0xa   :  { %12 = vrot.lane.b32.xlu0 %v11_v1, %s25_s0  ;;  %9 = vst.msk [vmem:[#allocation0] sm:$0x1] %vm8_vm0, %v7_v2  }
  0x7c   :  { %v13_v3 = vpop.permute.xlu0 %12  }
  0x7d   :  { %15 = vst.msk [vmem:[#allocation0] sm:$0x1] %vm14_vm1, %v13_v3  }
  0x84   :  { %v20_v4 = vld [vmem:[#allocation0] sm:$0x1] }
  0x85   :  { %23 = vst [vmem:[%s43_s1] sm:$0x1] %v20_v4 }

// kernel: var_forward.1
= control target key start
LH: loop header
LB: loop body
LE: loop exit
PB: predicated region body
PF: predicated region fallthrough
CT: control target
= control target key end

     0   :  { %v3827_v0 = vmov 0.0   ;;  %s3828_s3 = smov 7   ;;  %vm3829_vm0 = vmmov 0   ;;  %s3830_s7 = smov 1   ;;  %vm167_vm1 = vcmask 1043456   ;;  %vm163_vm2 = vcmask 64512   ;;  %s4469_s0 = inlined_call_operand.smem [shape: u32[30], index: -1, kind: input, shape index: {}] }
   0x1   :  { %3380 = vmatprep.subr.bf16.mxu0 %v3827_v0  ;;  %s3011_s6 = sld [smem:[%s4469_s0 + %s3828_s3]]   ;;  %3382 = vmatprep.mubr.msk.bf16.mxu0 %vm3829_vm0, %v3827_v0  ;;  %s3831_s11 = smov 8   ;;  %vm254_vm3 = vcmask 261120   ;;  %vm691_vm4 = vcmask 257024   ;;  %vm921_vm5 = vcmask 130048   ;;  %vm1002_vm6 = vcmask 1045504  }
   0x2   :  { %s3005_s10 = sld [smem:[%s4469_s0 + %s3830_s7]]   ;;  %3386 = vmatprep.subr.bf16.mxu1 %v3827_v0  ;;  %3390 = vmatprep.mubr.msk.bf16.mxu1 %vm3829_vm0, %v3827_v0  ;;  %s3832_s15 = smov 2   ;;  %vm973_vm12 = vcmask 97280   ;;  %vm977_vm14 = vcmask 93184   ;;  %vm1648_vm15 = vcmask 523264  }
   0x3   :  { %s3883_s14 = sld [smem:[%s4469_s0 + %s3831_s11]]   ;;  %s3833_s22 = smov 11  }
   0x4   :  { %s3006_s18 = sld [smem:[%s4469_s0 + %s3832_s15]]   ;;  %s3834_s26 = smov 13  }
   0x5   :  { %s1_s21 = sld [smem:[%s4469_s0]]   ;;  %s3835_s30 = smov 15  }
   0x6   :  { %s3964_s25 = sld [smem:[%s4469_s0 + %s3833_s22]]   ;;  %s3836_s4 = smov 9  }
   0x7   :  { %v162_v1 = vld [vmem:[%s3011_s6] sm:$0xf]  ;;  %s3971_s29 = sld [smem:[%s4469_s0 + %s3834_s26]]   ;;  %s3837_s8 = smov 10  }
   0x8   :  { %v169_v2 = vsel %vm167_vm1, %v162_v1, 0  ;;  %v159_v3 = vld [vmem:[%s3005_s10] sm:$0xff]  ;;  %v160_v4 = vld [vmem:[%s3005_s10 + $0x8] sm:$0xf]  ;;  %s3980_s3 = sld [smem:[%s4469_s0 + %s3835_s30]]   ;;  %s3839_s12 = smov 5  }
   0x9   :  { %3381 = vmatpush3.bf16.msra.mxu0 %v169_v2  ;;  %v161_v5 = vpack.c.bf16 %v160_v4, %v159_v3  ;;  %v3701_v6 = vld [vmem:[%s3883_s14 + $0x8] sm:$0xff]   ;;  %v3702_v7 = vld [vmem:[%s3883_s14] sm:$0xff]   ;;  %v3707_v35 = vld [vmem:[%s3883_s14 + $0x18] sm:$0xff]   ;;  %s3995_s7 = sld [smem:[%s4469_s0 + %s3836_s4]]   ;;  %s3840_s16 = smov 3  }
   0xa   :  { %3394 = vmatprep.subr.bf16.mxu0 %v3827_v0  ;;  %3387 = vmatpush3.bf16.msra.mxu1 %v3701_v6  ;;  %v214_v8 = vld [vmem:[%s3006_s18] sm:$0xff]  ;;  %v215_v9 = vld [vmem:[%s3006_s18 + $0x8] sm:$0xf]  ;;  %v3708_v36 = vld [vmem:[%s3883_s14 + $0x10] sm:$0xff]   ;;  %s4000_s11 = sld [smem:[%s4469_s0 + %s3837_s8]]   ;;  %s3841_s20 = smov 14  }
   0xb   :  { %3388 = vmatprep.subr.bf16.mxu1 %v3827_v0  ;;  %v3037_v10 = vmul.f32 -1.442695, %v214_v8  ;;  %v3038_v11 = vmul.f32 -1.442695, %v215_v9  ;;  %v3703_v20 = vld [vmem:[%s3883_s14 + $0x28] sm:$0xff]   ;;  %v3704_v22 = vld [vmem:[%s3883_s14 + $0x20] sm:$0xff]   ;;  %s3009_s15 = sld [smem:[%s4469_s0 + %s3839_s12]]  }
   0xc   :  { %3383 = vmatmul.mubr.msk.bf16.vlgmr.msra.gmra.mxu0 %vm163_vm2, %v161_v5  ;;  %v3705_v23 = vld [vmem:[%s3883_s14 + $0x48] sm:$0xff]   ;;  %v3706_v24 = vld [vmem:[%s3883_s14 + $0x40] sm:$0xff]   ;;  %v3709_v51 = vld [vmem:[%s3883_s14 + $0x38] sm:$0xff]   ;;  %s3007_s19 = sld [smem:[%s4469_s0 + %s3840_s16]]   ;;  %s3842_s24 = smov 12  }
   0xd   :  { %3398 = vmatprep.mubr.msk.bf16.mxu0 %vm3829_vm0, %v3827_v0  ;;  %3759 = vpow2.f32 %v3037_v10  ;;  %v157_v25 = vld [vmem:[%s1_s21] sm:$0xff]  ;;  %v158_v29 = vld [vmem:[%s1_s21 + $0x8] sm:$0xf]  ;;  %3395 = vmatpush3.bf16.msra.mxu0 %v3707_v35  ;;  %v3710_v53 = vld [vmem:[%s3883_s14 + $0x30] sm:$0xff]   ;;  %s4055_s23 = sld [smem:[%s4469_s0 + %s3841_s20]]   ;;  %s3843_s30 = smov 16  }
   0xe   :  { %3389 = vmatpush3.bf16.msra.mxu1 %v3702_v7  ;;  %3761 = vpow2.f32 %v3038_v11  ;;  %3396 = vmatprep.subr.bf16.mxu0 %v3827_v0  ;;  %v3711_v56 = vld [vmem:[%s3883_s14 + $0x58] sm:$0xff]   ;;  %v3712_v59 = vld [vmem:[%s3883_s14 + $0x50] sm:$0xff]   ;;  %v3713_v63 = vld [vmem:[%s3964_s25 + $0x8] sm:$0xff]   ;;  %s4060_s28 = sld [smem:[%s4469_s0 + %s3842_s24]]   ;;  %s3844_s5 = smov 6  }
   0xf   :  { %3402 = vmatprep.subr.bf16.mxu1 %v3827_v0  ;;  %v3714_v1 = vld [vmem:[%s3971_s29 + $0x8] sm:$0xff]   ;;  %v3715_v2 = vld [vmem:[%s3964_s25] sm:$0xff]   ;;  %s4066_s4 = sld [smem:[%s4469_s0 + %s3843_s30]]   ;;  %s3845_s10 = smov 4  }
  0x10   :  { %v3716_v3 = vld [vmem:[%s3971_s29] sm:$0xff]   ;;  %s3010_s9 = sld [smem:[%s4469_s0 + %s3844_s5]]   ;;  %s3849_s24 = smov 19  }
  0x11   :  { %3397 = vmatpush3.bf16.msra.mxu0 %v3708_v36  ;;  %s3008_s14 = sld [smem:[%s4469_s0 + %s3845_s10]]   ;;  %s3850_s1 = smov 21  }
  0x12   :  { %3410 = vmatprep.subr.bf16.mxu0 %v3827_v0  ;;  %s4193_s30 = sld [smem:[%s4469_s0 + %s3849_s24]]   ;;  %s3851_s8 = smov 20  }
  0x13   :  { %s4225_s6 = sld [smem:[%s4469_s0 + %s3850_s1]]   ;;  %s3852_s13 = smov 22  }
  0x14   :  { %s4238_s12 = sld [smem:[%s4469_s0 + %s3851_s8]]   ;;  %s3856_s21 = smov 24  }
  0x15   :  { %s4247_s16 = sld [smem:[%s4469_s0 + %s3852_s13]]   ;;  %s3857_s27 = smov 26  }
  0x16   :  { %s3028_s26 = sld [smem:[%s4469_s0 + %s3856_s21]]   ;;  %s3858_s5 = smov 28  }
  0x17   :  { %s3030_s2 = sld [smem:[%s4469_s0 + %s3857_s27]]   ;;  %s3859_s10 = smov 29  }
  0x1a   :  { %v3760_v12 = vpop.eup %3759 }
  0x1b   :  { %v3762_v13 = vpop.eup %3761  ;;  %v222_v14 = vadd.f32 1.0, %v3760_v12 }
  0x1c   :  { %v223_v15 = vadd.f32 1.0, %v3762_v13 }
  0x1d   :  { %3763 = vrcp.f32 %v222_v14  ;;  %v3057_v14 = vld [vmem:[%s3995_s7 + $0x2] ss:$0 sm:$0xff] }
  0x1e   :  { %3765 = vrcp.f32 %v223_v15 }
  0x2a   :  { %v3764_v16 = vpop.eup %3763 }
  0x2b   :  { %v3766_v17 = vpop.eup %3765  ;;  %v228_v18 = vmul.f32 %v3764_v16, %v214_v8  ;;  %v3092_v16 = vld [vmem:[%s4000_s11 + $0x2] ss:$0 sm:$0xff] }
  0x2c   :  { %v229_v19 = vmul.f32 %v3766_v17, %v215_v9  ;;  %v3075_v17 = vld [vmem:[%s3995_s7 + $0x4] ss:$0 sm:$0xff] }
  0x2e   :  { %v3893_v21 = vpack.c.bf16 %v229_v19, %v228_v18 }
  0x30   :  { %3391 = vmatmul.mubr.msk.bf16.vlgmr.msra.gmra.mxu1 %vm254_vm3, %v3893_v21  ;;  %3399 = vmatmul.mubr.msk.bf16.vlgmr.msra.gmra.mxu0 %vm254_vm3, %v3893_v21 }
  0x31   :  { %3403 = vmatpush3.bf16.msra.mxu1 %v3703_v20  ;;  %3406 = vmatprep.mubr.msk.bf16.mxu1 %vm3829_vm0, %v3827_v0 }
  0x32   :  { %3404 = vmatprep.subr.bf16.mxu1 %v3827_v0  ;;  %3414 = vmatprep.mubr.msk.bf16.mxu0 %vm3829_vm0, %v3827_v0 }
  0x33   :  { %3411 = vmatpush3.bf16.msra.mxu0 %v3709_v51 }
  0x34   :  { %3412 = vmatprep.subr.bf16.mxu0 %v3827_v0 }
  0x35   :  { %3405 = vmatpush3.bf16.msra.mxu1 %v3704_v22  ;;  %v3096_v22 = vld [vmem:[%s4000_s11 + $0x4] ss:$0 sm:$0xff] }
  0x36   :  { %3418 = vmatprep.subr.bf16.mxu1 %v3827_v0 }
  0x37   :  { %3413 = vmatpush3.bf16.msra.mxu0 %v3710_v53  ;;  %v124_v53 = vld [vmem:[%s3009_s15 + $0x8] sm:$0xf] }
  0x38   :  { %3407 = vmatmul.mubr.msk.bf16.vlgmr.msra.gmra.mxu1 %vm254_vm3, %v3893_v21  ;;  %3426 = vmatprep.subr.bf16.mxu0 %v3827_v0 }
  0x39   :  { %3419 = vmatpush3.bf16.msra.mxu1 %v3705_v23  ;;  %3422 = vmatprep.mubr.msk.bf16.mxu1 %vm3829_vm0, %v3827_v0 }
  0x3a   :  { %3420 = vmatprep.subr.bf16.mxu1 %v3827_v0  ;;  %3415 = vmatmul.mubr.msk.bf16.vlgmr.msra.gmra.mxu0 %vm254_vm3, %v3893_v21 }
  0x3b   :  { %3427 = vmatpush3.bf16.msra.mxu0 %v3711_v56  ;;  %3430 = vmatprep.mubr.msk.bf16.mxu0 %vm3829_vm0, %v3827_v0  ;;  %v139_v56 = vld [vmem:[%s3007_s19 + $0x8] sm:$0xf] }
  0x3c   :  { %3428 = vmatprep.subr.bf16.mxu0 %v3827_v0 }
  0x3d   :  { %3421 = vmatpush3.bf16.msra.mxu1 %v3706_v24 }
  0x3e   :  { %3434 = vmatprep.subr.bf16.mxu1 %v3827_v0 }
  0x3f   :  { %3429 = vmatpush3.bf16.msra.mxu0 %v3712_v59  ;;  %v3103_v59 = vld [vmem:[%s4055_s23] ss:$0 sm:$0xff] }
  0x40   :  { %3423 = vmatmul.mubr.msk.bf16.vlgmr.msra.gmra.mxu1 %vm254_vm3, %v3893_v21  ;;  %3442 = vmatprep.subr.bf16.mxu0 %v3827_v0 }
  0x41   :  { %3438 = vmatprep.mubr.msk.bf16.mxu1 %vm3829_vm0, %v3827_v0  ;;  %3435 = vmatpush3.bf16.msra.mxu1 %v3713_v63 }
  0x42   :  { %3431 = vmatmul.mubr.msk.bf16.vlgmr.msra.gmra.mxu0 %vm254_vm3, %v3893_v21  ;;  %3436 = vmatprep.subr.bf16.mxu1 %v3827_v0 }
  0x43   :  { %3446 = vmatprep.mubr.msk.bf16.mxu0 %vm3829_vm0, %v3827_v0  ;;  %3443 = vmatpush3.bf16.msra.mxu0 %v3714_v1 }
  0x44   :  { %3444 = vmatprep.subr.bf16.mxu0 %v3827_v0 }
  0x45   :  { %3437 = vmatpush3.bf16.msra.mxu1 %v3715_v2 }
  0x46   :  { %3450 = vmatprep.subr.bf16.mxu1 %v3827_v0 }
  0x47   :  { %3445 = vmatpush3.bf16.msra.mxu0 %v3716_v3 }
  0x48   :  { %3458 = vmatprep.subr.bf16.mxu0 %v3827_v0 }
  0xcc   :  { %v205_v26 = vpop.f32.mrf.mxu0 }
  0xcd   :  { %v3917_v27 = vadd.f32 %v205_v26, %v157_v25 }
  0xce   :  { %v3384_v28 = vpop.f32.mrf.mxu0 }
  0xcf   :  { %v688_v30 = vsel %vm254_vm3, %v3917_v27, 0.0 }
  0xd0   :  { %v208_v31 = vpop.f32.mrf.mxu0  ;;  %689 = vadd.xlane.f32.xlu0 %v688_v30 }
  0xd1   :  { %v3921_v32 = vadd.f32 %v208_v31, %v158_v29 }
  0xd2   :  { %v3385_v33 = vpop.f32.mrf.mxu0 }
  0xd3   :  { %v692_v34 = vsel %vm691_vm4, %v3921_v32, 0.0 }
  0xd4   :  { %693 = vadd.xlane.f32.xlu0 %v692_v34 }
  0xf0   :  { %v3933_v37 = vpop.f32.mrf.mxu1  ;;  %v3988_v4 = vpop.f32.mrf.mxu0 }
  0xf2   :  { %v3392_v38 = vpop.f32.mrf.mxu1  ;;  %v3400_v5 = vpop.f32.mrf.mxu0 }
  0xf4   :  { %v3935_v39 = vpop.f32.mrf.mxu1  ;;  %v3990_v6 = vpop.f32.mrf.mxu0 }
  0xf6   :  { %v3393_v40 = vpop.f32.mrf.mxu1  ;;  %v3401_v7 = vpop.f32.mrf.mxu0 }
  0xf8   :  { %v424_v52 = vpop.f32.mrf.mxu1 }
  0xf9   :  { %v4003_v15 = vadd.f32 %v3057_v14, %v424_v52  ;;  %v3838_v52 = vmov 0  }
  0xfa   :  { %v3408_v54 = vpop.f32.mrf.mxu1  ;;  %3700 = vset.pattern.permute.xlu1 %v3838_v52  ;;  %3699 = vset.pattern.permute.xlu0 %v3838_v52 }
  0xfb   :  { %v656_v18 = vadd.f32 %v3092_v16, %v4003_v15  ;;  %v123_v54 = vld [vmem:[%s3009_s15] sm:$0xff]  ;;  %s3847_s15 = smov 17  }
  0xfc   :  { %v427_v55 = vpop.f32.mrf.mxu1  ;;  %127 = vperm.xlu0 %3699, %v123_v54   ;;  %s4115_s18 = sld [smem:[%s4469_s0 + %s3847_s15]]  }
  0xfd   :  { %v4008_v19 = vadd.f32 %v3057_v14, %v427_v55  ;;  %v716_v25 = vadd.f32 1.0, %v656_v18  ;;  %v138_v55 = vld [vmem:[%s3007_s19] sm:$0xff]  ;;  %s3848_s19 = smov 18  }
  0xfe   :  { %v3409_v57 = vpop.f32.mrf.mxu1  ;;  %s4161_s22 = sld [smem:[%s4469_s0 + %s3848_s19]]  }
  0xff   :  { %v657_v26 = vadd.f32 %v3092_v16, %v4008_v19 }
 0x100   :  { %v556_v58 = vpop.f32.mrf.mxu1 }
 0x101   :  { %v4010_v20 = vadd.f32 %v3075_v17, %v556_v58  ;;  %v717_v34 = vadd.f32 1.0, %v657_v26 }
 0x102   :  { %v3424_v60 = vpop.f32.mrf.mxu1 }
 0x103   :  { %v676_v28 = vadd.f32 %v3096_v22, %v4010_v20 }
 0x104   :  { %v559_v61 = vpop.f32.mrf.mxu1 }
 0x105   :  { %v4016_v30 = vadd.f32 %v3075_v17, %v559_v61 }
 0x106   :  { %v3425_v62 = vpop.f32.mrf.mxu1 }
 0x107   :  { %v677_v38 = vadd.f32 %v3096_v22, %v4016_v30 }
 0x159   :  { %v690_v41 = vpop.xlane.xlu0 %689 }
 0x15a   :  { %v696_v42 = vmul.f32 0.03125, %v690_v41  ;;  %v3717_v41 = vld [vmem:[%s3980_s3 + $0x8] sm:$0xff]  }
 0x15c   :  { %v3938_v43 = vsub.f32 %v3917_v27, %v696_v42 }
 0x15d   :  { %v694_v44 = vpop.xlane.xlu0 %693 }
 0x15e   :  { %v697_v45 = vmul.f32 0.03125, %v694_v44  ;;  %v700_v46 = vmul.f32 %v3938_v43, %v3938_v43  ;;  %v4038_v44 = vpop.f32.mrf.mxu0 }
 0x160   :  { %v3943_v47 = vsub.f32 %v3921_v32, %v697_v45  ;;  %v702_v48 = vsel %vm254_vm3, %v700_v46, 0.0  ;;  %v3416_v45 = vpop.f32.mrf.mxu0 }
 0x161   :  { %703 = vadd.xlane.f32.xlu1 %v702_v48 }
 0x162   :  { %v701_v49 = vmul.f32 %v3943_v47, %v3943_v47  ;;  %v4040_v46 = vpop.f32.mrf.mxu0 }
 0x164   :  { %v705_v50 = vsel %vm691_vm4, %v701_v49, 0.0 }
 0x165   :  { %706 = vadd.xlane.f32.xlu1 %v705_v50 }
 0x176   :  { %130 = vperm.xlu1 %3700, %v124_v53  }
 0x17a   :  { %142 = vperm.xlu1 %3700, %v138_v55  }
 0x17e   :  { %145 = vperm.xlu1 %3700, %v139_v56  }
 0x1ea   :  { %v704_v8 = vpop.xlane.xlu1 %703 }
 0x1eb   :  { %v708_v9 = vmul.f32 0.03125, %v704_v8 }
 0x1ed   :  { %v710_v10 = vadd.f32 1e-06, %v708_v9 }
 0x1ee   :  { %v707_v11 = vpop.xlane.xlu1 %706 }
 0x1ef   :  { %3767 = vrsqrt.f32 %v710_v10  ;;  %v709_v12 = vmul.f32 0.03125, %v707_v11  ;;  %v3099_v10 = vld [vmem:[%s4060_s28] ss:$0 sm:$0xff] }
 0x1f0   :  { %v3107_v11 = vld [vmem:[%s4066_s4] ss:$0 sm:$0xff] }
 0x1f1   :  { %v711_v13 = vadd.f32 1e-06, %v709_v12 }
 0x1f2   :  { %v131_v26 = vpop.permute.xlu1 %130 }
 0x1f3   :  { %3769 = vrsqrt.f32 %v711_v13 }
 0x1fc   :  { %v3768_v23 = vpop.eup %3767 }
 0x1fd   :  { %v714_v24 = vmul.f32 %v3768_v23, %v3938_v43  ;;  %v3718_v43 = vld [vmem:[%s3980_s3] sm:$0xff]  }
 0x1ff   :  { %v718_v29 = vmul.f32 %v716_v25, %v714_v24 }
 0x200   :  { %v3770_v31 = vpop.eup %3769 }
 0x201   :  { %v715_v33 = vmul.f32 %v3770_v31, %v3943_v47  ;;  %v720_v35 = vadd.f32 %v718_v29, %v676_v28  ;;  %v3417_v47 = vpop.f32.mrf.mxu0  ;;  %v143_v28 = vpop.permute.xlu1 %142  ;;  %v3034_v29 = vld [vmem:[%s3010_s9] ss:$0 sm:$0xff]  ;;  %s3032_s9 = sld [smem:[%s4469_s0 + %s3858_s5]]  }
 0x202   :  { %v3035_v31 = vld [vmem:[%s3008_s14] ss:$0 sm:$0xff]  ;;  %vm137_vm10 = vcmp.eq.s32.totalorder %v131_v26, %v3034_v29  ;;  %s3033_s14 = sld [smem:[%s4469_s0 + %s3859_s10]]  }
 0x203   :  { %v719_v36 = vmul.f32 %v717_v34, %v715_v33  ;;  %v4042_v48 = vpop.f32.mrf.mxu0  ;;  %v128_v33 = vpop.permute.xlu0 %127  ;;  %vm151_vm7 = vcmp.ge.s32.totalorder %v143_v28, %v3035_v31  ;;  %v3725_v28 = vld [vmem:[%s3971_s29 + $0x10] sm:$0xff]  }
 0x204   :  { %vm136_vm8 = vcmp.eq.s32.totalorder %v128_v33, %v3034_v29  ;;  %v3121_v29 = vld [vmem:[%s4060_s28 + $0x1] ss:$0 sm:$0xff] }
 0x205   :  { %v721_v40 = vadd.f32 %v719_v36, %v677_v38  ;;  %v3432_v49 = vpop.f32.mrf.mxu0  ;;  %v146_v34 = vpop.permute.xlu1 %145  ;;  %vm153_vm9 = vmand %vm136_vm8, %vm151_vm7  ;;  %v3846_v38 = vmov -1e+30  }
 0x206   :  { %vm152_vm11 = vcmp.ge.s32.totalorder %v146_v34, %v3035_v31 }
 0x207   :  { %v4021_v42 = vpack.c.bf16 %v721_v40, %v720_v35  ;;  %v4044_v50 = vpop.f32.mrf.mxu0  ;;  %v4083_v40 = vsel %vm153_vm9, 0.0, %v3846_v38  ;;  %vm154_vm13 = vmand %vm137_vm10, %vm152_vm11 }
 0x209   :  { %3439 = vmatmul.mubr.msk.bf16.vlgmr.msra.gmra.mxu1 %vm254_vm3, %v4021_v42  ;;  %3447 = vmatmul.mubr.msk.bf16.vlgmr.msra.gmra.mxu0 %vm254_vm3, %v4021_v42  ;;  %v3433_v51 = vpop.f32.mrf.mxu0 }
 0x20a   :  { %3451 = vmatpush3.bf16.msra.mxu1 %v3717_v41  ;;  %3454 = vmatprep.mubr.msk.bf16.mxu1 %vm3829_vm0, %v3827_v0  ;;  %v4087_v51 = vsel %vm154_vm13, 0.0, %v3846_v38 }
 0x20b   :  { %3452 = vmatprep.subr.bf16.mxu1 %v3827_v0  ;;  %3460 = vmatprep.mubr.msk.bf16.mxu0 %vm3829_vm0, %v3827_v0 }
 0x20e   :  { %3453 = vmatpush3.bf16.msra.mxu1 %v3718_v43 }
 0x20f   :  { %3464 = vmatprep.subr.bf16.mxu1 %v3827_v0 }
 0x211   :  { %3455 = vmatmul.mubr.msk.bf16.vlgmr.msra.gmra.mxu1 %vm254_vm3, %v4021_v42 }
 0x212   :  { %3466 = vmatprep.mubr.msk.bf16.mxu1 %vm3829_vm0, %v3827_v0 }
 0x2c9   :  { %v784_v57 = vpop.f32.mrf.mxu1  ;;  %v848_v58 = vpop.f32.mrf.mxu0 }
 0x2ca   :  { %v849_v1 = vadd.f32 %v3103_v59, %v848_v58  ;;  %v785_v16 = vadd.f32 %v3099_v10, %v784_v57 }
 0x2cb   :  { %v3440_v60 = vpop.f32.mrf.mxu1  ;;  %v3448_v61 = vpop.f32.mrf.mxu0 }
 0x2cd   :  { %v787_v62 = vpop.f32.mrf.mxu1  ;;  %v851_v63 = vpop.f32.mrf.mxu0 }
 0x2ce   :  { %v852_v2 = vadd.f32 %v3103_v59, %v851_v63  ;;  %v788_v13 = vadd.f32 %v3099_v10, %v787_v62  ;;  %v3719_v10 = vld [vmem:[%s3964_s25 + $0x18] sm:$0xff]  }
 0x2cf   :  { %v3441_v3 = vpop.f32.mrf.mxu1  ;;  %v3449_v5 = vpop.f32.mrf.mxu0 }
 0x2d0   :  { %v920_v7 = vpack.c.bf16 %v852_v2, %v849_v1  ;;  %v919_v23 = vpack.c.bf16 %v788_v13, %v785_v16  ;;  %v3721_v13 = vld [vmem:[%s3980_s3 + $0x18] sm:$0xff]   ;;  %v3723_v16 = vld [vmem:[%s4115_s18] sm:$0xff]  }
 0x2d1   :  { %v912_v8 = vpop.f32.mrf.mxu1 }
 0x2d2   :  { %v926_v9 = vsel %vm921_vm5, %v920_v7, 0  ;;  %v913_v17 = vadd.f32 %v3107_v11, %v912_v8 }
 0x2d3   :  { %v3456_v12 = vpop.f32.mrf.mxu1  ;;  %3459 = vmatpush3.bf16.xpose.msra.mxu0 %v926_v9 }
 0x2d4   :  { %3470 = vmatprep.subr.bf16.mxu0 %v3827_v0  ;;  %v3720_v12 = vld [vmem:[%s3964_s25 + $0x10] sm:$0xff]  }
 0x2d5   :  { %v915_v14 = vpop.f32.mrf.mxu1 }
 0x2d6   :  { %v916_v18 = vadd.f32 %v3107_v11, %v915_v14  ;;  %v3722_v14 = vld [vmem:[%s3980_s3 + $0x10] sm:$0xff]  }
 0x2d7   :  { %v3457_v22 = vpop.f32.mrf.mxu1 }
 0x2d8   :  { %v998_v24 = vpack.c.bf16 %v916_v18, %v913_v17 }
 0x2da   :  { %3461 = vmatmul.mubr.msk.bf16.vlgmr.msra.gmra.mxu0 %vm921_vm5, %v919_v23  ;;  %v1004_v25 = vsel %vm1002_vm6, %v998_v24, 0  ;;  %v3724_v23 = vld [vmem:[%s3971_s29 + $0x18] sm:$0xff]  }
 0x2db   :  { %3465 = vmatpush3.bf16.msra.mxu1 %v1004_v25  ;;  %3472 = vmatprep.mubr.msk.bf16.mxu0 %vm3829_vm0, %v3827_v0 }
 0x2dc   :  { %3476 = vmatprep.subr.bf16.mxu1 %v3827_v0  ;;  %3471 = vmatpush3.bf16.msra.mxu0 %v3723_v16 }
 0x2dd   :  { %3484 = vmatprep.subr.bf16.mxu0 %v3827_v0 }
 0x39a   :  { %v962_v35 = vpop.f32.mrf.mxu0 }
 0x39b   :  { %v969_v36 = vmul.f32 0.25, %v962_v35 }
 0x39c   :  { %v3462_v41 = vpop.f32.mrf.mxu0 }
 0x39d   :  { %v971_v43 = vadd.f32 %v969_v36, %v4083_v40 }
 0x39e   :  { %v965_v45 = vpop.f32.mrf.mxu0 }
 0x39f   :  { %v970_v47 = vmul.f32 0.25, %v965_v45  ;;  %v974_v49 = vsel %vm973_vm12, %v971_v43, -inf }
 0x3a0   :  { %v3463_v52 = vpop.f32.mrf.mxu0  ;;  %975 = vmax.xlane.f32.xlu1 %v974_v49 }
 0x3a1   :  { %v972_v53 = vadd.f32 %v970_v47, %v4087_v51 }
 0x3a3   :  { %v978_v54 = vsel %vm977_vm14, %v972_v53, -inf }
 0x3a4   :  { %979 = vmax.xlane.f32.xlu0 %v978_v54 }
 0x429   :  { %v976_v55 = vpop.xlane.xlu1 %975 }
 0x42a   :  { %v981_v56 = vsub.f32 %v971_v43, %v976_v55  ;;  %v3139_v43 = vld [vmem:[%s4066_s4 + $0x1] ss:$0 sm:$0xff] }
 0x42c   :  { %v983_v57 = vmul.f32 1.442695, %v981_v56 }
 0x42d   :  { %v980_v58 = vpop.xlane.xlu0 %979 }
 0x42e   :  { %3771 = vpow2.f32 %v983_v57  ;;  %v982_v59 = vsub.f32 %v972_v53, %v980_v58 }
 0x430   :  { %v985_v60 = vmul.f32 1.442695, %v982_v59 }
 0x432   :  { %3773 = vpow2.f32 %v985_v60  ;;  %v3130_v60 = vld [vmem:[%s4055_s23 + $0x1] ss:$0 sm:$0xff] }
 0x43b   :  { %v3772_v61 = vpop.eup %3771 }
 0x43c   :  { %v987_v62 = vsel %vm973_vm12, %v3772_v61, 0.0 }
 0x43d   :  { %988 = vadd.xlane.f32.xlu1 %v987_v62 }
 0x43f   :  { %v3774_v63 = vpop.eup %3773 }
 0x440   :  { %v990_v1 = vsel %vm977_vm14, %v3774_v63, 0.0 }
 0x441   :  { %991 = vadd.xlane.f32.xlu1 %v990_v1 }
 0x4c6   :  { %v989_v2 = vpop.xlane.xlu1 %988 }
 0x4c7   :  { %3775 = vrcp.f32 %v989_v2 }
 0x4ca   :  { %v992_v3 = vpop.xlane.xlu1 %991 }
 0x4cb   :  { %3777 = vrcp.f32 %v992_v3 }
 0x4d4   :  { %v3776_v5 = vpop.eup %3775 }
 0x4d5   :  { %v995_v8 = vmul.f32 %v3776_v5, %v3772_v61 }
 0x4d8   :  { %v3778_v7 = vpop.eup %3777 }
 0x4d9   :  { %v996_v9 = vmul.f32 %v3778_v7, %v3774_v63 }
 0x4db   :  { %v997_v11 = vpack.c.bf16 %v996_v9, %v995_v8 }
 0x4dd   :  { %3467 = vmatmul.mubr.msk.bf16.vlgmr.msra.gmra.mxu1 %vm973_vm12, %v997_v11 }
 0x4de   :  { %3477 = vmatpush3.bf16.msra.mxu1 %v3719_v10  ;;  %3480 = vmatprep.mubr.msk.bf16.mxu1 %vm3829_vm0, %v3827_v0 }
 0x4df   :  { %3478 = vmatprep.subr.bf16.mxu1 %v3827_v0 }
 0x4e2   :  { %3479 = vmatpush3.bf16.msra.mxu1 %v3720_v12 }
 0x4e3   :  { %3492 = vmatprep.subr.bf16.mxu1 %v3827_v0 }
 0x4e5   :  { %3481 = vmatmul.mubr.msk.bf16.vlgmr.msra.gmra.mxu1 %vm254_vm3, %v4021_v42 }
 0x4e6   :  { %3493 = vmatpush3.bf16.msra.mxu1 %v3721_v13  ;;  %3496 = vmatprep.mubr.msk.bf16.mxu1 %vm3829_vm0, %v3827_v0 }
 0x4e7   :  { %3494 = vmatprep.subr.bf16.mxu1 %v3827_v0 }
 0x4ea   :  { %3495 = vmatpush3.bf16.msra.mxu1 %v3722_v14 }
 0x4eb   :  { %3506 = vmatprep.subr.bf16.mxu1 %v3827_v0 }
 0x4ed   :  { %3497 = vmatmul.mubr.msk.bf16.vlgmr.msra.gmra.mxu1 %vm254_vm3, %v4021_v42 }
 0x4ee   :  { %3508 = vmatprep.mubr.msk.bf16.mxu1 %vm3829_vm0, %v3827_v0 }
 0x59d   :  { %v1040_v17 = vpop.f32.mrf.mxu1 }
 0x59f   :  { %v3468_v18 = vpop.f32.mrf.mxu1 }
 0x5a1   :  { %v1043_v22 = vpop.f32.mrf.mxu1 }
 0x5a2   :  { %v1047_v24 = vpack.c.bf16 %v1043_v22, %v1040_v17 }
 0x5a3   :  { %v3469_v25 = vpop.f32.mrf.mxu1 }
 0x5a4   :  { %3473 = vmatmul.mubr.msk.bf16.vlgmr.msra.gmra.mxu0 %vm921_vm5, %v1047_v24 }
 0x5a5   :  { %v1167_v26 = vpop.f32.mrf.mxu1  ;;  %3485 = vmatpush3.bf16.msra.mxu0 %v3724_v23  ;;  %3488 = vmatprep.mubr.msk.bf16.mxu0 %vm3829_vm0, %v3827_v0 }
 0x5a6   :  { %3486 = vmatprep.subr.bf16.mxu0 %v3827_v0  ;;  %v1168_v34 = vadd.f32 %v3121_v29, %v1167_v26 }
 0x5a7   :  { %v3482_v31 = vpop.f32.mrf.mxu1 }
 0x5a9   :  { %v1170_v33 = vpop.f32.mrf.mxu1  ;;  %3487 = vmatpush3.bf16.msra.mxu0 %v3725_v28 }
 0x5aa   :  { %v1171_v35 = vadd.f32 %v3121_v29, %v1170_v33  ;;  %3500 = vmatprep.subr.bf16.mxu0 %v3827_v0 }
 0x5ab   :  { %v3483_v36 = vpop.f32.mrf.mxu1 }
 0x5ac   :  { %v1306_v38 = vpack.c.bf16 %v1171_v35, %v1168_v34  ;;  %3489 = vmatmul.mubr.msk.bf16.vlgmr.msra.gmra.mxu0 %vm254_vm3, %v4021_v42 }
 0x5ad   :  { %v1299_v41 = vpop.f32.mrf.mxu1  ;;  %3502 = vmatprep.mubr.msk.bf16.mxu0 %vm3829_vm0, %v3827_v0 }
 0x5ae   :  { %v1300_v49 = vadd.f32 %v3139_v43, %v1299_v41 }
 0x5af   :  { %v3498_v45 = vpop.f32.mrf.mxu1 }
 0x5b1   :  { %v1302_v47 = vpop.f32.mrf.mxu1 }
 0x5b2   :  { %v1303_v52 = vadd.f32 %v3139_v43, %v1302_v47  ;;  %v3726_v47 = vld [vmem:[%s4115_s18 + $0x8] sm:$0xff]  }
 0x5b3   :  { %v3499_v53 = vpop.f32.mrf.mxu1 }
 0x5b4   :  { %v1382_v54 = vpack.c.bf16 %v1303_v52, %v1300_v49 }
 0x5b6   :  { %v1387_v55 = vsel %vm1002_vm6, %v1382_v54, 0 }
 0x5b7   :  { %3507 = vmatpush3.bf16.msra.mxu1 %v1387_v55 }
 0x5b8   :  { %3518 = vmatprep.subr.bf16.mxu1 %v3827_v0 }
 0x664   :  { %v4134_v56 = vpop.f32.mrf.mxu0 }
 0x666   :  { %v3474_v42 = vpop.f32.mrf.mxu0 }
 0x667   :  { %v3039_v42 = vld [vmem:[%s3995_s7] ss:$0 sm:$0xff] }
 0x668   :  { %v4136_v57 = vpop.f32.mrf.mxu0 }
 0x66a   :  { %v3475_v58 = vpop.f32.mrf.mxu0 }
 0x66b   :  { %v3115_v58 = vld [vmem:[%s4161_s22] ss:$0 sm:$0xff] }
 0x66c   :  { %v1233_v59 = vpop.f32.mrf.mxu0 }
 0x66d   :  { %v1234_v63 = vadd.f32 %v3130_v60, %v1233_v59  ;;  %v4166_v59 = vadd.f32 %v3039_v42, %v3933_v37 }
 0x66e   :  { %v3490_v61 = vpop.f32.mrf.mxu0 }
 0x66f   :  { %v1106_v61 = vadd.f32 %v3115_v58, %v4134_v56 }
 0x670   :  { %v1236_v62 = vpop.f32.mrf.mxu0 }
 0x671   :  { %v1237_v1 = vadd.f32 %v3130_v60, %v1236_v62  ;;  %v3088_v60 = vld [vmem:[%s4000_s11] ss:$0 sm:$0xff] }
 0x672   :  { %v3491_v2 = vpop.f32.mrf.mxu0 }
 0x673   :  { %v1307_v3 = vpack.c.bf16 %v1237_v1, %v1234_v63  ;;  %v636_v63 = vadd.f32 %v3088_v60, %v4166_v59  ;;  %v4172_v1 = vadd.f32 %v3039_v42, %v3935_v39 }
 0x675   :  { %v1312_v5 = vsel %vm921_vm5, %v1307_v3, 0 }
 0x676   :  { %3501 = vmatpush3.bf16.xpose.msra.mxu0 %v1312_v5  ;;  %v1107_v5 = vadd.f32 %v3115_v58, %v4136_v57 }
 0x677   :  { %3512 = vmatprep.subr.bf16.mxu0 %v3827_v0 }
 0x67d   :  { %3503 = vmatmul.mubr.msk.bf16.vlgmr.msra.gmra.mxu0 %vm921_vm5, %v1306_v38 }
 0x67e   :  { %3514 = vmatprep.mubr.msk.bf16.mxu0 %vm3829_vm0, %v3827_v0  ;;  %3513 = vmatpush3.bf16.msra.mxu0 %v3726_v47 }
 0x67f   :  { %3526 = vmatprep.subr.bf16.mxu0 %v3827_v0 }
 0x73d   :  { %v1348_v7 = vpop.f32.mrf.mxu0 }
 0x73e   :  { %v1355_v8 = vmul.f32 0.25, %v1348_v7 }
 0x73f   :  { %v3504_v9 = vpop.f32.mrf.mxu0 }
 0x740   :  { %v1357_v10 = vadd.f32 %v1355_v8, %v4083_v40  ;;  %v637_v9 = vadd.f32 %v3088_v60, %v4172_v1 }
 0x741   :  { %v1351_v11 = vpop.f32.mrf.mxu0 }
 0x742   :  { %v1356_v12 = vmul.f32 0.25, %v1351_v11  ;;  %v1359_v13 = vsel %vm973_vm12, %v1357_v10, -inf }
 0x743   :  { %1360 = vmax.xlane.f32.xlu1 %v1359_v13  ;;  %v3505_v14 = vpop.f32.mrf.mxu0 }
 0x744   :  { %v1358_v16 = vadd.f32 %v1356_v12, %v4087_v51 }
 0x746   :  { %v1362_v17 = vsel %vm977_vm14, %v1358_v16, -inf }
 0x747   :  { %1363 = vmax.xlane.f32.xlu1 %v1362_v17 }
 0x7cc   :  { %v1361_v18 = vpop.xlane.xlu1 %1360 }
 0x7cd   :  { %v1365_v22 = vsub.f32 %v1357_v10, %v1361_v18 }
 0x7cf   :  { %v1367_v23 = vmul.f32 1.442695, %v1365_v22 }
 0x7d0   :  { %v1364_v24 = vpop.xlane.xlu1 %1363 }
 0x7d1   :  { %3779 = vpow2.f32 %v1367_v23  ;;  %v1366_v25 = vsub.f32 %v1358_v16, %v1364_v24 }
 0x7d3   :  { %v1369_v26 = vmul.f32 1.442695, %v1366_v25  ;;  %v3727_v25 = vld [vmem:[%s4193_s30 + $0x8] sm:$0xff]  }
 0x7d5   :  { %3781 = vpow2.f32 %v1369_v26  ;;  %v3728_v26 = vld [vmem:[%s4193_s30] sm:$0xff]  }
 0x7de   :  { %v3780_v28 = vpop.eup %3779 }
 0x7df   :  { %v1371_v29 = vsel %vm973_vm12, %v3780_v28, 0.0 }
 0x7e0   :  { %1372 = vadd.xlane.f32.xlu0 %v1371_v29 }
 0x7e2   :  { %v3782_v31 = vpop.eup %3781 }
 0x7e3   :  { %v1374_v33 = vsel %vm977_vm14, %v3782_v31, 0.0 }
 0x7e4   :  { %1375 = vadd.xlane.f32.xlu1 %v1374_v33 }
 0x869   :  { %v1373_v34 = vpop.xlane.xlu0 %1372 }
 0x86a   :  { %3783 = vrcp.f32 %v1373_v34 }
 0x86d   :  { %v1376_v35 = vpop.xlane.xlu1 %1375 }
 0x86e   :  { %3785 = vrcp.f32 %v1376_v35 }
 0x877   :  { %v3784_v36 = vpop.eup %3783 }
 0x878   :  { %v1379_v41 = vmul.f32 %v3784_v36, %v3780_v28  ;;  %v3066_v36 = vld [vmem:[%s3995_s7 + $0x3] ss:$0 sm:$0xff] }
 0x879   :  { %v4207_v47 = vadd.f32 %v3066_v36, %v4040_v46 }
 0x87b   :  { %v3786_v38 = vpop.eup %3785 }
 0x87c   :  { %v1380_v43 = vmul.f32 %v3786_v38, %v3782_v31  ;;  %v4201_v38 = vadd.f32 %v3066_v36, %v4038_v44 }
 0x87e   :  { %v1381_v45 = vpack.c.bf16 %v1380_v43, %v1379_v41  ;;  %v3094_v41 = vld [vmem:[%s4000_s11 + $0x3] ss:$0 sm:$0xff]  ;;  %v3084_v43 = vld [vmem:[%s3995_s7 + $0x5] ss:$0 sm:$0xff] }
 0x87f   :  { %v4216_v44 = vadd.f32 %v3084_v43, %v4044_v50  ;;  %v3729_v50 = vld [vmem:[%s4225_s6 + $0x18] sm:$0xff]  }
 0x880   :  { %3509 = vmatmul.mubr.msk.bf16.vlgmr.msra.gmra.mxu1 %vm973_vm12, %v1381_v45  ;;  %v666_v45 = vadd.f32 %v3094_v41, %v4201_v38 }
 0x881   :  { %3522 = vmatprep.mubr.msk.bf16.mxu1 %vm3829_vm0, %v3827_v0  ;;  %3519 = vmatpush3.bf16.msra.mxu1 %v3727_v25 }
 0x882   :  { %3520 = vmatprep.subr.bf16.mxu1 %v3827_v0 }
 0x885   :  { %3521 = vmatpush3.bf16.msra.mxu1 %v3728_v26 }
 0x886   :  { %3538 = vmatprep.subr.bf16.mxu1 %v3827_v0 }
 0x940   :  { %v1423_v49 = vpop.f32.mrf.mxu1 }
 0x942   :  { %v3510_v52 = vpop.f32.mrf.mxu1 }
 0x944   :  { %v1426_v53 = vpop.f32.mrf.mxu1 }
 0x945   :  { %v1430_v54 = vpack.c.bf16 %v1426_v53, %v1423_v49  ;;  %v4210_v49 = vadd.f32 %v3084_v43, %v4042_v48  ;;  %v3098_v53 = vld [vmem:[%s4000_s11 + $0x5] ss:$0 sm:$0xff] }
 0x946   :  { %v3511_v55 = vpop.f32.mrf.mxu1 }
 0x947   :  { %3515 = vmatmul.mubr.msk.bf16.vlgmr.msra.gmra.mxu0 %vm921_vm5, %v1430_v54  ;;  %v1516_v54 = vadd.f32 1.0, %v666_v45  ;;  %v667_v55 = vadd.f32 %v3094_v41, %v4207_v47  ;;  %v686_v58 = vadd.f32 %v3098_v53, %v4210_v49  ;;  %v3048_v45 = vld [vmem:[%s3995_s7 + $0x1] ss:$0 sm:$0xff] }
 0x948   :  { %3534 = vmatprep.mubr.msk.bf16.mxu0 %vm3829_vm0, %v3827_v0  ;;  %3527 = vmatpush3.bf16.msra.mxu0 %v3729_v50 }
 0x949   :  { %3528 = vmatprep.subr.bf16.mxu0 %v3827_v0 }
 0xa07   :  { %v1477_v62 = vpop.f32.mrf.mxu0 }
 0xa08   :  { %v1484_v2 = vadd.f32 %v1477_v62, %v1106_v61  ;;  %v1517_v62 = vadd.f32 1.0, %v667_v55 }
 0xa09   :  { %v3516_v3 = vpop.f32.mrf.mxu0 }
 0xa0a   :  { %v1486_v7 = vmul.f32 %v1484_v2, %v636_v63  ;;  %v687_v2 = vadd.f32 %v3098_v53, %v4216_v44  ;;  %v3090_v53 = vld [vmem:[%s4000_s11 + $0x1] ss:$0 sm:$0xff] }
 0xa0b   :  { %v1480_v8 = vpop.f32.mrf.mxu0 }
 0xa0c   :  { %v4177_v37 = vadd.f32 %v1486_v7, %v3917_v27  ;;  %v1485_v10 = vadd.f32 %v1480_v8, %v1107_v5  ;;  %v3730_v7 = vld [vmem:[%s4225_s6 + $0x10] sm:$0xff]   ;;  %v3731_v8 = vld [vmem:[%s4225_s6 + $0x8] sm:$0xff]  }
 0xa0d   :  { %v3517_v11 = vpop.f32.mrf.mxu0  ;;  %3529 = vmatpush3.bf16.msra.mxu0 %v3730_v7 }
 0xa0e   :  { %v1487_v56 = vmul.f32 %v1485_v10, %v637_v9  ;;  %v1490_v12 = vsel %vm254_vm3, %v4177_v37, 0.0  ;;  %3530 = vmatprep.subr.bf16.mxu0 %v3827_v0  ;;  %v3732_v9 = vld [vmem:[%s4225_s6] sm:$0xff]  }
 0xa0f   :  { %1491 = vadd.xlane.f32.xlu0 %v1490_v12  ;;  %v3149_v10 = vld [vmem:[%s4238_s12] ss:$0 sm:$0xff] }
 0xa10   :  { %v4182_v39 = vadd.f32 %v1487_v56, %v3921_v32 }
 0xa11   :  { %3531 = vmatpush3.bf16.msra.mxu0 %v3731_v8 }
 0xa12   :  { %v1493_v57 = vsel %vm691_vm4, %v4182_v39, 0.0  ;;  %3532 = vmatprep.subr.bf16.mxu0 %v3827_v0 }
 0xa13   :  { %1494 = vadd.xlane.f32.xlu1 %v1493_v57 }
 0xa15   :  { %3533 = vmatpush3.bf16.msra.mxu0 %v3732_v9 }
 0xa16   :  { %3554 = vmatprep.subr.bf16.mxu0 %v3827_v0 }
 0xa98   :  { %v1492_v13 = vpop.xlane.xlu0 %1491 }
 0xa99   :  { %v1496_v14 = vmul.f32 0.03125, %v1492_v13 }
 0xa9b   :  { %v1498_v16 = vsub.f32 %v4177_v37, %v1496_v14 }
 0xa9c   :  { %v1495_v27 = vpop.xlane.xlu1 %1494 }
 0xa9d   :  { %v1497_v17 = vmul.f32 0.03125, %v1495_v27  ;;  %v1500_v18 = vmul.f32 %v1498_v16, %v1498_v16 }
 0xa9f   :  { %v1499_v22 = vsub.f32 %v4182_v39, %v1497_v17  ;;  %v1502_v23 = vsel %vm254_vm3, %v1500_v18, 0.0 }
 0xaa0   :  { %1503 = vadd.xlane.f32.xlu0 %v1502_v23 }
 0xaa1   :  { %v1501_v24 = vmul.f32 %v1499_v22, %v1499_v22 }
 0xaa3   :  { %v1505_v32 = vsel %vm691_vm4, %v1501_v24, 0.0 }
 0xaa4   :  { %1506 = vadd.xlane.f32.xlu1 %v1505_v32 }
 0xb29   :  { %v1504_v28 = vpop.xlane.xlu0 %1503 }
 0xb2a   :  { %v1508_v29 = vmul.f32 0.03125, %v1504_v28 }
 0xb2c   :  { %v1510_v31 = vadd.f32 1e-06, %v1508_v29 }
 0xb2d   :  { %v1507_v33 = vpop.xlane.xlu1 %1506 }
 0xb2e   :  { %3787 = vrsqrt.f32 %v1510_v31  ;;  %v1509_v34 = vmul.f32 0.03125, %v1507_v33 }
 0xb30   :  { %v1511_v35 = vadd.f32 1e-06, %v1509_v34 }
 0xb32   :  { %3789 = vrsqrt.f32 %v1511_v35 }
 0xb3b   :  { %v3788_v52 = vpop.eup %3787 }
 0xb3c   :  { %v1514_v42 = vmul.f32 %v3788_v52, %v1498_v16  ;;  %v4251_v52 = vadd.f32 %v3048_v45, %v3988_v4 }
 0xb3e   :  { %v1518_v60 = vmul.f32 %v1516_v54, %v1514_v42  ;;  %v3153_v54 = vld [vmem:[%s4247_s16] ss:$0 sm:$0xff]  ;;  %v646_v42 = vadd.f32 %v3090_v53, %v4251_v52 }
 0xb3f   :  { %v3790_v61 = vpop.eup %3789 }
 0xb40   :  { %v1515_v63 = vmul.f32 %v3790_v61, %v1499_v22  ;;  %v1520_v46 = vadd.f32 %v1518_v60, %v686_v58  ;;  %v4257_v58 = vadd.f32 %v3048_v45, %v3990_v6 }
 0xb42   :  { %v1519_v48 = vmul.f32 %v1517_v62, %v1515_v63 }
 0xb44   :  { %v1521_v3 = vadd.f32 %v1519_v48, %v687_v2 }
 0xb46   :  { %v1522_v5 = vpack.c.bf16 %v1521_v3, %v1520_v46  ;;  %v647_v46 = vadd.f32 %v3090_v53, %v4257_v58 }
 0xb48   :  { %3523 = vmatmul.mubr.msk.bf16.vlgmr.msra.gmra.mxu1 %vm254_vm3, %v1522_v5 }
 0xb49   :  { %3542 = vmatprep.mubr.msk.bf16.mxu1 %vm3829_vm0, %v3827_v0 }
 0xc08   :  { %v1583_v11 = vpop.f32.mrf.mxu1 }
 0xc09   :  { %v1584_v56 = vadd.f32 %v3149_v10, %v1583_v11 }
 0xc0a   :  { %v3524_v12 = vpop.f32.mrf.mxu1 }
 0xc0b   :  { %v1590_v57 = vmul.f32 %v1584_v56, %v1584_v56 }
 0xc0c   :  { %v1586_v13 = vpop.f32.mrf.mxu1 }
 0xc0d   :  { %v1592_v14 = vmul.f32 %v1590_v57, %v1584_v56  ;;  %v1587_v16 = vadd.f32 %v3149_v10, %v1586_v13  ;;  %v3733_v13 = vld [vmem:[%s3964_s25 + $0x28] sm:$0xff]  }
 0xc0e   :  { %v3525_v27 = vpop.f32.mrf.mxu1  ;;  %3539 = vmatpush3.bf16.msra.mxu1 %v3733_v13 }
 0xc0f   :  { %v1594_v17 = vmul.f32 0.044715, %v1592_v14  ;;  %v1591_v18 = vmul.f32 %v1587_v16, %v1587_v16  ;;  %v3734_v14 = vld [vmem:[%s3980_s3 + $0x28] sm:$0xff]   ;;  %3540 = vmatprep.subr.bf16.mxu1 %v3827_v0  ;;  %v3736_v27 = vld [vmem:[%s3980_s3 + $0x20] sm:$0xff]  }
 0xc11   :  { %v1596_v22 = vadd.f32 %v1594_v17, %v1584_v56  ;;  %v1593_v23 = vmul.f32 %v1591_v18, %v1587_v16 }
 0xc13   :  { %v1598_v24 = vmul.f32 0.7978846, %v1596_v22  ;;  %v1595_v32 = vmul.f32 0.044715, %v1593_v23 }
 0xc15   :  { %3791 = vtanh.f32 %v1598_v24  ;;  %v1597_v25 = vadd.f32 %v1595_v32, %v1587_v16 }
 0xc17   :  { %v1599_v26 = vmul.f32 0.7978846, %v1597_v25  ;;  %v3164_v25 = vld [vmem:[%s4000_s11 + $0x8] ss:$0 sm:$0xff] }
 0xc19   :  { %3793 = vtanh.f32 %v1599_v26  ;;  %v1725_v26 = vadd.f32 %v3164_v25, %v4003_v15  ;;  %v3737_v15 = vld [vmem:[%s3971_s29 + $0x28] sm:$0xff]  }
 0xc22   :  { %v3792_v28 = vpop.eup %3791 }
 0xc23   :  { %v1602_v29 = vadd.f32 1.0, %v3792_v28 }
 0xc25   :  { %v1604_v33 = vmul.f32 0.5, %v1602_v29  ;;  %v3168_v29 = vld [vmem:[%s4000_s11 + $0xa] ss:$0 sm:$0xff] }
 0xc26   :  { %v3794_v31 = vpop.eup %3793 }
 0xc27   :  { %v1603_v34 = vadd.f32 1.0, %v3794_v31  ;;  %v1606_v36 = vmul.f32 %v1604_v33, %v1584_v56  ;;  %v1783_v31 = vadd.f32 1.0, %v1725_v26  ;;  %v1726_v33 = vadd.f32 %v3164_v25, %v4008_v19  ;;  %v3738_v19 = vld [vmem:[%s3971_s29 + $0x20] sm:$0xff]  }
 0xc29   :  { %v1605_v35 = vmul.f32 0.5, %v1603_v34 }
 0xc2b   :  { %v1607_v41 = vmul.f32 %v1605_v35, %v1587_v16  ;;  %v3735_v16 = vld [vmem:[%s3964_s25 + $0x20] sm:$0xff]   ;;  %v1745_v35 = vadd.f32 %v3168_v29, %v4010_v20 }
 0xc2c   :  { %3541 = vmatpush3.bf16.msra.mxu1 %v3735_v16 }
 0xc2d   :  { %v1608_v43 = vpack.c.bf16 %v1607_v41, %v1606_v36  ;;  %3546 = vmatprep.subr.bf16.mxu1 %v3827_v0 }
 0xc2f   :  { %3535 = vmatmul.mubr.msk.bf16.vlgmr.msra.gmra.mxu0 %vm1648_vm15, %v1608_v43  ;;  %v1784_v43 = vadd.f32 1.0, %v1726_v33 }
 0xc30   :  { %3558 = vmatprep.mubr.msk.bf16.mxu0 %vm3829_vm0, %v3827_v0  ;;  %3555 = vmatpush3.bf16.msra.mxu0 %v3734_v14  ;;  %v3177_v14 = vld [vmem:[%s4060_s28 + $0x2] ss:$0 sm:$0xff] }
 0xc31   :  { %3556 = vmatprep.subr.bf16.mxu0 %v3827_v0 }
 0xc34   :  { %3557 = vmatpush3.bf16.msra.mxu0 %v3736_v27 }
 0xc35   :  { %3568 = vmatprep.subr.bf16.mxu0 %v3827_v0 }
 0xcef   :  { %v1686_v55 = vpop.f32.mrf.mxu0 }
 0xcf0   :  { %v1687_v60 = vadd.f32 %v3153_v54, %v1686_v55 }
 0xcf1   :  { %v3536_v61 = vpop.f32.mrf.mxu0 }
 0xcf2   :  { %v1693_v62 = vmul.f32 %v1687_v60, %v646_v42  ;;  %v3195_v61 = vld [vmem:[%s4066_s4 + $0x2] ss:$0 sm:$0xff] }
 0xcf3   :  { %v1689_v63 = vpop.f32.mrf.mxu0 }
 0xcf4   :  { %v4261_v2 = vadd.f32 %v1693_v62, %v4177_v37  ;;  %v1690_v48 = vadd.f32 %v3153_v54, %v1689_v63  ;;  %v1746_v54 = vadd.f32 %v3168_v29, %v4016_v30 }
 0xcf5   :  { %v3537_v4 = vpop.f32.mrf.mxu0 }
 0xcf6   :  { %v1694_v3 = vmul.f32 %v1690_v48, %v647_v46  ;;  %v1757_v5 = vsel %vm254_vm3, %v4261_v2, 0.0 }
 0xcf7   :  { %1758 = vadd.xlane.f32.xlu0 %v1757_v5 }
 0xcf8   :  { %v4266_v6 = vadd.f32 %v1694_v3, %v4182_v39 }
 0xcfa   :  { %v1760_v50 = vsel %vm691_vm4, %v4266_v6, 0.0 }
 0xcfb   :  { %1761 = vadd.xlane.f32.xlu1 %v1760_v50 }
 0xd80   :  { %v1759_v7 = vpop.xlane.xlu0 %1758 }
 0xd81   :  { %v1763_v8 = vmul.f32 0.03125, %v1759_v7 }
 0xd83   :  { %v1765_v37 = vsub.f32 %v4261_v2, %v1763_v8 }
 0xd84   :  { %v1762_v9 = vpop.xlane.xlu1 %1761 }
 0xd85   :  { %v1764_v10 = vmul.f32 0.03125, %v1762_v9  ;;  %v1767_v11 = vmul.f32 %v1765_v37, %v1765_v37  ;;  %v3186_v9 = vld [vmem:[%s4055_s23 + $0x2] ss:$0 sm:$0xff] }
 0xd87   :  { %v1766_v56 = vsub.f32 %v4266_v6, %v1764_v10  ;;  %v1769_v12 = vsel %vm254_vm3, %v1767_v11, 0.0 }
 0xd88   :  { %1770 = vadd.xlane.f32.xlu0 %v1769_v12 }
 0xd89   :  { %v1768_v39 = vmul.f32 %v1766_v56, %v1766_v56 }
 0xd8b   :  { %v1772_v57 = vsel %vm691_vm4, %v1768_v39, 0.0 }
 0xd8c   :  { %1773 = vadd.xlane.f32.xlu1 %v1772_v57 }
 0xe11   :  { %v1771_v17 = vpop.xlane.xlu0 %1770 }
 0xe12   :  { %v1775_v18 = vmul.f32 0.03125, %v1771_v17 }
 0xe14   :  { %v1777_v22 = vadd.f32 1e-06, %v1775_v18 }
 0xe15   :  { %v1774_v23 = vpop.xlane.xlu1 %1773 }
 0xe16   :  { %3795 = vrsqrt.f32 %v1777_v22  ;;  %v1776_v24 = vmul.f32 0.03125, %v1774_v23 }
 0xe18   :  { %v1778_v32 = vadd.f32 1e-06, %v1776_v24 }
 0xe1a   :  { %3797 = vrsqrt.f32 %v1778_v32 }
 0xe23   :  { %v3796_v28 = vpop.eup %3795 }
 0xe24   :  { %v1781_v34 = vmul.f32 %v3796_v28, %v1765_v37 }
 0xe26   :  { %v1785_v36 = vmul.f32 %v1783_v31, %v1781_v34 }
 0xe27   :  { %v3798_v41 = vpop.eup %3797 }
 0xe28   :  { %v1782_v45 = vmul.f32 %v3798_v41, %v1766_v56  ;;  %v1787_v53 = vadd.f32 %v1785_v36, %v1745_v35 }
 0xe2a   :  { %v1786_v55 = vmul.f32 %v1784_v43, %v1782_v45 }
 0xe2c   :  { %v1788_v42 = vadd.f32 %v1786_v55, %v1746_v54 }
 0xe2e   :  { %v4289_v60 = vpack.c.bf16 %v1788_v42, %v1787_v53 }
 0xe30   :  { %3543 = vmatmul.mubr.msk.bf16.vlgmr.msra.gmra.mxu1 %vm254_vm3, %v4289_v60  ;;  %3559 = vmatmul.mubr.msk.bf16.vlgmr.msra.gmra.mxu0 %vm254_vm3, %v4289_v60 }
 0xe31   :  { %3547 = vmatpush3.bf16.msra.mxu1 %v3737_v15  ;;  %3550 = vmatprep.mubr.msk.bf16.mxu1 %vm3829_vm0, %v3827_v0 }
 0xe32   :  { %3548 = vmatprep.subr.bf16.mxu1 %v3827_v0  ;;  %3570 = vmatprep.mubr.msk.bf16.mxu0 %vm3829_vm0, %v3827_v0 }
 0xe35   :  { %3549 = vmatpush3.bf16.msra.mxu1 %v3738_v19 }
 0xe36   :  { %3562 = vmatprep.subr.bf16.mxu1 %v3827_v0 }
 0xe38   :  { %3551 = vmatmul.mubr.msk.bf16.vlgmr.msra.gmra.mxu1 %vm254_vm3, %v4289_v60 }
 0xe39   :  { %3564 = vmatprep.mubr.msk.bf16.mxu1 %vm3829_vm0, %v3827_v0 }
 0xef0   :  { %v1854_v20 = vpop.f32.mrf.mxu1  ;;  %v1986_v30 = vpop.f32.mrf.mxu0 }
 0xef1   :  { %v1987_v4 = vadd.f32 %v3195_v61, %v1986_v30  ;;  %v1855_v27 = vadd.f32 %v3177_v14, %v1854_v20 }
 0xef2   :  { %v3544_v62 = vpop.f32.mrf.mxu1  ;;  %v3560_v63 = vpop.f32.mrf.mxu0 }
 0xef3   :  { %v3739_v62 = vld [vmem:[%s3964_s25 + $0x38] sm:$0xff]  }
 0xef4   :  { %v1857_v46 = vpop.f32.mrf.mxu1  ;;  %v1989_v48 = vpop.f32.mrf.mxu0 }
 0xef5   :  { %v1990_v3 = vadd.f32 %v3195_v61, %v1989_v48  ;;  %v1858_v16 = vadd.f32 %v3177_v14, %v1857_v46  ;;  %v3740_v46 = vld [vmem:[%s3964_s25 + $0x30] sm:$0xff]   ;;  %v3741_v48 = vld [vmem:[%s3980_s3 + $0x38] sm:$0xff]   ;;  %s3853_s25 = smov 23  }
 0xef6   :  { %v3545_v5 = vpop.f32.mrf.mxu1  ;;  %v3561_v50 = vpop.f32.mrf.mxu0  ;;  %s3027_s7 = sld [smem:[%s4469_s0 + %s3853_s25]]  }
 0xef7   :  { %v2069_v7 = vpack.c.bf16 %v1990_v3, %v1987_v4  ;;  %v1993_v17 = vpack.c.bf16 %v1858_v16, %v1855_v27  ;;  %v3742_v4 = vld [vmem:[%s3980_s3 + $0x30] sm:$0xff]  }
 0xef8   :  { %v1920_v8 = vpop.f32.mrf.mxu1  ;;  %v3743_v3 = vld [vmem:[%s4115_s18 + $0x10] sm:$0xff]  }
 0xef9   :  { %v2074_v37 = vsel %vm1002_vm6, %v2069_v7, 0  ;;  %v1921_v56 = vadd.f32 %v3186_v9, %v1920_v8  ;;  %v3744_v8 = vld [vmem:[%s3971_s29 + $0x38] sm:$0xff]  }
 0xefa   :  { %v3552_v10 = vpop.f32.mrf.mxu1  ;;  %3569 = vmatpush3.bf16.msra.mxu0 %v2074_v37 }
 0xefb   :  { %3580 = vmatprep.subr.bf16.mxu0 %v3827_v0 }
 0xefc   :  { %v1923_v11 = vpop.f32.mrf.mxu1 }
 0xefd   :  { %v1924_v12 = vadd.f32 %v3186_v9, %v1923_v11  ;;  %v3745_v11 = vld [vmem:[%s3971_s29 + $0x30] sm:$0xff]  }
 0xefe   :  { %v3553_v39 = vpop.f32.mrf.mxu1 }
 0xeff   :  { %v1994_v57 = vpack.c.bf16 %v1924_v12, %v1921_v56  ;;  %v3211_v56 = vld [vmem:[%s4060_s28 + $0x3] ss:$0 sm:$0xff] }
 0xf01   :  { %v1999_v13 = vsel %vm921_vm5, %v1994_v57, 0 }
 0xf02   :  { %3563 = vmatpush3.bf16.xpose.msra.mxu1 %v1999_v13 }
 0xf03   :  { %3574 = vmatprep.subr.bf16.mxu1 %v3827_v0 }
 0xf09   :  { %3565 = vmatmul.mubr.msk.bf16.vlgmr.msra.gmra.mxu1 %vm921_vm5, %v1993_v17  ;;  %v3229_v17 = vld [vmem:[%s4066_s4 + $0x3] ss:$0 sm:$0xff] }
 0xf0a   :  { %3576 = vmatprep.mubr.msk.bf16.mxu1 %vm3829_vm0, %v3827_v0  ;;  %3575 = vmatpush3.bf16.msra.mxu1 %v3743_v3 }
 0xf0b   :  { %3588 = vmatprep.subr.bf16.mxu1 %v3827_v0 }
 0xfc9   :  { %v2035_v18 = vpop.f32.mrf.mxu1 }
 0xfca   :  { %v2042_v22 = vmul.f32 0.25, %v2035_v18 }
 0xfcb   :  { %v3566_v23 = vpop.f32.mrf.mxu1 }
 0xfcc   :  { %v2044_v24 = vadd.f32 %v2042_v22, %v4083_v40 }
 0xfcd   :  { %v2038_v32 = vpop.f32.mrf.mxu1 }
 0xfce   :  { %v2043_v25 = vmul.f32 0.25, %v2038_v32  ;;  %v2046_v26 = vsel %vm973_vm12, %v2044_v24, -inf }
 0xfcf   :  { %2047 = vmax.xlane.f32.xlu0 %v2046_v26  ;;  %v3567_v28 = vpop.f32.mrf.mxu1 }
 0xfd0   :  { %v2045_v29 = vadd.f32 %v2043_v25, %v4087_v51 }
 0xfd2   :  { %v2049_v31 = vsel %vm977_vm14, %v2045_v29, -inf }
 0xfd3   :  { %2050 = vmax.xlane.f32.xlu1 %v2049_v31 }
0x1058   :  { %v2048_v33 = vpop.xlane.xlu0 %2047 }
0x1059   :  { %v2052_v34 = vsub.f32 %v2044_v24, %v2048_v33 }
0x105b   :  { %v2054_v35 = vmul.f32 1.442695, %v2052_v34  ;;  %v3220_v34 = vld [vmem:[%s4055_s23 + $0x3] ss:$0 sm:$0xff]  ;;  %s3854_s23 = smov 25  }
0x105c   :  { %v2051_v36 = vpop.xlane.xlu1 %2050  ;;  %s3029_s17 = sld [smem:[%s4469_s0 + %s3854_s23]]  }
0x105d   :  { %3799 = vpow2.f32 %v2054_v35  ;;  %v2053_v41 = vsub.f32 %v2045_v29, %v2051_v36 }
0x105f   :  { %v2056_v43 = vmul.f32 1.442695, %v2053_v41 }
0x1061   :  { %3801 = vpow2.f32 %v2056_v43 }
0x106a   :  { %v3800_v45 = vpop.eup %3799 }
0x106b   :  { %v2058_v53 = vsel %vm973_vm12, %v3800_v45, 0.0 }
0x106c   :  { %2059 = vadd.xlane.f32.xlu0 %v2058_v53 }
0x106e   :  { %v3802_v54 = vpop.eup %3801 }
0x106f   :  { %v2061_v55 = vsel %vm977_vm14, %v3802_v54, 0.0 }
0x1070   :  { %2062 = vadd.xlane.f32.xlu1 %v2061_v55 }
0x10f5   :  { %v2060_v42 = vpop.xlane.xlu0 %2059 }
0x10f6   :  { %3803 = vrcp.f32 %v2060_v42 }
0x10f9   :  { %v2063_v15 = vpop.xlane.xlu1 %2062 }
0x10fa   :  { %3805 = vrcp.f32 %v2063_v15 }
0x1103   :  { %v3804_v19 = vpop.eup %3803 }
0x1104   :  { %v2066_v30 = vmul.f32 %v3804_v19, %v3800_v45 }
0x1107   :  { %v3806_v20 = vpop.eup %3805 }
0x1108   :  { %v2067_v61 = vmul.f32 %v3806_v20, %v3802_v54 }
0x110a   :  { %v2068_v63 = vpack.c.bf16 %v2067_v61, %v2066_v30 }
0x110c   :  { %3571 = vmatmul.mubr.msk.bf16.vlgmr.msra.gmra.mxu0 %vm973_vm12, %v2068_v63 }
0x110d   :  { %3581 = vmatpush3.bf16.msra.mxu0 %v3739_v62  ;;  %3584 = vmatprep.mubr.msk.bf16.mxu0 %vm3829_vm0, %v3827_v0 }
0x110e   :  { %3582 = vmatprep.subr.bf16.mxu0 %v3827_v0 }
0x1111   :  { %3583 = vmatpush3.bf16.msra.mxu0 %v3740_v46 }
0x1112   :  { %3596 = vmatprep.subr.bf16.mxu0 %v3827_v0 }
0x1114   :  { %3585 = vmatmul.mubr.msk.bf16.vlgmr.msra.gmra.mxu0 %vm254_vm3, %v4289_v60 }
0x1115   :  { %3597 = vmatpush3.bf16.msra.mxu0 %v3741_v48  ;;  %3600 = vmatprep.mubr.msk.bf16.mxu0 %vm3829_vm0, %v3827_v0 }
0x1116   :  { %3598 = vmatprep.subr.bf16.mxu0 %v3827_v0 }
0x1119   :  { %3599 = vmatpush3.bf16.msra.mxu0 %v3742_v4 }
0x111a   :  { %3610 = vmatprep.subr.bf16.mxu0 %v3827_v0 }
0x111c   :  { %3601 = vmatmul.mubr.msk.bf16.vlgmr.msra.gmra.mxu0 %vm254_vm3, %v4289_v60 }
0x111d   :  { %3612 = vmatprep.mubr.msk.bf16.mxu0 %vm3829_vm0, %v3827_v0 }
0x11cc   :  { %v2110_v5 = vpop.f32.mrf.mxu0 }
0x11ce   :  { %v3572_v50 = vpop.f32.mrf.mxu0 }
0x11d0   :  { %v2113_v7 = vpop.f32.mrf.mxu0 }
0x11d1   :  { %v2117_v37 = vpack.c.bf16 %v2113_v7, %v2110_v5 }
0x11d2   :  { %v3573_v9 = vpop.f32.mrf.mxu0 }
0x11d3   :  { %3577 = vmatmul.mubr.msk.bf16.vlgmr.msra.gmra.mxu1 %vm921_vm5, %v2117_v37 }
0x11d4   :  { %v2238_v10 = vpop.f32.mrf.mxu0  ;;  %3589 = vmatpush3.bf16.msra.mxu1 %v3744_v8  ;;  %3592 = vmatprep.mubr.msk.bf16.mxu1 %vm3829_vm0, %v3827_v0 }
0x11d5   :  { %3590 = vmatprep.subr.bf16.mxu1 %v3827_v0  ;;  %v2239_v57 = vadd.f32 %v3211_v56, %v2238_v10 }
0x11d6   :  { %v3586_v12 = vpop.f32.mrf.mxu0 }
0x11d8   :  { %v2241_v39 = vpop.f32.mrf.mxu0  ;;  %3591 = vmatpush3.bf16.msra.mxu1 %v3745_v11 }
0x11d9   :  { %v2242_v13 = vadd.f32 %v3211_v56, %v2241_v39  ;;  %3604 = vmatprep.subr.bf16.mxu1 %v3827_v0 }
0x11da   :  { %v3587_v14 = vpop.f32.mrf.mxu0 }
0x11db   :  { %v2377_v16 = vpack.c.bf16 %v2242_v13, %v2239_v57  ;;  %3593 = vmatmul.mubr.msk.bf16.vlgmr.msra.gmra.mxu1 %vm254_vm3, %v4289_v60  ;;  %v3746_v13 = vld [vmem:[%s4115_s18 + $0x18] sm:$0xff]  }
0x11dc   :  { %v2370_v27 = vpop.f32.mrf.mxu0  ;;  %3606 = vmatprep.mubr.msk.bf16.mxu1 %vm3829_vm0, %v3827_v0 }
0x11dd   :  { %v2371_v23 = vadd.f32 %v3229_v17, %v2370_v27 }
0x11de   :  { %v3602_v18 = vpop.f32.mrf.mxu0 }
0x11e0   :  { %v2373_v22 = vpop.f32.mrf.mxu0 }
0x11e1   :  { %v2374_v24 = vadd.f32 %v3229_v17, %v2373_v22  ;;  %v3205_v22 = vld [vmem:[%s4161_s22 + $0x1] ss:$0 sm:$0xff] }
0x11e2   :  { %v3603_v32 = vpop.f32.mrf.mxu0 }
0x11e3   :  { %v2453_v25 = vpack.c.bf16 %v2374_v24, %v2371_v23  ;;  %v3160_v23 = vld [vmem:[%s4000_s11 + $0x6] ss:$0 sm:$0xff] }
0x11e5   :  { %v2458_v26 = vsel %vm1002_vm6, %v2453_v25, 0  ;;  %v1705_v25 = vadd.f32 %v3160_v23, %v4166_v59 }
0x11e6   :  { %3611 = vmatpush3.bf16.msra.mxu0 %v2458_v26 }
0x11e7   :  { %3622 = vmatprep.subr.bf16.mxu0 %v3827_v0 }
0x1293   :  { %v4358_v28 = vpop.f32.mrf.mxu1 }
0x1294   :  { %v2177_v24 = vadd.f32 %v3205_v22, %v4358_v28 }
0x1295   :  { %v3578_v60 = vpop.f32.mrf.mxu1 }
0x1297   :  { %v4360_v29 = vpop.f32.mrf.mxu1 }
0x1299   :  { %v3579_v31 = vpop.f32.mrf.mxu1 }
0x129a   :  { %v2178_v31 = vadd.f32 %v3205_v22, %v4360_v29 }
0x129b   :  { %v2304_v33 = vpop.f32.mrf.mxu1 }
0x129c   :  { %v2305_v41 = vadd.f32 %v3220_v34, %v2304_v33 }
0x129d   :  { %v3594_v35 = vpop.f32.mrf.mxu1 }
0x129e   :  { %v1706_v35 = vadd.f32 %v3160_v23, %v4172_v1 }
0x129f   :  { %v2307_v36 = vpop.f32.mrf.mxu1 }
0x12a0   :  { %v2308_v43 = vadd.f32 %v3220_v34, %v2307_v36 }
0x12a1   :  { %v3595_v45 = vpop.f32.mrf.mxu1 }
0x12a2   :  { %v2378_v53 = vpack.c.bf16 %v2308_v43, %v2305_v41 }
0x12a4   :  { %v2383_v54 = vsel %vm921_vm5, %v2378_v53, 0 }
0x12a5   :  { %3605 = vmatpush3.bf16.xpose.msra.mxu1 %v2383_v54 }
0x12a6   :  { %3616 = vmatprep.subr.bf16.mxu1 %v3827_v0 }
0x12ac   :  { %3607 = vmatmul.mubr.msk.bf16.vlgmr.msra.gmra.mxu1 %vm921_vm5, %v2377_v16 }
0x12ad   :  { %3618 = vmatprep.mubr.msk.bf16.mxu1 %vm3829_vm0, %v3827_v0  ;;  %3617 = vmatpush3.bf16.msra.mxu1 %v3746_v13 }
0x12ae   :  { %3630 = vmatprep.subr.bf16.mxu1 %v3827_v0 }
0x136c   :  { %v2419_v55 = vpop.f32.mrf.mxu1 }
0x136d   :  { %v2426_v42 = vmul.f32 0.25, %v2419_v55 }
0x136e   :  { %v3608_v15 = vpop.f32.mrf.mxu1 }
0x136f   :  { %v2428_v19 = vadd.f32 %v2426_v42, %v4083_v40 }
0x1370   :  { %v2422_v20 = vpop.f32.mrf.mxu1 }
0x1371   :  { %v2427_v30 = vmul.f32 0.25, %v2422_v20  ;;  %v2430_v61 = vsel %vm973_vm12, %v2428_v19, -inf }
0x1372   :  { %2431 = vmax.xlane.f32.xlu0 %v2430_v61  ;;  %v3609_v62 = vpop.f32.mrf.mxu1  ;;  %v3748_v61 = vld [vmem:[%s4193_s30 + $0x10] sm:$0xff]  }
0x1373   :  { %v2429_v63 = vadd.f32 %v2427_v30, %v4087_v51  ;;  %v3747_v30 = vld [vmem:[%s4193_s30 + $0x18] sm:$0xff]  }
0x1375   :  { %v2433_v46 = vsel %vm977_vm14, %v2429_v63, -inf }
0x1376   :  { %2434 = vmax.xlane.f32.xlu1 %v2433_v46 }
0x13fb   :  { %v2432_v48 = vpop.xlane.xlu0 %2431 }
0x13fc   :  { %v2436_v4 = vsub.f32 %v2428_v19, %v2432_v48 }
0x13fe   :  { %v2438_v3 = vmul.f32 1.442695, %v2436_v4 }
0x13ff   :  { %v2435_v5 = vpop.xlane.xlu1 %2434 }
0x1400   :  { %3807 = vpow2.f32 %v2438_v3  ;;  %v2437_v50 = vsub.f32 %v2429_v63, %v2435_v5  ;;  %v3166_v5 = vld [vmem:[%s4000_s11 + $0x9] ss:$0 sm:$0xff] }
0x1402   :  { %v2440_v7 = vmul.f32 1.442695, %v2437_v50  ;;  %v1735_v50 = vadd.f32 %v3166_v5, %v4201_v38 }
0x1404   :  { %3809 = vpow2.f32 %v2440_v7 }
0x140d   :  { %v3808_v40 = vpop.eup %3807 }
0x140e   :  { %v2442_v8 = vsel %vm973_vm12, %v3808_v40, 0.0 }
0x140f   :  { %2443 = vadd.xlane.f32.xlu0 %v2442_v8  ;;  %v2587_v8 = vadd.f32 1.0, %v1735_v50 }
0x1411   :  { %v3810_v37 = vpop.eup %3809 }
0x1412   :  { %v2445_v9 = vsel %vm977_vm14, %v3810_v37, 0.0 }
0x1413   :  { %2446 = vadd.xlane.f32.xlu1 %v2445_v9 }
0x1498   :  { %v2444_v51 = vpop.xlane.xlu0 %2443 }
0x1499   :  { %3811 = vrcp.f32 %v2444_v51 }
0x149c   :  { %v2447_v10 = vpop.xlane.xlu1 %2446 }
0x149d   :  { %3813 = vrcp.f32 %v2447_v10 }
0x14a6   :  { %v3812_v11 = vpop.eup %3811 }
0x14a7   :  { %v2450_v12 = vmul.f32 %v3812_v11, %v3808_v40  ;;  %v3170_v40 = vld [vmem:[%s4000_s11 + $0xb] ss:$0 sm:$0xff] }
0x14a8   :  { %v1755_v51 = vadd.f32 %v3170_v40, %v4210_v49  ;;  %v3750_v49 = vld [vmem:[%s4225_s6 + $0x30] sm:$0xff]  }
0x14aa   :  { %v3814_v56 = vpop.eup %3813 }
0x14ab   :  { %v2451_v39 = vmul.f32 %v3814_v56, %v3810_v37  ;;  %v1736_v37 = vadd.f32 %v3166_v5, %v4207_v47  ;;  %v3749_v47 = vld [vmem:[%s4225_s6 + $0x38] sm:$0xff]  }
0x14ad   :  { %v2452_v57 = vpack.c.bf16 %v2451_v39, %v2450_v12  ;;  %v2588_v56 = vadd.f32 1.0, %v1736_v37 }
0x14af   :  { %3613 = vmatmul.mubr.msk.bf16.vlgmr.msra.gmra.mxu0 %vm973_vm12, %v2452_v57  ;;  %v1756_v57 = vadd.f32 %v3170_v40, %v4216_v44  ;;  %v3752_v44 = vld [vmem:[%s4225_s6 + $0x20] sm:$0xff]  }
0x14b0   :  { %3626 = vmatprep.mubr.msk.bf16.mxu0 %vm3829_vm0, %v3827_v0  ;;  %3623 = vmatpush3.bf16.msra.mxu0 %v3747_v30  ;;  %v3756_v30 = vld [vmem:[%s3029_s17] sm:$0xff]  }
0x14b1   :  { %3624 = vmatprep.subr.bf16.mxu0 %v3827_v0 }
0x14b4   :  { %3625 = vmatpush3.bf16.msra.mxu0 %v3748_v61  ;;  %v3162_v61 = vld [vmem:[%s4000_s11 + $0x7] ss:$0 sm:$0xff]  ;;  %s3855_s11 = smov 27  }
0x14b5   :  { %3642 = vmatprep.subr.bf16.mxu0 %v3827_v0  ;;  %v1716_v50 = vadd.f32 %v3162_v61, %v4257_v58  ;;  %s3031_s20 = sld [smem:[%s4469_s0 + %s3855_s11]]  }
0x156f   :  { %v2494_v14 = vpop.f32.mrf.mxu0 }
0x1571   :  { %v3614_v16 = vpop.f32.mrf.mxu0 }
0x1572   :  { %v3751_v16 = vld [vmem:[%s4225_s6 + $0x28] sm:$0xff]  }
0x1573   :  { %v2497_v27 = vpop.f32.mrf.mxu0 }
0x1574   :  { %v2501_v17 = vpack.c.bf16 %v2497_v27, %v2494_v14  ;;  %v3244_v27 = vld [vmem:[%s4238_s12 + $0x1] ss:$0 sm:$0xff] }
0x1575   :  { %v3615_v18 = vpop.f32.mrf.mxu0 }
0x1576   :  { %3619 = vmatmul.mubr.msk.bf16.vlgmr.msra.gmra.mxu1 %vm921_vm5, %v2501_v17 }
0x1577   :  { %3638 = vmatprep.mubr.msk.bf16.mxu1 %vm3829_vm0, %v3827_v0  ;;  %3631 = vmatpush3.bf16.msra.mxu1 %v3749_v47 }
0x1578   :  { %3632 = vmatprep.subr.bf16.mxu1 %v3827_v0 }
0x157b   :  { %3633 = vmatpush3.bf16.msra.mxu1 %v3750_v49 }
0x157c   :  { %3634 = vmatprep.subr.bf16.mxu1 %v3827_v0 }
0x157f   :  { %3635 = vmatpush3.bf16.msra.mxu1 %v3751_v16 }
0x1580   :  { %3636 = vmatprep.subr.bf16.mxu1 %v3827_v0 }
0x1583   :  { %3637 = vmatpush3.bf16.msra.mxu1 %v3752_v44 }
0x1584   :  { %3658 = vmatprep.subr.bf16.mxu1 %v3827_v0 }
0x1636   :  { %v2548_v32 = vpop.f32.mrf.mxu1 }
0x1637   :  { %v2555_v26 = vadd.f32 %v2548_v32, %v2177_v24 }
0x1638   :  { %v3620_v60 = vpop.f32.mrf.mxu1 }
0x1639   :  { %v2557_v33 = vmul.f32 %v2555_v26, %v1705_v25 }
0x163a   :  { %v2551_v34 = vpop.f32.mrf.mxu1 }
0x163b   :  { %v4389_v36 = vadd.f32 %v2557_v33, %v4261_v2  ;;  %v2556_v41 = vadd.f32 %v2551_v34, %v2178_v31 }
0x163c   :  { %v3621_v43 = vpop.f32.mrf.mxu1 }
0x163d   :  { %v2558_v45 = vmul.f32 %v2556_v41, %v1706_v35  ;;  %v2561_v28 = vsel %vm254_vm3, %v4389_v36, 0.0 }
0x163e   :  { %2562 = vadd.xlane.f32.xlu0 %v2561_v28 }
0x163f   :  { %v4394_v59 = vadd.f32 %v2558_v45, %v4266_v6 }
0x1641   :  { %v2564_v29 = vsel %vm691_vm4, %v4394_v59, 0.0 }
0x1642   :  { %2565 = vadd.xlane.f32.xlu1 %v2564_v29 }
0x16c7   :  { %v2563_v1 = vpop.xlane.xlu0 %2562 }
0x16c8   :  { %v2567_v53 = vmul.f32 0.03125, %v2563_v1 }
0x16ca   :  { %v2569_v2 = vsub.f32 %v4389_v36, %v2567_v53 }
0x16cb   :  { %v2566_v54 = vpop.xlane.xlu1 %2565 }
0x16cc   :  { %v2568_v55 = vmul.f32 0.03125, %v2566_v54  ;;  %v2571_v42 = vmul.f32 %v2569_v2, %v2569_v2 }
0x16ce   :  { %v2570_v15 = vsub.f32 %v4394_v59, %v2568_v55  ;;  %v2573_v19 = vsel %vm254_vm3, %v2571_v42, 0.0 }
0x16cf   :  { %2574 = vadd.xlane.f32.xlu0 %v2573_v19  ;;  %v3753_v19 = vld [vmem:[%s3027_s7 + $0x8] sm:$0xff]  }
0x16d0   :  { %v2572_v20 = vmul.f32 %v2570_v15, %v2570_v15 }
0x16d2   :  { %v2576_v6 = vsel %vm691_vm4, %v2572_v20, 0.0  ;;  %v3754_v20 = vld [vmem:[%s3027_s7] sm:$0xff]  }
0x16d3   :  { %2577 = vadd.xlane.f32.xlu1 %v2576_v6  ;;  %v3755_v6 = vld [vmem:[%s3029_s17 + $0x8] sm:$0xff]  }
0x1758   :  { %v2575_v62 = vpop.xlane.xlu0 %2574 }
0x1759   :  { %v2579_v63 = vmul.f32 0.03125, %v2575_v62  ;;  %v3257_v62 = vld [vmem:[%s4247_s16 + $0x1] ss:$0 sm:$0xff] }
0x175b   :  { %v2581_v46 = vadd.f32 1e-06, %v2579_v63 }
0x175c   :  { %v2578_v48 = vpop.xlane.xlu1 %2577 }
0x175d   :  { %3815 = vrsqrt.f32 %v2581_v46  ;;  %v2580_v4 = vmul.f32 0.03125, %v2578_v48  ;;  %v1715_v46 = vadd.f32 %v3162_v61, %v4251_v52 }
0x175f   :  { %v2582_v3 = vadd.f32 1e-06, %v2580_v4 }
0x1761   :  { %3817 = vrsqrt.f32 %v2582_v3 }
0x176a   :  { %v3816_v7 = vpop.eup %3815 }
0x176b   :  { %v2585_v9 = vmul.f32 %v3816_v7, %v2569_v2 }
0x176d   :  { %v2589_v10 = vmul.f32 %v2587_v8, %v2585_v9 }
0x176e   :  { %v3818_v11 = vpop.eup %3817 }
0x176f   :  { %v2586_v12 = vmul.f32 %v3818_v11, %v2570_v15  ;;  %v2591_v39 = vadd.f32 %v2589_v10, %v1755_v51 }
0x1771   :  { %v2590_v38 = vmul.f32 %v2588_v56, %v2586_v12 }
0x1773   :  { %v2592_v13 = vadd.f32 %v2590_v38, %v1756_v57 }
0x1775   :  { %v2593_v14 = vpack.c.bf16 %v2592_v13, %v2591_v39 }
0x1777   :  { %3627 = vmatmul.mubr.msk.bf16.vlgmr.msra.gmra.mxu0 %vm254_vm3, %v2593_v14 }
0x1778   :  { %3646 = vmatprep.mubr.msk.bf16.mxu0 %vm3829_vm0, %v3827_v0  ;;  %3643 = vmatpush3.bf16.msra.mxu0 %v3753_v19 }
0x1779   :  { %3644 = vmatprep.subr.bf16.mxu0 %v3827_v0 }
0x177c   :  { %3645 = vmatpush3.bf16.msra.mxu0 %v3754_v20 }
0x177d   :  { %3650 = vmatprep.subr.bf16.mxu0 %v3827_v0 }
0x177f   :  { %3647 = vmatmul.mubr.msk.bf16.vlgmr.msra.gmra.mxu0 %vm254_vm3, %v3893_v21 }
0x1780   :  { %3651 = vmatpush3.bf16.msra.mxu0 %v3755_v6  ;;  %3654 = vmatprep.mubr.msk.bf16.mxu0 %vm3829_vm0, %v3827_v0 }
0x1781   :  { %3652 = vmatprep.subr.bf16.mxu0 %v3827_v0 }
0x1784   :  { %3653 = vmatpush3.bf16.msra.mxu0 %v3756_v30 }
0x1787   :  { %3655 = vmatmul.mubr.msk.bf16.vlgmr.msra.gmra.mxu0 %vm254_vm3, %v3893_v21 }
0x1837   :  { %v2656_v17 = vpop.f32.mrf.mxu0 }
0x1838   :  { %v2657_v18 = vadd.f32 %v3244_v27, %v2656_v17  ;;  %v3757_v17 = vld [vmem:[%s3031_s20 + $0x8] sm:$0xff]  }
0x1839   :  { %v3628_v22 = vpop.f32.mrf.mxu0 }
0x183a   :  { %v2663_v23 = vmul.f32 %v2657_v18, %v2657_v18 }
0x183b   :  { %v2659_v24 = vpop.f32.mrf.mxu0 }
0x183c   :  { %v2665_v32 = vmul.f32 %v2663_v23, %v2657_v18  ;;  %v2660_v25 = vadd.f32 %v3244_v27, %v2659_v24 }
0x183d   :  { %v3629_v26 = vpop.f32.mrf.mxu0 }
0x183e   :  { %v2667_v60 = vmul.f32 0.044715, %v2665_v32  ;;  %v2664_v31 = vmul.f32 %v2660_v25, %v2660_v25 }
0x183f   :  { %v2828_v13 = vpop.f32.mrf.mxu0 }
0x1840   :  { %v2669_v33 = vadd.f32 %v2667_v60, %v2657_v18  ;;  %v2666_v34 = vmul.f32 %v2664_v31, %v2660_v25  ;;  %v3267_v31 = vld [vmem:[%s3030_s2] ss:$0 sm:$0xff] }
0x1841   :  { %v3648_v14 = vpop.f32.mrf.mxu0 }
0x1842   :  { %v2671_v35 = vmul.f32 0.7978846, %v2669_v33  ;;  %v2668_v41 = vmul.f32 0.044715, %v2666_v34 }
0x1844   :  { %3819 = vtanh.f32 %v2671_v35  ;;  %v2670_v43 = vadd.f32 %v2668_v41, %v2660_v25 }
0x1846   :  { %v2672_v45 = vmul.f32 0.7978846, %v2670_v43 }
0x1848   :  { %3821 = vtanh.f32 %v2672_v45 }
0x1851   :  { %v3820_v28 = vpop.eup %3819 }
0x1852   :  { %v2675_v29 = vadd.f32 1.0, %v3820_v28 }
0x1854   :  { %v2677_v53 = vmul.f32 0.5, %v2675_v29 }
0x1855   :  { %v3822_v1 = vpop.eup %3821 }
0x1856   :  { %v2676_v2 = vadd.f32 1.0, %v3822_v1  ;;  %v2679_v55 = vmul.f32 %v2677_v53, %v2657_v18  ;;  %v3758_v18 = vld [vmem:[%s3031_s20] sm:$0xff]  }
0x1858   :  { %v2678_v54 = vmul.f32 0.5, %v2676_v2 }
0x185a   :  { %v2680_v42 = vmul.f32 %v2678_v54, %v2660_v25 }
0x185c   :  { %v2681_v15 = vpack.c.bf16 %v2680_v42, %v2679_v55 }
0x185e   :  { %3639 = vmatmul.mubr.msk.bf16.vlgmr.msra.gmra.mxu1 %vm1648_vm15, %v2681_v15  ;;  %v3271_v15 = vld [vmem:[%s3032_s9] ss:$0 sm:$0xff] }
0x185f   :  { %3662 = vmatprep.mubr.msk.bf16.mxu1 %vm3829_vm0, %v3827_v0  ;;  %3659 = vmatpush3.bf16.msra.mxu1 %v3757_v17 }
0x1860   :  { %3660 = vmatprep.subr.bf16.mxu1 %v3827_v0  ;;  %v3263_v0 = vld [vmem:[%s3028_s26] ss:$0 sm:$0xff] }
0x1861   :  { %v2829_v60 = vadd.f32 %v3263_v0, %v2828_v13 }
0x1863   :  { %3661 = vmatpush3.bf16.msra.mxu1 %v3758_v18  ;;  %v2925_v35 = vadd.f32 1.0, %v2829_v60 }
0x191e   :  { %v2760_v63 = vpop.f32.mrf.mxu1 }
0x191f   :  { %v2761_v48 = vadd.f32 %v3257_v62, %v2760_v63 }
0x1920   :  { %v3640_v4 = vpop.f32.mrf.mxu1 }
0x1921   :  { %v2767_v3 = vmul.f32 %v2761_v48, %v1715_v46 }
0x1922   :  { %v2763_v5 = vpop.f32.mrf.mxu1 }
0x1923   :  { %v2764_v7 = vadd.f32 %v3257_v62, %v2763_v5  ;;  %v2769_v40 = vadd.f32 %v2767_v3, %v4389_v36 }
0x1924   :  { %v3641_v8 = vpop.f32.mrf.mxu1 }
0x1925   :  { %v2768_v37 = vmul.f32 %v2764_v7, %v1716_v50  ;;  %v2899_v9 = vsel %vm254_vm3, %v2769_v40, 0.0 }
0x1926   :  { %2900 = vadd.xlane.f32.xlu0 %v2899_v9 }
0x1927   :  { %v2770_v21 = vadd.f32 %v2768_v37, %v4394_v59  ;;  %v2831_v59 = vpop.f32.mrf.mxu0 }
0x1928   :  { %v2832_v41 = vadd.f32 %v3263_v0, %v2831_v59 }
0x1929   :  { %v2902_v51 = vsel %vm691_vm4, %v2770_v21, 0.0  ;;  %v3649_v47 = vpop.f32.mrf.mxu0 }
0x192a   :  { %2903 = vadd.xlane.f32.xlu1 %v2902_v51  ;;  %v2926_v1 = vadd.f32 1.0, %v2832_v41 }
0x192b   :  { %v2892_v49 = vpop.f32.mrf.mxu0 }
0x192c   :  { %v2893_v43 = vadd.f32 %v3267_v31, %v2892_v49 }
0x192d   :  { %v3656_v16 = vpop.f32.mrf.mxu0 }
0x192f   :  { %v2895_v44 = vpop.f32.mrf.mxu0 }
0x1930   :  { %v2896_v54 = vadd.f32 %v3267_v31, %v2895_v44 }
0x1931   :  { %v3657_v27 = vpop.f32.mrf.mxu0 }
0x19af   :  { %v2901_v52 = vpop.xlane.xlu0 %2900 }
0x19b0   :  { %v2905_v10 = vmul.f32 0.03125, %v2901_v52 }
0x19b2   :  { %v2907_v11 = vsub.f32 %v2769_v40, %v2905_v10 }
0x19b3   :  { %v2904_v56 = vpop.xlane.xlu1 %2903 }
0x19b4   :  { %v2906_v12 = vmul.f32 0.03125, %v2904_v56  ;;  %v2909_v39 = vmul.f32 %v2907_v11, %v2907_v11 }
0x19b6   :  { %v2908_v58 = vsub.f32 %v2770_v21, %v2906_v12  ;;  %v2911_v57 = vsel %vm254_vm3, %v2909_v39, 0.0 }
0x19b7   :  { %2912 = vadd.xlane.f32.xlu0 %v2911_v57 }
0x19b8   :  { %v2910_v36 = vmul.f32 %v2908_v58, %v2908_v58 }
0x19ba   :  { %v2914_v38 = vsel %vm691_vm4, %v2910_v36, 0.0 }
0x19bb   :  { %2915 = vadd.xlane.f32.xlu1 %v2914_v38 }
0x1a40   :  { %v2913_v22 = vpop.xlane.xlu0 %2912 }
0x1a41   :  { %v2917_v23 = vmul.f32 0.03125, %v2913_v22 }
0x1a43   :  { %v2919_v24 = vadd.f32 1e-06, %v2917_v23 }
0x1a44   :  { %v2916_v32 = vpop.xlane.xlu1 %2915 }
0x1a45   :  { %3823 = vrsqrt.f32 %v2919_v24  ;;  %v2918_v25 = vmul.f32 0.03125, %v2916_v32 }
0x1a47   :  { %v2920_v26 = vadd.f32 1e-06, %v2918_v25 }
0x1a49   :  { %3825 = vrsqrt.f32 %v2920_v26 }
0x1a52   :  { %v3824_v33 = vpop.eup %3823 }
0x1a53   :  { %v2923_v34 = vmul.f32 %v3824_v33, %v2907_v11 }
0x1a55   :  { %v2927_v45 = vmul.f32 %v2925_v35, %v2923_v34 }
0x1a56   :  { %v3826_v28 = vpop.eup %3825 }
0x1a57   :  { %v2924_v29 = vmul.f32 %v3826_v28, %v2908_v58  ;;  %v2929_v53 = vadd.f32 %v2927_v45, %v2893_v43 }
0x1a59   :  { %v2928_v2 = vmul.f32 %v2926_v1, %v2924_v29 }
0x1a5b   :  { %v2930_v55 = vadd.f32 %v2928_v2, %v2896_v54 }
0x1a5d   :  { %v2931_v42 = vpack.c.bf16 %v2930_v55, %v2929_v53 }
0x1a5f   :  { %3663 = vmatmul.mubr.msk.bf16.vlgmr.msra.gmra.mxu1 %vm254_vm3, %v2931_v42 }
0x1b1f   :  { %v2992_v19 = vpop.f32.mrf.mxu1 }
0x1b20   :  { %v2993_v20 = vadd.f32 %v3271_v15, %v2992_v19 }
0x1b21   :  { %v3664_v6 = vpop.f32.mrf.mxu1 }
0x1b22   :  { %2999 = vst [vmem:[%s3033_s14] sm:$0xff] %v2993_v20 }
0x1b23   :  { %v2995_v30 = vpop.f32.mrf.mxu1 }
0x1b24   :  { %v2996_v61 = vadd.f32 %v3271_v15, %v2995_v30 }
0x1b25   :  { %v3665_v62 = vpop.f32.mrf.mxu1 }
0x1b26   :  { %3000 = vst [vmem:[%s3033_s14 + $0x8] sm:$0xf] %v2996_v61 }

</bundles_post_ra>
